<compile_context>
chip_gen: v6e
topology: v6e:2x2x1
jax: 0.10.0
libtpu: 0.0.40
codegen_flags: <defaults>
</compile_context>

<pallas_src>
import functools

import jax
import jax.numpy as jnp
from jax.experimental import pallas as pl
from jax.experimental.pallas import tpu as pltpu


# ----------------------------------------------------------------------------
# static planning helpers
# ----------------------------------------------------------------------------
def _const_map(ndim):
    # whole (tiny) parameter array, constant block index across the batch grid
    return lambda i, _nd=ndim: (0,) * _nd


def _plan(block_cfgs, l_in0):
    """Per-block length bookkeeping + activation scratch sizing (all static)."""
    l = l_in0
    pad_rows, pad_cols = 0, 1
    per_block = []
    prev_cout = None
    for cin, cout, ksize, stride, pad, pool, pool_stride in block_cfgs:
        assert stride == 1, "in-kernel shifted-slice conv assumes stride == 1"
        assert pool == pool_stride, "only pool_stride == pool_size supported"
        if prev_cout is not None:
            assert cin == prev_cout
        l_out = l + 2 * pad - ksize + 1
        assert l_out % pool == 0
        l_pool = l_out // pool
        per_block.append((l, l_out, l_pool))
        pad_rows = max(pad_rows, l + 2 * pad)
        pad_cols = max(pad_cols, cin)
        prev_cout = cout
        l = l_pool
    rnd8 = lambda v: ((v + 7) // 8) * 8
    return tuple(per_block), rnd8(pad_rows), pad_cols


# ----------------------------------------------------------------------------
# fused Pallas kernel: all 6 blocks for `bt` batch samples, activations in VMEM
# ----------------------------------------------------------------------------
def make_fused_kernel(block_cfgs, per_block_l, bt):
    n_blocks = len(block_cfgs)

    def kernel(*refs):
        x_ref = refs[0]                                   # (bt, L0, Cin0)
        w_refs = refs[1:1 + n_blocks]                     # (K, Cin, Cout) each
        scal_ref = refs[1 + n_blocks]                     # (8, max_cout) packed
        o_ref = refs[2 + n_blocks]                        # (bt, l_last, cout_last)
        act_buf = refs[3 + n_blocks]                      # VMEM scratch

        for j in range(bt):                               # static unroll over batch tile
            act = None
            for i, cfg in enumerate(block_cfgs):
                cin, cout, ksize, _s, pad, pool, _ps = cfg
                l_in, l_out, l_pool = per_block_l[i]
                w_ref = w_refs[i]
                last = (i == n_blocks - 1)

                # Zero only the pad halo (the only rows the tap slices read that
                # the block-input write below does not overwrite).
                if pad > 0:
                    zhalo = jnp.zeros((pad, cin), jnp.float32)
                    act_buf[0:pad, 0:cin] = zhalo
                    act_buf[pad + l_in:pad + l_in + pad, 0:cin] = zhalo

                # Stage this block's input (real ECG for block1, +-1 afterwards).
                if i == 0:
                    act_buf[pad:pad + l_in, 0:cin] = x_ref[j]
                else:
                    act_buf[pad:pad + l_in, 0:cin] = act

                # conv1d (stride 1) fused with maxpool1d(pool, pool):
                # accumulate the K taps per pool phase with stride-`pool`
                # sublane reads, then max over phases in registers.
                if l_pool == 1:
                    # pool window covers the whole conv output -> one dense
                    # accumulation + a sublane max reduce.
                    acc = jnp.zeros((l_out, cout), jnp.float32)
                    for k in range(ksize):
                        xs = act_buf[k:k + l_out, 0:cin]
                        if cin == 1:
                            acc = acc + xs * w_ref[k]
                        else:
                            acc = acc + jnp.dot(xs, w_ref[k],
                                                preferred_element_type=jnp.float32)
                    pooled = jnp.max(acc, axis=0, keepdims=True)
                else:
                    pooled = None
                    for p in range(pool):
                        acc = jnp.zeros((l_pool, cout), jnp.float32)
                        for k in range(ksize):
                            s0 = p + k
                            if pool == 1:
                                xs = act_buf[s0:s0 + l_pool, 0:cin]
                            else:
                                xs = act_buf[pl.ds(s0, l_pool, stride=pool), 0:cin]
                            if cin == 1:
                                # block1: Cin == 1 -> rank-1 broadcast MAC on the VPU
                                acc = acc + xs * w_ref[k]
                            else:
                                # binary blocks: +-1/0 operands, f32 MXU matmul
                                acc = acc + jnp.dot(xs, w_ref[k],
                                                    preferred_element_type=jnp.float32)
                        pooled = acc if pooled is None else jnp.maximum(pooled, acc)

                if not last:
                    # alpha (= mean|W| > 0) folded into thr at preprocess time.
                    # Ties (==thr) map to +1, matching the previous implementation.
                    # TODO(synk): verify tie behaviour (>= vs >) against PyTorch ref.
                    thr = scal_ref[i:i + 1, 0:cout]
                    act = jnp.where(pooled >= thr, 1.0, -1.0)
                else:
                    a = scal_ref[n_blocks - 1:n_blocks, 0:cout]   # a' = a * alpha
                    b = scal_ref[n_blocks:n_blocks + 1, 0:cout]
                    o_ref[j] = (a * pooled + b).astype(o_ref.dtype)

    return kernel


# ----------------------------------------------------------------------------
# forward pass (single fused pallas_call)
# ----------------------------------------------------------------------------
@functools.partial(jax.jit, static_argnames=("block_cfgs",))
def ecg_xnor_forward(x_ncw, weights, scal, block_cfgs):
    """x_ncw: (N, Cin, L) like the PyTorch module. Returns (N, Cout, 1)."""
    n, c_in, l_in0 = x_ncw.shape
    assert c_in == block_cfgs[0][0]
    per_block_l, pad_rows, pad_cols = _plan(block_cfgs, l_in0)
    cout_last = block_cfgs[-1][1]
    l_last = per_block_l[-1][2]

    # Batch tile: amortize per-step grid/DMA overhead, but keep the grid >= 2
    # so ("parallel",) can still shard steps across both v7x TensorCores.
    bt = min(8, -(-n // 2)) if n >= 2 else 1
    grid_n = -(-n // bt)
    n_pad = grid_n * bt

    # NCW -> NLC so channels sit on the lane axis inside the kernel.
    x_nlc = jnp.transpose(x_ncw, (0, 2, 1)).astype(jnp.float32)
    if n_pad != n:
        x_nlc = jnp.concatenate(
            [x_nlc, jnp.zeros((n_pad - n, l_in0, c_in), jnp.float32)], axis=0)

    operands = [x_nlc, *weights, scal]
    in_specs = [pl.BlockSpec((bt, l_in0, c_in), lambda i: (i, 0, 0))]
    for w in weights:
        in_specs.append(pl.BlockSpec(w.shape, _const_map(w.ndim)))
    in_specs.append(pl.BlockSpec(scal.shape, _const_map(scal.ndim)))

    out = pl.pallas_call(
        make_fused_kernel(block_cfgs, per_block_l, bt),
        out_shape=jax.ShapeDtypeStruct((n_pad, l_last, cout_last), jnp.float32),
        grid=(grid_n,),
        in_specs=in_specs,
        out_specs=pl.BlockSpec((bt, l_last, cout_last), lambda i: (i, 0, 0)),
        scratch_shapes=[
            pltpu.VMEM((pad_rows, pad_cols), jnp.float32),   # zero-padded activation
        ],
        compiler_params=pltpu.CompilerParams(
            dimension_semantics=("parallel",)),
    )(*operands)

    # (N, l_last, Cout) -> (N, Cout, l_last): back to PyTorch NCW.
    return jnp.transpose(out[:n], (0, 2, 1))


# ----------------------------------------------------------------------------
# one-time parameter preprocessing (hoisted out of the forward pass)
# ----------------------------------------------------------------------------
def preprocess_params(params, block_cfgs):
    """XNOR-net prep: Wb = sign(W) laid out as (K, Cin, Cout) in f32; alpha
    (= mean|W| per out channel, > 0) folded into the thresholds / output scale;
    all per-channel scalars packed into one small (8, max_cout) f32 array."""
    n_blocks = len(block_cfgs)
    max_cout = max(cfg[1] for cfg in block_cfgs)
    weights = []
    n_rows = ((n_blocks + 1 + 7) // 8) * 8
    scal = jnp.zeros((n_rows, max_cout), jnp.float32)
    for i, (p, cfg) in enumerate(zip(params, block_cfgs)):
        cout = cfg[1]
        w = p["W"].astype(jnp.float32)                        # (Cout, Cin, K)
        alpha = jnp.mean(jnp.abs(w), axis=(1, 2))             # (Cout,)
        assert bool(jnp.all(alpha > 0)), "alpha must be > 0 to fold into thresholds"
        wb = jnp.where(w >= 0, 1.0, -1.0)
        weights.append(jnp.transpose(wb, (2, 1, 0)))          # (K, Cin, Cout), f32
        if i < n_blocks - 1:
            thr = p["thr"].reshape(cout).astype(jnp.float32) / alpha
            scal = scal.at[i, :cout].set(thr)
        else:
            a = p["a"].reshape(cout).astype(jnp.float32) * alpha
            b = p["b"].reshape(cout).astype(jnp.float32)
            scal = scal.at[n_blocks - 1, :cout].set(a)
            scal = scal.at[n_blocks, :cout].set(b)
    return tuple(weights), scal


def init_params(key, block_cfgs):
    params = []
    for cfg in block_cfgs:
        cin, cout, ksize = cfg[0], cfg[1], cfg[2]
        key, k1, k2, k3, k4 = jax.random.split(key, 5)
        params.append(dict(
            W=0.1 * jax.random.normal(k1, (cout, cin, ksize), jnp.float32),
            thr=0.05 * jax.random.normal(k2, (1, cout), jnp.float32),
            a=1.0 + 0.1 * jax.random.normal(k3, (1, cout), jnp.float32),
            b=0.1 * jax.random.normal(k4, (1, cout), jnp.float32),
        ))
    return params


# ----------------------------------------------------------------------------
# demo
# ----------------------------------------------------------------------------
if __name__ == "__main__":
    # block cfg = (in_ch, out_ch, kernel, stride, pad, pool_size, pool_stride)
    block_cfgs = (
        (1,  8,  7, 1, 3, 2, 2),   # block1 (bw_Threshold)     L: 128 -> 64
        (8,  16, 5, 1, 2, 2, 2),   # block2 (baw_Threshold)    L: 64  -> 32
        (16, 16, 5, 1, 2, 2, 2),   # block3 (baw_Threshold)    L: 32  -> 16
        (16, 32, 3, 1, 1, 2, 2),   # block4 (baw_Threshold)    L: 16  -> 8
        (32, 32, 3, 1, 1, 2, 2),   # block5 (baw_Threshold)    L: 8   -> 4
        (32, 5,  3, 1, 1, 4, 4),   # block6 (baw_akx_plus_b)   L: 4   -> 1, 5 classes
    )

    root = jax.random.PRNGKey(0)
    k_x, k_p = jax.random.split(root)
    params = init_params(k_p, block_cfgs)
    weights, scal = preprocess_params(params, block_cfgs)   # one-time, outside forward

    # ECG input: batch=4, 1 lead, 128 samples (NCW, like PyTorch conv1d).
    x = jax.random.normal(k_x, (4, 1, 128), jnp.float32)

    out = ecg_xnor_forward(x, weights, scal, block_cfgs=block_cfgs)
    out = jax.block_until_ready(out)

    assert out.shape == (4, 5, 1), out.shape
    assert bool(jnp.all(jnp.isfinite(out)))
    print("KERNEL_OK")
</pallas_src>

<mosaic_0001>
module attributes {stable_mosaic.version = 11 : i64} {
  func.func @kernel(%arg0: i32, %arg1: memref<2x128x1xf32, #tpu.memory_space<vmem>>, %arg2: memref<7x1x8xf32, #tpu.memory_space<vmem>>, %arg3: memref<5x8x16xf32, #tpu.memory_space<vmem>>, %arg4: memref<5x16x16xf32, #tpu.memory_space<vmem>>, %arg5: memref<3x16x32xf32, #tpu.memory_space<vmem>>, %arg6: memref<3x32x32xf32, #tpu.memory_space<vmem>>, %arg7: memref<3x32x5xf32, #tpu.memory_space<vmem>>, %arg8: memref<8x32xf32, #tpu.memory_space<vmem>>, %arg9: memref<2x1x5xf32, #tpu.memory_space<vmem>>, %arg10: memref<136x32xf32, #tpu.memory_space<vmem>>) attributes {dimension_semantics = [#tpu.dimension_semantics<parallel>], iteration_bounds = array<i64: 2>, scalar_prefetch = 0 : i64, scratch_operands = 1 : i64, tpu.core_type = #tpu.core_type<tc>, window_params = [{transform_indices = @transform_0, window_bounds = array<i64: 2, 128, 1>}, {pipeline_mode = #tpu.pipeline_mode<synchronous>, transform_indices = @transform_1, window_bounds = array<i64: 7, 1, 8>}, {pipeline_mode = #tpu.pipeline_mode<synchronous>, transform_indices = @transform_2, window_bounds = array<i64: 5, 8, 16>}, {pipeline_mode = #tpu.pipeline_mode<synchronous>, transform_indices = @transform_3, window_bounds = array<i64: 5, 16, 16>}, {pipeline_mode = #tpu.pipeline_mode<synchronous>, transform_indices = @transform_4, window_bounds = array<i64: 3, 16, 32>}, {pipeline_mode = #tpu.pipeline_mode<synchronous>, transform_indices = @transform_5, window_bounds = array<i64: 3, 32, 32>}, {pipeline_mode = #tpu.pipeline_mode<synchronous>, transform_indices = @transform_6, window_bounds = array<i64: 3, 32, 5>}, {pipeline_mode = #tpu.pipeline_mode<synchronous>, transform_indices = @transform_7, window_bounds = array<i64: 8, 32>}, {transform_indices = @transform_8, window_bounds = array<i64: 2, 1, 5>}]} {
    %cst = arith.constant 0.000000e+00 : f32
    %0 = vector.broadcast %cst : f32 to vector<3x1xf32>
    %c0 = arith.constant 0 : index
    %c0_0 = arith.constant 0 : index
    %1 = vector.load %arg10[%c0, %c0_0] : memref<136x32xf32, #tpu.memory_space<vmem>>, vector<3x1xf32>
    tpu.vector_store %arg10[%c0, %c0_0], %0 {strides = array<i32>} : memref<136x32xf32, #tpu.memory_space<vmem>>, vector<3x1xf32>,
    %c131 = arith.constant 131 : index
    %c0_1 = arith.constant 0 : index
    %2 = vector.load %arg10[%c131, %c0_1] : memref<136x32xf32, #tpu.memory_space<vmem>>, vector<3x1xf32>
    tpu.vector_store %arg10[%c131, %c0_1], %0 {strides = array<i32>} : memref<136x32xf32, #tpu.memory_space<vmem>>, vector<3x1xf32>,
    %c0_2 = arith.constant 0 : index
    %c0_3 = arith.constant 0 : index
    %c0_4 = arith.constant 0 : index
    %3 = vector.load %arg1[%c0_2, %c0_3, %c0_4] : memref<2x128x1xf32, #tpu.memory_space<vmem>>, vector<1x128x1xf32>
    %4 = vector.shape_cast %3 : vector<1x128x1xf32> to vector<128x1xf32>
    %c3 = arith.constant 3 : index
    %c0_5 = arith.constant 0 : index
    %5 = vector.load %arg10[%c3, %c0_5] : memref<136x32xf32, #tpu.memory_space<vmem>>, vector<128x1xf32>
    tpu.vector_store %arg10[%c3, %c0_5], %4 {strides = array<i32>} : memref<136x32xf32, #tpu.memory_space<vmem>>, vector<128x1xf32>,
    %cst_6 = arith.constant 0.000000e+00 : f32
    %6 = vector.broadcast %cst_6 : f32 to vector<64x8xf32>
    %c0_7 = arith.constant 0 : index
    %c0_8 = arith.constant 0 : index
    %7 = tpu.strided_load %arg10[%c0_7, %c0_8] {strides = array<i32: 2, 1>} : memref<136x32xf32, #tpu.memory_space<vmem>>, vector<64x1xf32>
    %c0_9 = arith.constant 0 : index
    %c0_10 = arith.constant 0 : index
    %c0_11 = arith.constant 0 : index
    %8 = vector.load %arg2[%c0_9, %c0_10, %c0_11] : memref<7x1x8xf32, #tpu.memory_space<vmem>>, vector<1x1x8xf32>
    %9 = vector.shape_cast %8 : vector<1x1x8xf32> to vector<1x8xf32>
    %10 = vector.broadcast %7 : vector<64x1xf32> to vector<64x8xf32>
    %11 = vector.broadcast %9 : vector<1x8xf32> to vector<64x8xf32>
    %12 = arith.mulf %10, %11 : vector<64x8xf32>
    %13 = arith.addf %6, %12 : vector<64x8xf32>
    %c1 = arith.constant 1 : index
    %c0_12 = arith.constant 0 : index
    %14 = tpu.strided_load %arg10[%c1, %c0_12] {strides = array<i32: 2, 1>} : memref<136x32xf32, #tpu.memory_space<vmem>>, vector<64x1xf32>
    %c1_13 = arith.constant 1 : index
    %c0_14 = arith.constant 0 : index
    %c0_15 = arith.constant 0 : index
    %15 = vector.load %arg2[%c1_13, %c0_14, %c0_15] : memref<7x1x8xf32, #tpu.memory_space<vmem>>, vector<1x1x8xf32>
    %16 = vector.shape_cast %15 : vector<1x1x8xf32> to vector<1x8xf32>
    %17 = vector.broadcast %14 : vector<64x1xf32> to vector<64x8xf32>
    %18 = vector.broadcast %16 : vector<1x8xf32> to vector<64x8xf32>
    %19 = arith.mulf %17, %18 : vector<64x8xf32>
    %20 = arith.addf %13, %19 : vector<64x8xf32>
    %c2 = arith.constant 2 : index
    %c0_16 = arith.constant 0 : index
    %21 = tpu.strided_load %arg10[%c2, %c0_16] {strides = array<i32: 2, 1>} : memref<136x32xf32, #tpu.memory_space<vmem>>, vector<64x1xf32>
    %c2_17 = arith.constant 2 : index
    %c0_18 = arith.constant 0 : index
    %c0_19 = arith.constant 0 : index
    %22 = vector.load %arg2[%c2_17, %c0_18, %c0_19] : memref<7x1x8xf32, #tpu.memory_space<vmem>>, vector<1x1x8xf32>
    %23 = vector.shape_cast %22 : vector<1x1x8xf32> to vector<1x8xf32>
    %24 = vector.broadcast %21 : vector<64x1xf32> to vector<64x8xf32>
    %25 = vector.broadcast %23 : vector<1x8xf32> to vector<64x8xf32>
    %26 = arith.mulf %24, %25 : vector<64x8xf32>
    %27 = arith.addf %20, %26 : vector<64x8xf32>
    %c3_20 = arith.constant 3 : index
    %c0_21 = arith.constant 0 : index
    %28 = tpu.strided_load %arg10[%c3_20, %c0_21] {strides = array<i32: 2, 1>} : memref<136x32xf32, #tpu.memory_space<vmem>>, vector<64x1xf32>
    %c3_22 = arith.constant 3 : index
    %c0_23 = arith.constant 0 : index
    %c0_24 = arith.constant 0 : index
    %29 = vector.load %arg2[%c3_22, %c0_23, %c0_24] : memref<7x1x8xf32, #tpu.memory_space<vmem>>, vector<1x1x8xf32>
    %30 = vector.shape_cast %29 : vector<1x1x8xf32> to vector<1x8xf32>
    %31 = vector.broadcast %28 : vector<64x1xf32> to vector<64x8xf32>
    %32 = vector.broadcast %30 : vector<1x8xf32> to vector<64x8xf32>
    %33 = arith.mulf %31, %32 : vector<64x8xf32>
    %34 = arith.addf %27, %33 : vector<64x8xf32>
    %c4 = arith.constant 4 : index
    %c0_25 = arith.constant 0 : index
    %35 = tpu.strided_load %arg10[%c4, %c0_25] {strides = array<i32: 2, 1>} : memref<136x32xf32, #tpu.memory_space<vmem>>, vector<64x1xf32>
    %c4_26 = arith.constant 4 : index
    %c0_27 = arith.constant 0 : index
    %c0_28 = arith.constant 0 : index
    %36 = vector.load %arg2[%c4_26, %c0_27, %c0_28] : memref<7x1x8xf32, #tpu.memory_space<vmem>>, vector<1x1x8xf32>
    %37 = vector.shape_cast %36 : vector<1x1x8xf32> to vector<1x8xf32>
    %38 = vector.broadcast %35 : vector<64x1xf32> to vector<64x8xf32>
    %39 = vector.broadcast %37 : vector<1x8xf32> to vector<64x8xf32>
    %40 = arith.mulf %38, %39 : vector<64x8xf32>
    %41 = arith.addf %34, %40 : vector<64x8xf32>
    %c5 = arith.constant 5 : index
    %c0_29 = arith.constant 0 : index
    %42 = tpu.strided_load %arg10[%c5, %c0_29] {strides = array<i32: 2, 1>} : memref<136x32xf32, #tpu.memory_space<vmem>>, vector<64x1xf32>
    %c5_30 = arith.constant 5 : index
    %c0_31 = arith.constant 0 : index
    %c0_32 = arith.constant 0 : index
    %43 = vector.load %arg2[%c5_30, %c0_31, %c0_32] : memref<7x1x8xf32, #tpu.memory_space<vmem>>, vector<1x1x8xf32>
    %44 = vector.shape_cast %43 : vector<1x1x8xf32> to vector<1x8xf32>
    %45 = vector.broadcast %42 : vector<64x1xf32> to vector<64x8xf32>
    %46 = vector.broadcast %44 : vector<1x8xf32> to vector<64x8xf32>
    %47 = arith.mulf %45, %46 : vector<64x8xf32>
    %48 = arith.addf %41, %47 : vector<64x8xf32>
    %c6 = arith.constant 6 : index
    %c0_33 = arith.constant 0 : index
    %49 = tpu.strided_load %arg10[%c6, %c0_33] {strides = array<i32: 2, 1>} : memref<136x32xf32, #tpu.memory_space<vmem>>, vector<64x1xf32>
    %c6_34 = arith.constant 6 : index
    %c0_35 = arith.constant 0 : index
    %c0_36 = arith.constant 0 : index
    %50 = vector.load %arg2[%c6_34, %c0_35, %c0_36] : memref<7x1x8xf32, #tpu.memory_space<vmem>>, vector<1x1x8xf32>
    %51 = vector.shape_cast %50 : vector<1x1x8xf32> to vector<1x8xf32>
    %52 = vector.broadcast %49 : vector<64x1xf32> to vector<64x8xf32>
    %53 = vector.broadcast %51 : vector<1x8xf32> to vector<64x8xf32>
    %54 = arith.mulf %52, %53 : vector<64x8xf32>
    %55 = arith.addf %48, %54 : vector<64x8xf32>
    %cst_37 = arith.constant 0.000000e+00 : f32
    %56 = vector.broadcast %cst_37 : f32 to vector<64x8xf32>
    %c1_38 = arith.constant 1 : index
    %c0_39 = arith.constant 0 : index
    %57 = tpu.strided_load %arg10[%c1_38, %c0_39] {strides = array<i32: 2, 1>} : memref<136x32xf32, #tpu.memory_space<vmem>>, vector<64x1xf32>
    %c0_40 = arith.constant 0 : index
    %c0_41 = arith.constant 0 : index
    %c0_42 = arith.constant 0 : index
    %58 = vector.load %arg2[%c0_40, %c0_41, %c0_42] : memref<7x1x8xf32, #tpu.memory_space<vmem>>, vector<1x1x8xf32>
    %59 = vector.shape_cast %58 : vector<1x1x8xf32> to vector<1x8xf32>
    %60 = vector.broadcast %57 : vector<64x1xf32> to vector<64x8xf32>
    %61 = vector.broadcast %59 : vector<1x8xf32> to vector<64x8xf32>
    %62 = arith.mulf %60, %61 : vector<64x8xf32>
    %63 = arith.addf %56, %62 : vector<64x8xf32>
    %c2_43 = arith.constant 2 : index
    %c0_44 = arith.constant 0 : index
    %64 = tpu.strided_load %arg10[%c2_43, %c0_44] {strides = array<i32: 2, 1>} : memref<136x32xf32, #tpu.memory_space<vmem>>, vector<64x1xf32>
    %c1_45 = arith.constant 1 : index
    %c0_46 = arith.constant 0 : index
    %c0_47 = arith.constant 0 : index
    %65 = vector.load %arg2[%c1_45, %c0_46, %c0_47] : memref<7x1x8xf32, #tpu.memory_space<vmem>>, vector<1x1x8xf32>
    %66 = vector.shape_cast %65 : vector<1x1x8xf32> to vector<1x8xf32>
    %67 = vector.broadcast %64 : vector<64x1xf32> to vector<64x8xf32>
    %68 = vector.broadcast %66 : vector<1x8xf32> to vector<64x8xf32>
    %69 = arith.mulf %67, %68 : vector<64x8xf32>
    %70 = arith.addf %63, %69 : vector<64x8xf32>
    %c3_48 = arith.constant 3 : index
    %c0_49 = arith.constant 0 : index
    %71 = tpu.strided_load %arg10[%c3_48, %c0_49] {strides = array<i32: 2, 1>} : memref<136x32xf32, #tpu.memory_space<vmem>>, vector<64x1xf32>
    %c2_50 = arith.constant 2 : index
    %c0_51 = arith.constant 0 : index
    %c0_52 = arith.constant 0 : index
    %72 = vector.load %arg2[%c2_50, %c0_51, %c0_52] : memref<7x1x8xf32, #tpu.memory_space<vmem>>, vector<1x1x8xf32>
    %73 = vector.shape_cast %72 : vector<1x1x8xf32> to vector<1x8xf32>
    %74 = vector.broadcast %71 : vector<64x1xf32> to vector<64x8xf32>
    %75 = vector.broadcast %73 : vector<1x8xf32> to vector<64x8xf32>
    %76 = arith.mulf %74, %75 : vector<64x8xf32>
    %77 = arith.addf %70, %76 : vector<64x8xf32>
    %c4_53 = arith.constant 4 : index
    %c0_54 = arith.constant 0 : index
    %78 = tpu.strided_load %arg10[%c4_53, %c0_54] {strides = array<i32: 2, 1>} : memref<136x32xf32, #tpu.memory_space<vmem>>, vector<64x1xf32>
    %c3_55 = arith.constant 3 : index
    %c0_56 = arith.constant 0 : index
    %c0_57 = arith.constant 0 : index
    %79 = vector.load %arg2[%c3_55, %c0_56, %c0_57] : memref<7x1x8xf32, #tpu.memory_space<vmem>>, vector<1x1x8xf32>
    %80 = vector.shape_cast %79 : vector<1x1x8xf32> to vector<1x8xf32>
    %81 = vector.broadcast %78 : vector<64x1xf32> to vector<64x8xf32>
    %82 = vector.broadcast %80 : vector<1x8xf32> to vector<64x8xf32>
    %83 = arith.mulf %81, %82 : vector<64x8xf32>
    %84 = arith.addf %77, %83 : vector<64x8xf32>
    %c5_58 = arith.constant 5 : index
    %c0_59 = arith.constant 0 : index
    %85 = tpu.strided_load %arg10[%c5_58, %c0_59] {strides = array<i32: 2, 1>} : memref<136x32xf32, #tpu.memory_space<vmem>>, vector<64x1xf32>
    %c4_60 = arith.constant 4 : index
    %c0_61 = arith.constant 0 : index
    %c0_62 = arith.constant 0 : index
    %86 = vector.load %arg2[%c4_60, %c0_61, %c0_62] : memref<7x1x8xf32, #tpu.memory_space<vmem>>, vector<1x1x8xf32>
    %87 = vector.shape_cast %86 : vector<1x1x8xf32> to vector<1x8xf32>
    %88 = vector.broadcast %85 : vector<64x1xf32> to vector<64x8xf32>
    %89 = vector.broadcast %87 : vector<1x8xf32> to vector<64x8xf32>
    %90 = arith.mulf %88, %89 : vector<64x8xf32>
    %91 = arith.addf %84, %90 : vector<64x8xf32>
    %c6_63 = arith.constant 6 : index
    %c0_64 = arith.constant 0 : index
    %92 = tpu.strided_load %arg10[%c6_63, %c0_64] {strides = array<i32: 2, 1>} : memref<136x32xf32, #tpu.memory_space<vmem>>, vector<64x1xf32>
    %c5_65 = arith.constant 5 : index
    %c0_66 = arith.constant 0 : index
    %c0_67 = arith.constant 0 : index
    %93 = vector.load %arg2[%c5_65, %c0_66, %c0_67] : memref<7x1x8xf32, #tpu.memory_space<vmem>>, vector<1x1x8xf32>
    %94 = vector.shape_cast %93 : vector<1x1x8xf32> to vector<1x8xf32>
    %95 = vector.broadcast %92 : vector<64x1xf32> to vector<64x8xf32>
    %96 = vector.broadcast %94 : vector<1x8xf32> to vector<64x8xf32>
    %97 = arith.mulf %95, %96 : vector<64x8xf32>
    %98 = arith.addf %91, %97 : vector<64x8xf32>
    %c7 = arith.constant 7 : index
    %c0_68 = arith.constant 0 : index
    %99 = tpu.strided_load %arg10[%c7, %c0_68] {strides = array<i32: 2, 1>} : memref<136x32xf32, #tpu.memory_space<vmem>>, vector<64x1xf32>
    %c6_69 = arith.constant 6 : index
    %c0_70 = arith.constant 0 : index
    %c0_71 = arith.constant 0 : index
    %100 = vector.load %arg2[%c6_69, %c0_70, %c0_71] : memref<7x1x8xf32, #tpu.memory_space<vmem>>, vector<1x1x8xf32>
    %101 = vector.shape_cast %100 : vector<1x1x8xf32> to vector<1x8xf32>
    %102 = vector.broadcast %99 : vector<64x1xf32> to vector<64x8xf32>
    %103 = vector.broadcast %101 : vector<1x8xf32> to vector<64x8xf32>
    %104 = arith.mulf %102, %103 : vector<64x8xf32>
    %105 = arith.addf %98, %104 : vector<64x8xf32>
    %106 = arith.maximumf %55, %105 : vector<64x8xf32>
    %c0_72 = arith.constant 0 : index
    %c0_73 = arith.constant 0 : index
    %107 = vector.load %arg8[%c0_72, %c0_73] : memref<8x32xf32, #tpu.memory_space<vmem>>, vector<1x8xf32>
    %108 = vector.broadcast %107 : vector<1x8xf32> to vector<64x8xf32>
    %109 = arith.cmpf oge, %106, %108 : vector<64x8xf32>
    %cst_74 = arith.constant 1.000000e+00 : f32
    %cst_75 = arith.constant -1.000000e+00 : f32
    %110 = vector.broadcast %cst_74 : f32 to vector<64x8xf32>
    %111 = vector.broadcast %cst_75 : f32 to vector<64x8xf32>
    %112 = arith.select %109, %110, %111 : vector<64x8xi1>, vector<64x8xf32>
    %cst_76 = arith.constant 0.000000e+00 : f32
    %113 = vector.broadcast %cst_76 : f32 to vector<2x8xf32>
    %c0_77 = arith.constant 0 : index
    %c0_78 = arith.constant 0 : index
    %114 = vector.load %arg10[%c0_77, %c0_78] : memref<136x32xf32, #tpu.memory_space<vmem>>, vector<2x8xf32>
    tpu.vector_store %arg10[%c0_77, %c0_78], %113 {strides = array<i32>} : memref<136x32xf32, #tpu.memory_space<vmem>>, vector<2x8xf32>,
    %c66 = arith.constant 66 : index
    %c0_79 = arith.constant 0 : index
    %115 = vector.load %arg10[%c66, %c0_79] : memref<136x32xf32, #tpu.memory_space<vmem>>, vector<2x8xf32>
    tpu.vector_store %arg10[%c66, %c0_79], %113 {strides = array<i32>} : memref<136x32xf32, #tpu.memory_space<vmem>>, vector<2x8xf32>,
    %c2_80 = arith.constant 2 : index
    %c0_81 = arith.constant 0 : index
    %116 = vector.load %arg10[%c2_80, %c0_81] : memref<136x32xf32, #tpu.memory_space<vmem>>, vector<64x8xf32>
    tpu.vector_store %arg10[%c2_80, %c0_81], %112 {strides = array<i32>} : memref<136x32xf32, #tpu.memory_space<vmem>>, vector<64x8xf32>,
    %cst_82 = arith.constant 0.000000e+00 : f32
    %117 = vector.broadcast %cst_82 : f32 to vector<32x16xf32>
    %c0_83 = arith.constant 0 : index
    %c0_84 = arith.constant 0 : index
    %118 = tpu.strided_load %arg10[%c0_83, %c0_84] {strides = array<i32: 2, 1>} : memref<136x32xf32, #tpu.memory_space<vmem>>, vector<32x8xf32>
    %c0_85 = arith.constant 0 : index
    %c0_86 = arith.constant 0 : index
    %c0_87 = arith.constant 0 : index
    %119 = vector.load %arg3[%c0_85, %c0_86, %c0_87] : memref<5x8x16xf32, #tpu.memory_space<vmem>>, vector<1x8x16xf32>
    %120 = vector.shape_cast %119 : vector<1x8x16xf32> to vector<8x16xf32>
    %cst_88 = arith.constant dense<0.000000e+00> : vector<32x16xf32>
    %121 = tpu.matmul %118, %120, %cst_88 {dimension_numbers = #tpu.dot_dimension_numbers<[1], [0], [0], [1], [0, 0, 1, 1], [], []>} : vector<32x8xf32>, vector<8x16xf32>, vector<32x16xf32> -> vector<32x16xf32>
    %122 = arith.addf %117, %121 : vector<32x16xf32>
    %c1_89 = arith.constant 1 : index
    %c0_90 = arith.constant 0 : index
    %123 = tpu.strided_load %arg10[%c1_89, %c0_90] {strides = array<i32: 2, 1>} : memref<136x32xf32, #tpu.memory_space<vmem>>, vector<32x8xf32>
    %c1_91 = arith.constant 1 : index
    %c0_92 = arith.constant 0 : index
    %c0_93 = arith.constant 0 : index
    %124 = vector.load %arg3[%c1_91, %c0_92, %c0_93] : memref<5x8x16xf32, #tpu.memory_space<vmem>>, vector<1x8x16xf32>
    %125 = vector.shape_cast %124 : vector<1x8x16xf32> to vector<8x16xf32>
    %cst_94 = arith.constant dense<0.000000e+00> : vector<32x16xf32>
    %126 = tpu.matmul %123, %125, %cst_94 {dimension_numbers = #tpu.dot_dimension_numbers<[1], [0], [0], [1], [0, 0, 1, 1], [], []>} : vector<32x8xf32>, vector<8x16xf32>, vector<32x16xf32> -> vector<32x16xf32>
    %127 = arith.addf %122, %126 : vector<32x16xf32>
    %c2_95 = arith.constant 2 : index
    %c0_96 = arith.constant 0 : index
    %128 = tpu.strided_load %arg10[%c2_95, %c0_96] {strides = array<i32: 2, 1>} : memref<136x32xf32, #tpu.memory_space<vmem>>, vector<32x8xf32>
    %c2_97 = arith.constant 2 : index
    %c0_98 = arith.constant 0 : index
    %c0_99 = arith.constant 0 : index
    %129 = vector.load %arg3[%c2_97, %c0_98, %c0_99] : memref<5x8x16xf32, #tpu.memory_space<vmem>>, vector<1x8x16xf32>
    %130 = vector.shape_cast %129 : vector<1x8x16xf32> to vector<8x16xf32>
    %cst_100 = arith.constant dense<0.000000e+00> : vector<32x16xf32>
    %131 = tpu.matmul %128, %130, %cst_100 {dimension_numbers = #tpu.dot_dimension_numbers<[1], [0], [0], [1], [0, 0, 1, 1], [], []>} : vector<32x8xf32>, vector<8x16xf32>, vector<32x16xf32> -> vector<32x16xf32>
    %132 = arith.addf %127, %131 : vector<32x16xf32>
    %c3_101 = arith.constant 3 : index
    %c0_102 = arith.constant 0 : index
    %133 = tpu.strided_load %arg10[%c3_101, %c0_102] {strides = array<i32: 2, 1>} : memref<136x32xf32, #tpu.memory_space<vmem>>, vector<32x8xf32>
    %c3_103 = arith.constant 3 : index
    %c0_104 = arith.constant 0 : index
    %c0_105 = arith.constant 0 : index
    %134 = vector.load %arg3[%c3_103, %c0_104, %c0_105] : memref<5x8x16xf32, #tpu.memory_space<vmem>>, vector<1x8x16xf32>
    %135 = vector.shape_cast %134 : vector<1x8x16xf32> to vector<8x16xf32>
    %cst_106 = arith.constant dense<0.000000e+00> : vector<32x16xf32>
    %136 = tpu.matmul %133, %135, %cst_106 {dimension_numbers = #tpu.dot_dimension_numbers<[1], [0], [0], [1], [0, 0, 1, 1], [], []>} : vector<32x8xf32>, vector<8x16xf32>, vector<32x16xf32> -> vector<32x16xf32>
    %137 = arith.addf %132, %136 : vector<32x16xf32>
    %c4_107 = arith.constant 4 : index
    %c0_108 = arith.constant 0 : index
    %138 = tpu.strided_load %arg10[%c4_107, %c0_108] {strides = array<i32: 2, 1>} : memref<136x32xf32, #tpu.memory_space<vmem>>, vector<32x8xf32>
    %c4_109 = arith.constant 4 : index
    %c0_110 = arith.constant 0 : index
    %c0_111 = arith.constant 0 : index
    %139 = vector.load %arg3[%c4_109, %c0_110, %c0_111] : memref<5x8x16xf32, #tpu.memory_space<vmem>>, vector<1x8x16xf32>
    %140 = vector.shape_cast %139 : vector<1x8x16xf32> to vector<8x16xf32>
    %cst_112 = arith.constant dense<0.000000e+00> : vector<32x16xf32>
    %141 = tpu.matmul %138, %140, %cst_112 {dimension_numbers = #tpu.dot_dimension_numbers<[1], [0], [0], [1], [0, 0, 1, 1], [], []>} : vector<32x8xf32>, vector<8x16xf32>, vector<32x16xf32> -> vector<32x16xf32>
    %142 = arith.addf %137, %141 : vector<32x16xf32>
    %cst_113 = arith.constant 0.000000e+00 : f32
    %143 = vector.broadcast %cst_113 : f32 to vector<32x16xf32>
    %c1_114 = arith.constant 1 : index
    %c0_115 = arith.constant 0 : index
    %144 = tpu.strided_load %arg10[%c1_114, %c0_115] {strides = array<i32: 2, 1>} : memref<136x32xf32, #tpu.memory_space<vmem>>, vector<32x8xf32>
    %c0_116 = arith.constant 0 : index
    %c0_117 = arith.constant 0 : index
    %c0_118 = arith.constant 0 : index
    %145 = vector.load %arg3[%c0_116, %c0_117, %c0_118] : memref<5x8x16xf32, #tpu.memory_space<vmem>>, vector<1x8x16xf32>
    %146 = vector.shape_cast %145 : vector<1x8x16xf32> to vector<8x16xf32>
    %cst_119 = arith.constant dense<0.000000e+00> : vector<32x16xf32>
    %147 = tpu.matmul %144, %146, %cst_119 {dimension_numbers = #tpu.dot_dimension_numbers<[1], [0], [0], [1], [0, 0, 1, 1], [], []>} : vector<32x8xf32>, vector<8x16xf32>, vector<32x16xf32> -> vector<32x16xf32>
    %148 = arith.addf %143, %147 : vector<32x16xf32>
    %c2_120 = arith.constant 2 : index
    %c0_121 = arith.constant 0 : index
    %149 = tpu.strided_load %arg10[%c2_120, %c0_121] {strides = array<i32: 2, 1>} : memref<136x32xf32, #tpu.memory_space<vmem>>, vector<32x8xf32>
    %c1_122 = arith.constant 1 : index
    %c0_123 = arith.constant 0 : index
    %c0_124 = arith.constant 0 : index
    %150 = vector.load %arg3[%c1_122, %c0_123, %c0_124] : memref<5x8x16xf32, #tpu.memory_space<vmem>>, vector<1x8x16xf32>
    %151 = vector.shape_cast %150 : vector<1x8x16xf32> to vector<8x16xf32>
    %cst_125 = arith.constant dense<0.000000e+00> : vector<32x16xf32>
    %152 = tpu.matmul %149, %151, %cst_125 {dimension_numbers = #tpu.dot_dimension_numbers<[1], [0], [0], [1], [0, 0, 1, 1], [], []>} : vector<32x8xf32>, vector<8x16xf32>, vector<32x16xf32> -> vector<32x16xf32>
    %153 = arith.addf %148, %152 : vector<32x16xf32>
    %c3_126 = arith.constant 3 : index
    %c0_127 = arith.constant 0 : index
    %154 = tpu.strided_load %arg10[%c3_126, %c0_127] {strides = array<i32: 2, 1>} : memref<136x32xf32, #tpu.memory_space<vmem>>, vector<32x8xf32>
    %c2_128 = arith.constant 2 : index
    %c0_129 = arith.constant 0 : index
    %c0_130 = arith.constant 0 : index
    %155 = vector.load %arg3[%c2_128, %c0_129, %c0_130] : memref<5x8x16xf32, #tpu.memory_space<vmem>>, vector<1x8x16xf32>
    %156 = vector.shape_cast %155 : vector<1x8x16xf32> to vector<8x16xf32>
    %cst_131 = arith.constant dense<0.000000e+00> : vector<32x16xf32>
    %157 = tpu.matmul %154, %156, %cst_131 {dimension_numbers = #tpu.dot_dimension_numbers<[1], [0], [0], [1], [0, 0, 1, 1], [], []>} : vector<32x8xf32>, vector<8x16xf32>, vector<32x16xf32> -> vector<32x16xf32>
    %158 = arith.addf %153, %157 : vector<32x16xf32>
    %c4_132 = arith.constant 4 : index
    %c0_133 = arith.constant 0 : index
    %159 = tpu.strided_load %arg10[%c4_132, %c0_133] {strides = array<i32: 2, 1>} : memref<136x32xf32, #tpu.memory_space<vmem>>, vector<32x8xf32>
    %c3_134 = arith.constant 3 : index
    %c0_135 = arith.constant 0 : index
    %c0_136 = arith.constant 0 : index
    %160 = vector.load %arg3[%c3_134, %c0_135, %c0_136] : memref<5x8x16xf32, #tpu.memory_space<vmem>>, vector<1x8x16xf32>
    %161 = vector.shape_cast %160 : vector<1x8x16xf32> to vector<8x16xf32>
    %cst_137 = arith.constant dense<0.000000e+00> : vector<32x16xf32>
    %162 = tpu.matmul %159, %161, %cst_137 {dimension_numbers = #tpu.dot_dimension_numbers<[1], [0], [0], [1], [0, 0, 1, 1], [], []>} : vector<32x8xf32>, vector<8x16xf32>, vector<32x16xf32> -> vector<32x16xf32>
    %163 = arith.addf %158, %162 : vector<32x16xf32>
    %c5_138 = arith.constant 5 : index
    %c0_139 = arith.constant 0 : index
    %164 = tpu.strided_load %arg10[%c5_138, %c0_139] {strides = array<i32: 2, 1>} : memref<136x32xf32, #tpu.memory_space<vmem>>, vector<32x8xf32>
    %c4_140 = arith.constant 4 : index
    %c0_141 = arith.constant 0 : index
    %c0_142 = arith.constant 0 : index
    %165 = vector.load %arg3[%c4_140, %c0_141, %c0_142] : memref<5x8x16xf32, #tpu.memory_space<vmem>>, vector<1x8x16xf32>
    %166 = vector.shape_cast %165 : vector<1x8x16xf32> to vector<8x16xf32>
    %cst_143 = arith.constant dense<0.000000e+00> : vector<32x16xf32>
    %167 = tpu.matmul %164, %166, %cst_143 {dimension_numbers = #tpu.dot_dimension_numbers<[1], [0], [0], [1], [0, 0, 1, 1], [], []>} : vector<32x8xf32>, vector<8x16xf32>, vector<32x16xf32> -> vector<32x16xf32>
    %168 = arith.addf %163, %167 : vector<32x16xf32>
    %169 = arith.maximumf %142, %168 : vector<32x16xf32>
    %c1_144 = arith.constant 1 : index
    %c0_145 = arith.constant 0 : index
    %170 = vector.load %arg8[%c1_144, %c0_145] : memref<8x32xf32, #tpu.memory_space<vmem>>, vector<1x16xf32>
    %171 = vector.broadcast %170 : vector<1x16xf32> to vector<32x16xf32>
    %172 = arith.cmpf oge, %169, %171 : vector<32x16xf32>
    %cst_146 = arith.constant 1.000000e+00 : f32
    %cst_147 = arith.constant -1.000000e+00 : f32
    %173 = vector.broadcast %cst_146 : f32 to vector<32x16xf32>
    %174 = vector.broadcast %cst_147 : f32 to vector<32x16xf32>
    %175 = arith.select %172, %173, %174 : vector<32x16xi1>, vector<32x16xf32>
    %cst_148 = arith.constant 0.000000e+00 : f32
    %176 = vector.broadcast %cst_148 : f32 to vector<2x16xf32>
    %c0_149 = arith.constant 0 : index
    %c0_150 = arith.constant 0 : index
    %177 = vector.load %arg10[%c0_149, %c0_150] : memref<136x32xf32, #tpu.memory_space<vmem>>, vector<2x16xf32>
    tpu.vector_store %arg10[%c0_149, %c0_150], %176 {strides = array<i32>} : memref<136x32xf32, #tpu.memory_space<vmem>>, vector<2x16xf32>,
    %c34 = arith.constant 34 : index
    %c0_151 = arith.constant 0 : index
    %178 = vector.load %arg10[%c34, %c0_151] : memref<136x32xf32, #tpu.memory_space<vmem>>, vector<2x16xf32>
    tpu.vector_store %arg10[%c34, %c0_151], %176 {strides = array<i32>} : memref<136x32xf32, #tpu.memory_space<vmem>>, vector<2x16xf32>,
    %c2_152 = arith.constant 2 : index
    %c0_153 = arith.constant 0 : index
    %179 = vector.load %arg10[%c2_152, %c0_153] : memref<136x32xf32, #tpu.memory_space<vmem>>, vector<32x16xf32>
    tpu.vector_store %arg10[%c2_152, %c0_153], %175 {strides = array<i32>} : memref<136x32xf32, #tpu.memory_space<vmem>>, vector<32x16xf32>,
    %cst_154 = arith.constant 0.000000e+00 : f32
    %180 = vector.broadcast %cst_154 : f32 to vector<16x16xf32>
    %c0_155 = arith.constant 0 : index
    %c0_156 = arith.constant 0 : index
    %181 = tpu.strided_load %arg10[%c0_155, %c0_156] {strides = array<i32: 2, 1>} : memref<136x32xf32, #tpu.memory_space<vmem>>, vector<16x16xf32>
    %c0_157 = arith.constant 0 : index
    %c0_158 = arith.constant 0 : index
    %c0_159 = arith.constant 0 : index
    %182 = vector.load %arg4[%c0_157, %c0_158, %c0_159] : memref<5x16x16xf32, #tpu.memory_space<vmem>>, vector<1x16x16xf32>
    %183 = vector.shape_cast %182 : vector<1x16x16xf32> to vector<16x16xf32>
    %cst_160 = arith.constant dense<0.000000e+00> : vector<16x16xf32>
    %184 = tpu.matmul %181, %183, %cst_160 {dimension_numbers = #tpu.dot_dimension_numbers<[1], [0], [0], [1], [0, 0, 1, 1], [], []>} : vector<16x16xf32>, vector<16x16xf32>, vector<16x16xf32> -> vector<16x16xf32>
    %185 = arith.addf %180, %184 : vector<16x16xf32>
    %c1_161 = arith.constant 1 : index
    %c0_162 = arith.constant 0 : index
    %186 = tpu.strided_load %arg10[%c1_161, %c0_162] {strides = array<i32: 2, 1>} : memref<136x32xf32, #tpu.memory_space<vmem>>, vector<16x16xf32>
    %c1_163 = arith.constant 1 : index
    %c0_164 = arith.constant 0 : index
    %c0_165 = arith.constant 0 : index
    %187 = vector.load %arg4[%c1_163, %c0_164, %c0_165] : memref<5x16x16xf32, #tpu.memory_space<vmem>>, vector<1x16x16xf32>
    %188 = vector.shape_cast %187 : vector<1x16x16xf32> to vector<16x16xf32>
    %cst_166 = arith.constant dense<0.000000e+00> : vector<16x16xf32>
    %189 = tpu.matmul %186, %188, %cst_166 {dimension_numbers = #tpu.dot_dimension_numbers<[1], [0], [0], [1], [0, 0, 1, 1], [], []>} : vector<16x16xf32>, vector<16x16xf32>, vector<16x16xf32> -> vector<16x16xf32>
    %190 = arith.addf %185, %189 : vector<16x16xf32>
    %c2_167 = arith.constant 2 : index
    %c0_168 = arith.constant 0 : index
    %191 = tpu.strided_load %arg10[%c2_167, %c0_168] {strides = array<i32: 2, 1>} : memref<136x32xf32, #tpu.memory_space<vmem>>, vector<16x16xf32>
    %c2_169 = arith.constant 2 : index
    %c0_170 = arith.constant 0 : index
    %c0_171 = arith.constant 0 : index
    %192 = vector.load %arg4[%c2_169, %c0_170, %c0_171] : memref<5x16x16xf32, #tpu.memory_space<vmem>>, vector<1x16x16xf32>
    %193 = vector.shape_cast %192 : vector<1x16x16xf32> to vector<16x16xf32>
    %cst_172 = arith.constant dense<0.000000e+00> : vector<16x16xf32>
    %194 = tpu.matmul %191, %193, %cst_172 {dimension_numbers = #tpu.dot_dimension_numbers<[1], [0], [0], [1], [0, 0, 1, 1], [], []>} : vector<16x16xf32>, vector<16x16xf32>, vector<16x16xf32> -> vector<16x16xf32>
    %195 = arith.addf %190, %194 : vector<16x16xf32>
    %c3_173 = arith.constant 3 : index
    %c0_174 = arith.constant 0 : index
    %196 = tpu.strided_load %arg10[%c3_173, %c0_174] {strides = array<i32: 2, 1>} : memref<136x32xf32, #tpu.memory_space<vmem>>, vector<16x16xf32>
    %c3_175 = arith.constant 3 : index
    %c0_176 = arith.constant 0 : index
    %c0_177 = arith.constant 0 : index
    %197 = vector.load %arg4[%c3_175, %c0_176, %c0_177] : memref<5x16x16xf32, #tpu.memory_space<vmem>>, vector<1x16x16xf32>
    %198 = vector.shape_cast %197 : vector<1x16x16xf32> to vector<16x16xf32>
    %cst_178 = arith.constant dense<0.000000e+00> : vector<16x16xf32>
    %199 = tpu.matmul %196, %198, %cst_178 {dimension_numbers = #tpu.dot_dimension_numbers<[1], [0], [0], [1], [0, 0, 1, 1], [], []>} : vector<16x16xf32>, vector<16x16xf32>, vector<16x16xf32> -> vector<16x16xf32>
    %200 = arith.addf %195, %199 : vector<16x16xf32>
    %c4_179 = arith.constant 4 : index
    %c0_180 = arith.constant 0 : index
    %201 = tpu.strided_load %arg10[%c4_179, %c0_180] {strides = array<i32: 2, 1>} : memref<136x32xf32, #tpu.memory_space<vmem>>, vector<16x16xf32>
    %c4_181 = arith.constant 4 : index
    %c0_182 = arith.constant 0 : index
    %c0_183 = arith.constant 0 : index
    %202 = vector.load %arg4[%c4_181, %c0_182, %c0_183] : memref<5x16x16xf32, #tpu.memory_space<vmem>>, vector<1x16x16xf32>
    %203 = vector.shape_cast %202 : vector<1x16x16xf32> to vector<16x16xf32>
    %cst_184 = arith.constant dense<0.000000e+00> : vector<16x16xf32>
    %204 = tpu.matmul %201, %203, %cst_184 {dimension_numbers = #tpu.dot_dimension_numbers<[1], [0], [0], [1], [0, 0, 1, 1], [], []>} : vector<16x16xf32>, vector<16x16xf32>, vector<16x16xf32> -> vector<16x16xf32>
    %205 = arith.addf %200, %204 : vector<16x16xf32>
    %cst_185 = arith.constant 0.000000e+00 : f32
    %206 = vector.broadcast %cst_185 : f32 to vector<16x16xf32>
    %c1_186 = arith.constant 1 : index
    %c0_187 = arith.constant 0 : index
    %207 = tpu.strided_load %arg10[%c1_186, %c0_187] {strides = array<i32: 2, 1>} : memref<136x32xf32, #tpu.memory_space<vmem>>, vector<16x16xf32>
    %c0_188 = arith.constant 0 : index
    %c0_189 = arith.constant 0 : index
    %c0_190 = arith.constant 0 : index
    %208 = vector.load %arg4[%c0_188, %c0_189, %c0_190] : memref<5x16x16xf32, #tpu.memory_space<vmem>>, vector<1x16x16xf32>
    %209 = vector.shape_cast %208 : vector<1x16x16xf32> to vector<16x16xf32>
    %cst_191 = arith.constant dense<0.000000e+00> : vector<16x16xf32>
    %210 = tpu.matmul %207, %209, %cst_191 {dimension_numbers = #tpu.dot_dimension_numbers<[1], [0], [0], [1], [0, 0, 1, 1], [], []>} : vector<16x16xf32>, vector<16x16xf32>, vector<16x16xf32> -> vector<16x16xf32>
    %211 = arith.addf %206, %210 : vector<16x16xf32>
    %c2_192 = arith.constant 2 : index
    %c0_193 = arith.constant 0 : index
    %212 = tpu.strided_load %arg10[%c2_192, %c0_193] {strides = array<i32: 2, 1>} : memref<136x32xf32, #tpu.memory_space<vmem>>, vector<16x16xf32>
    %c1_194 = arith.constant 1 : index
    %c0_195 = arith.constant 0 : index
    %c0_196 = arith.constant 0 : index
    %213 = vector.load %arg4[%c1_194, %c0_195, %c0_196] : memref<5x16x16xf32, #tpu.memory_space<vmem>>, vector<1x16x16xf32>
    %214 = vector.shape_cast %213 : vector<1x16x16xf32> to vector<16x16xf32>
    %cst_197 = arith.constant dense<0.000000e+00> : vector<16x16xf32>
    %215 = tpu.matmul %212, %214, %cst_197 {dimension_numbers = #tpu.dot_dimension_numbers<[1], [0], [0], [1], [0, 0, 1, 1], [], []>} : vector<16x16xf32>, vector<16x16xf32>, vector<16x16xf32> -> vector<16x16xf32>
    %216 = arith.addf %211, %215 : vector<16x16xf32>
    %c3_198 = arith.constant 3 : index
    %c0_199 = arith.constant 0 : index
    %217 = tpu.strided_load %arg10[%c3_198, %c0_199] {strides = array<i32: 2, 1>} : memref<136x32xf32, #tpu.memory_space<vmem>>, vector<16x16xf32>
    %c2_200 = arith.constant 2 : index
    %c0_201 = arith.constant 0 : index
    %c0_202 = arith.constant 0 : index
    %218 = vector.load %arg4[%c2_200, %c0_201, %c0_202] : memref<5x16x16xf32, #tpu.memory_space<vmem>>, vector<1x16x16xf32>
    %219 = vector.shape_cast %218 : vector<1x16x16xf32> to vector<16x16xf32>
    %cst_203 = arith.constant dense<0.000000e+00> : vector<16x16xf32>
    %220 = tpu.matmul %217, %219, %cst_203 {dimension_numbers = #tpu.dot_dimension_numbers<[1], [0], [0], [1], [0, 0, 1, 1], [], []>} : vector<16x16xf32>, vector<16x16xf32>, vector<16x16xf32> -> vector<16x16xf32>
    %221 = arith.addf %216, %220 : vector<16x16xf32>
    %c4_204 = arith.constant 4 : index
    %c0_205 = arith.constant 0 : index
    %222 = tpu.strided_load %arg10[%c4_204, %c0_205] {strides = array<i32: 2, 1>} : memref<136x32xf32, #tpu.memory_space<vmem>>, vector<16x16xf32>
    %c3_206 = arith.constant 3 : index
    %c0_207 = arith.constant 0 : index
    %c0_208 = arith.constant 0 : index
    %223 = vector.load %arg4[%c3_206, %c0_207, %c0_208] : memref<5x16x16xf32, #tpu.memory_space<vmem>>, vector<1x16x16xf32>
    %224 = vector.shape_cast %223 : vector<1x16x16xf32> to vector<16x16xf32>
    %cst_209 = arith.constant dense<0.000000e+00> : vector<16x16xf32>
    %225 = tpu.matmul %222, %224, %cst_209 {dimension_numbers = #tpu.dot_dimension_numbers<[1], [0], [0], [1], [0, 0, 1, 1], [], []>} : vector<16x16xf32>, vector<16x16xf32>, vector<16x16xf32> -> vector<16x16xf32>
    %226 = arith.addf %221, %225 : vector<16x16xf32>
    %c5_210 = arith.constant 5 : index
    %c0_211 = arith.constant 0 : index
    %227 = tpu.strided_load %arg10[%c5_210, %c0_211] {strides = array<i32: 2, 1>} : memref<136x32xf32, #tpu.memory_space<vmem>>, vector<16x16xf32>
    %c4_212 = arith.constant 4 : index
    %c0_213 = arith.constant 0 : index
    %c0_214 = arith.constant 0 : index
    %228 = vector.load %arg4[%c4_212, %c0_213, %c0_214] : memref<5x16x16xf32, #tpu.memory_space<vmem>>, vector<1x16x16xf32>
    %229 = vector.shape_cast %228 : vector<1x16x16xf32> to vector<16x16xf32>
    %cst_215 = arith.constant dense<0.000000e+00> : vector<16x16xf32>
    %230 = tpu.matmul %227, %229, %cst_215 {dimension_numbers = #tpu.dot_dimension_numbers<[1], [0], [0], [1], [0, 0, 1, 1], [], []>} : vector<16x16xf32>, vector<16x16xf32>, vector<16x16xf32> -> vector<16x16xf32>
    %231 = arith.addf %226, %230 : vector<16x16xf32>
    %232 = arith.maximumf %205, %231 : vector<16x16xf32>
    %c2_216 = arith.constant 2 : index
    %c0_217 = arith.constant 0 : index
    %233 = vector.load %arg8[%c2_216, %c0_217] : memref<8x32xf32, #tpu.memory_space<vmem>>, vector<1x16xf32>
    %234 = vector.broadcast %233 : vector<1x16xf32> to vector<16x16xf32>
    %235 = arith.cmpf oge, %232, %234 : vector<16x16xf32>
    %cst_218 = arith.constant 1.000000e+00 : f32
    %cst_219 = arith.constant -1.000000e+00 : f32
    %236 = vector.broadcast %cst_218 : f32 to vector<16x16xf32>
    %237 = vector.broadcast %cst_219 : f32 to vector<16x16xf32>
    %238 = arith.select %235, %236, %237 : vector<16x16xi1>, vector<16x16xf32>
    %cst_220 = arith.constant 0.000000e+00 : f32
    %239 = vector.broadcast %cst_220 : f32 to vector<1x16xf32>
    %c0_221 = arith.constant 0 : index
    %c0_222 = arith.constant 0 : index
    %240 = vector.load %arg10[%c0_221, %c0_222] : memref<136x32xf32, #tpu.memory_space<vmem>>, vector<1x16xf32>
    tpu.vector_store %arg10[%c0_221, %c0_222], %239 {strides = array<i32>} : memref<136x32xf32, #tpu.memory_space<vmem>>, vector<1x16xf32>,
    %c17 = arith.constant 17 : index
    %c0_223 = arith.constant 0 : index
    %241 = vector.load %arg10[%c17, %c0_223] : memref<136x32xf32, #tpu.memory_space<vmem>>, vector<1x16xf32>
    tpu.vector_store %arg10[%c17, %c0_223], %239 {strides = array<i32>} : memref<136x32xf32, #tpu.memory_space<vmem>>, vector<1x16xf32>,
    %c1_224 = arith.constant 1 : index
    %c0_225 = arith.constant 0 : index
    %242 = vector.load %arg10[%c1_224, %c0_225] : memref<136x32xf32, #tpu.memory_space<vmem>>, vector<16x16xf32>
    tpu.vector_store %arg10[%c1_224, %c0_225], %238 {strides = array<i32>} : memref<136x32xf32, #tpu.memory_space<vmem>>, vector<16x16xf32>,
    %cst_226 = arith.constant 0.000000e+00 : f32
    %243 = vector.broadcast %cst_226 : f32 to vector<8x32xf32>
    %c0_227 = arith.constant 0 : index
    %c0_228 = arith.constant 0 : index
    %244 = tpu.strided_load %arg10[%c0_227, %c0_228] {strides = array<i32: 2, 1>} : memref<136x32xf32, #tpu.memory_space<vmem>>, vector<8x16xf32>
    %c0_229 = arith.constant 0 : index
    %c0_230 = arith.constant 0 : index
    %c0_231 = arith.constant 0 : index
    %245 = vector.load %arg5[%c0_229, %c0_230, %c0_231] : memref<3x16x32xf32, #tpu.memory_space<vmem>>, vector<1x16x32xf32>
    %246 = vector.shape_cast %245 : vector<1x16x32xf32> to vector<16x32xf32>
    %cst_232 = arith.constant dense<0.000000e+00> : vector<8x32xf32>
    %247 = tpu.matmul %244, %246, %cst_232 {dimension_numbers = #tpu.dot_dimension_numbers<[1], [0], [0], [1], [0, 0, 1, 1], [], []>} : vector<8x16xf32>, vector<16x32xf32>, vector<8x32xf32> -> vector<8x32xf32>
    %248 = arith.addf %243, %247 : vector<8x32xf32>
    %c1_233 = arith.constant 1 : index
    %c0_234 = arith.constant 0 : index
    %249 = tpu.strided_load %arg10[%c1_233, %c0_234] {strides = array<i32: 2, 1>} : memref<136x32xf32, #tpu.memory_space<vmem>>, vector<8x16xf32>
    %c1_235 = arith.constant 1 : index
    %c0_236 = arith.constant 0 : index
    %c0_237 = arith.constant 0 : index
    %250 = vector.load %arg5[%c1_235, %c0_236, %c0_237] : memref<3x16x32xf32, #tpu.memory_space<vmem>>, vector<1x16x32xf32>
    %251 = vector.shape_cast %250 : vector<1x16x32xf32> to vector<16x32xf32>
    %cst_238 = arith.constant dense<0.000000e+00> : vector<8x32xf32>
    %252 = tpu.matmul %249, %251, %cst_238 {dimension_numbers = #tpu.dot_dimension_numbers<[1], [0], [0], [1], [0, 0, 1, 1], [], []>} : vector<8x16xf32>, vector<16x32xf32>, vector<8x32xf32> -> vector<8x32xf32>
    %253 = arith.addf %248, %252 : vector<8x32xf32>
    %c2_239 = arith.constant 2 : index
    %c0_240 = arith.constant 0 : index
    %254 = tpu.strided_load %arg10[%c2_239, %c0_240] {strides = array<i32: 2, 1>} : memref<136x32xf32, #tpu.memory_space<vmem>>, vector<8x16xf32>
    %c2_241 = arith.constant 2 : index
    %c0_242 = arith.constant 0 : index
    %c0_243 = arith.constant 0 : index
    %255 = vector.load %arg5[%c2_241, %c0_242, %c0_243] : memref<3x16x32xf32, #tpu.memory_space<vmem>>, vector<1x16x32xf32>
    %256 = vector.shape_cast %255 : vector<1x16x32xf32> to vector<16x32xf32>
    %cst_244 = arith.constant dense<0.000000e+00> : vector<8x32xf32>
    %257 = tpu.matmul %254, %256, %cst_244 {dimension_numbers = #tpu.dot_dimension_numbers<[1], [0], [0], [1], [0, 0, 1, 1], [], []>} : vector<8x16xf32>, vector<16x32xf32>, vector<8x32xf32> -> vector<8x32xf32>
    %258 = arith.addf %253, %257 : vector<8x32xf32>
    %cst_245 = arith.constant 0.000000e+00 : f32
    %259 = vector.broadcast %cst_245 : f32 to vector<8x32xf32>
    %c1_246 = arith.constant 1 : index
    %c0_247 = arith.constant 0 : index
    %260 = tpu.strided_load %arg10[%c1_246, %c0_247] {strides = array<i32: 2, 1>} : memref<136x32xf32, #tpu.memory_space<vmem>>, vector<8x16xf32>
    %c0_248 = arith.constant 0 : index
    %c0_249 = arith.constant 0 : index
    %c0_250 = arith.constant 0 : index
    %261 = vector.load %arg5[%c0_248, %c0_249, %c0_250] : memref<3x16x32xf32, #tpu.memory_space<vmem>>, vector<1x16x32xf32>
    %262 = vector.shape_cast %261 : vector<1x16x32xf32> to vector<16x32xf32>
    %cst_251 = arith.constant dense<0.000000e+00> : vector<8x32xf32>
    %263 = tpu.matmul %260, %262, %cst_251 {dimension_numbers = #tpu.dot_dimension_numbers<[1], [0], [0], [1], [0, 0, 1, 1], [], []>} : vector<8x16xf32>, vector<16x32xf32>, vector<8x32xf32> -> vector<8x32xf32>
    %264 = arith.addf %259, %263 : vector<8x32xf32>
    %c2_252 = arith.constant 2 : index
    %c0_253 = arith.constant 0 : index
    %265 = tpu.strided_load %arg10[%c2_252, %c0_253] {strides = array<i32: 2, 1>} : memref<136x32xf32, #tpu.memory_space<vmem>>, vector<8x16xf32>
    %c1_254 = arith.constant 1 : index
    %c0_255 = arith.constant 0 : index
    %c0_256 = arith.constant 0 : index
    %266 = vector.load %arg5[%c1_254, %c0_255, %c0_256] : memref<3x16x32xf32, #tpu.memory_space<vmem>>, vector<1x16x32xf32>
    %267 = vector.shape_cast %266 : vector<1x16x32xf32> to vector<16x32xf32>
    %cst_257 = arith.constant dense<0.000000e+00> : vector<8x32xf32>
    %268 = tpu.matmul %265, %267, %cst_257 {dimension_numbers = #tpu.dot_dimension_numbers<[1], [0], [0], [1], [0, 0, 1, 1], [], []>} : vector<8x16xf32>, vector<16x32xf32>, vector<8x32xf32> -> vector<8x32xf32>
    %269 = arith.addf %264, %268 : vector<8x32xf32>
    %c3_258 = arith.constant 3 : index
    %c0_259 = arith.constant 0 : index
    %270 = tpu.strided_load %arg10[%c3_258, %c0_259] {strides = array<i32: 2, 1>} : memref<136x32xf32, #tpu.memory_space<vmem>>, vector<8x16xf32>
    %c2_260 = arith.constant 2 : index
    %c0_261 = arith.constant 0 : index
    %c0_262 = arith.constant 0 : index
    %271 = vector.load %arg5[%c2_260, %c0_261, %c0_262] : memref<3x16x32xf32, #tpu.memory_space<vmem>>, vector<1x16x32xf32>
    %272 = vector.shape_cast %271 : vector<1x16x32xf32> to vector<16x32xf32>
    %cst_263 = arith.constant dense<0.000000e+00> : vector<8x32xf32>
    %273 = tpu.matmul %270, %272, %cst_263 {dimension_numbers = #tpu.dot_dimension_numbers<[1], [0], [0], [1], [0, 0, 1, 1], [], []>} : vector<8x16xf32>, vector<16x32xf32>, vector<8x32xf32> -> vector<8x32xf32>
    %274 = arith.addf %269, %273 : vector<8x32xf32>
    %275 = arith.maximumf %258, %274 : vector<8x32xf32>
    %c3_264 = arith.constant 3 : index
    %c0_265 = arith.constant 0 : index
    %276 = vector.load %arg8[%c3_264, %c0_265] : memref<8x32xf32, #tpu.memory_space<vmem>>, vector<1x32xf32>
    %277 = vector.broadcast %276 : vector<1x32xf32> to vector<8x32xf32>
    %278 = arith.cmpf oge, %275, %277 : vector<8x32xf32>
    %cst_266 = arith.constant 1.000000e+00 : f32
    %cst_267 = arith.constant -1.000000e+00 : f32
    %279 = vector.broadcast %cst_266 : f32 to vector<8x32xf32>
    %280 = vector.broadcast %cst_267 : f32 to vector<8x32xf32>
    %281 = arith.select %278, %279, %280 : vector<8x32xi1>, vector<8x32xf32>
    %cst_268 = arith.constant 0.000000e+00 : f32
    %282 = vector.broadcast %cst_268 : f32 to vector<1x32xf32>
    %c0_269 = arith.constant 0 : index
    %c0_270 = arith.constant 0 : index
    %283 = vector.load %arg10[%c0_269, %c0_270] : memref<136x32xf32, #tpu.memory_space<vmem>>, vector<1x32xf32>
    tpu.vector_store %arg10[%c0_269, %c0_270], %282 {strides = array<i32>} : memref<136x32xf32, #tpu.memory_space<vmem>>, vector<1x32xf32>,
    %c9 = arith.constant 9 : index
    %c0_271 = arith.constant 0 : index
    %284 = vector.load %arg10[%c9, %c0_271] : memref<136x32xf32, #tpu.memory_space<vmem>>, vector<1x32xf32>
    tpu.vector_store %arg10[%c9, %c0_271], %282 {strides = array<i32>} : memref<136x32xf32, #tpu.memory_space<vmem>>, vector<1x32xf32>,
    %c1_272 = arith.constant 1 : index
    %c0_273 = arith.constant 0 : index
    %285 = vector.load %arg10[%c1_272, %c0_273] : memref<136x32xf32, #tpu.memory_space<vmem>>, vector<8x32xf32>
    tpu.vector_store %arg10[%c1_272, %c0_273], %281 {strides = array<i32>} : memref<136x32xf32, #tpu.memory_space<vmem>>, vector<8x32xf32>,
    %cst_274 = arith.constant 0.000000e+00 : f32
    %286 = vector.broadcast %cst_274 : f32 to vector<4x32xf32>
    %c0_275 = arith.constant 0 : index
    %c0_276 = arith.constant 0 : index
    %287 = tpu.strided_load %arg10[%c0_275, %c0_276] {strides = array<i32: 2, 1>} : memref<136x32xf32, #tpu.memory_space<vmem>>, vector<4x32xf32>
    %c0_277 = arith.constant 0 : index
    %c0_278 = arith.constant 0 : index
    %c0_279 = arith.constant 0 : index
    %288 = vector.load %arg6[%c0_277, %c0_278, %c0_279] : memref<3x32x32xf32, #tpu.memory_space<vmem>>, vector<1x32x32xf32>
    %289 = vector.shape_cast %288 : vector<1x32x32xf32> to vector<32x32xf32>
    %cst_280 = arith.constant dense<0.000000e+00> : vector<4x32xf32>
    %290 = tpu.matmul %287, %289, %cst_280 {dimension_numbers = #tpu.dot_dimension_numbers<[1], [0], [0], [1], [0, 0, 1, 1], [], []>} : vector<4x32xf32>, vector<32x32xf32>, vector<4x32xf32> -> vector<4x32xf32>
    %291 = arith.addf %286, %290 : vector<4x32xf32>
    %c1_281 = arith.constant 1 : index
    %c0_282 = arith.constant 0 : index
    %292 = tpu.strided_load %arg10[%c1_281, %c0_282] {strides = array<i32: 2, 1>} : memref<136x32xf32, #tpu.memory_space<vmem>>, vector<4x32xf32>
    %c1_283 = arith.constant 1 : index
    %c0_284 = arith.constant 0 : index
    %c0_285 = arith.constant 0 : index
    %293 = vector.load %arg6[%c1_283, %c0_284, %c0_285] : memref<3x32x32xf32, #tpu.memory_space<vmem>>, vector<1x32x32xf32>
    %294 = vector.shape_cast %293 : vector<1x32x32xf32> to vector<32x32xf32>
    %cst_286 = arith.constant dense<0.000000e+00> : vector<4x32xf32>
    %295 = tpu.matmul %292, %294, %cst_286 {dimension_numbers = #tpu.dot_dimension_numbers<[1], [0], [0], [1], [0, 0, 1, 1], [], []>} : vector<4x32xf32>, vector<32x32xf32>, vector<4x32xf32> -> vector<4x32xf32>
    %296 = arith.addf %291, %295 : vector<4x32xf32>
    %c2_287 = arith.constant 2 : index
    %c0_288 = arith.constant 0 : index
    %297 = tpu.strided_load %arg10[%c2_287, %c0_288] {strides = array<i32: 2, 1>} : memref<136x32xf32, #tpu.memory_space<vmem>>, vector<4x32xf32>
    %c2_289 = arith.constant 2 : index
    %c0_290 = arith.constant 0 : index
    %c0_291 = arith.constant 0 : index
    %298 = vector.load %arg6[%c2_289, %c0_290, %c0_291] : memref<3x32x32xf32, #tpu.memory_space<vmem>>, vector<1x32x32xf32>
    %299 = vector.shape_cast %298 : vector<1x32x32xf32> to vector<32x32xf32>
    %cst_292 = arith.constant dense<0.000000e+00> : vector<4x32xf32>
    %300 = tpu.matmul %297, %299, %cst_292 {dimension_numbers = #tpu.dot_dimension_numbers<[1], [0], [0], [1], [0, 0, 1, 1], [], []>} : vector<4x32xf32>, vector<32x32xf32>, vector<4x32xf32> -> vector<4x32xf32>
    %301 = arith.addf %296, %300 : vector<4x32xf32>
    %cst_293 = arith.constant 0.000000e+00 : f32
    %302 = vector.broadcast %cst_293 : f32 to vector<4x32xf32>
    %c1_294 = arith.constant 1 : index
    %c0_295 = arith.constant 0 : index
    %303 = tpu.strided_load %arg10[%c1_294, %c0_295] {strides = array<i32: 2, 1>} : memref<136x32xf32, #tpu.memory_space<vmem>>, vector<4x32xf32>
    %c0_296 = arith.constant 0 : index
    %c0_297 = arith.constant 0 : index
    %c0_298 = arith.constant 0 : index
    %304 = vector.load %arg6[%c0_296, %c0_297, %c0_298] : memref<3x32x32xf32, #tpu.memory_space<vmem>>, vector<1x32x32xf32>
    %305 = vector.shape_cast %304 : vector<1x32x32xf32> to vector<32x32xf32>
    %cst_299 = arith.constant dense<0.000000e+00> : vector<4x32xf32>
    %306 = tpu.matmul %303, %305, %cst_299 {dimension_numbers = #tpu.dot_dimension_numbers<[1], [0], [0], [1], [0, 0, 1, 1], [], []>} : vector<4x32xf32>, vector<32x32xf32>, vector<4x32xf32> -> vector<4x32xf32>
    %307 = arith.addf %302, %306 : vector<4x32xf32>
    %c2_300 = arith.constant 2 : index
    %c0_301 = arith.constant 0 : index
    %308 = tpu.strided_load %arg10[%c2_300, %c0_301] {strides = array<i32: 2, 1>} : memref<136x32xf32, #tpu.memory_space<vmem>>, vector<4x32xf32>
    %c1_302 = arith.constant 1 : index
    %c0_303 = arith.constant 0 : index
    %c0_304 = arith.constant 0 : index
    %309 = vector.load %arg6[%c1_302, %c0_303, %c0_304] : memref<3x32x32xf32, #tpu.memory_space<vmem>>, vector<1x32x32xf32>
    %310 = vector.shape_cast %309 : vector<1x32x32xf32> to vector<32x32xf32>
    %cst_305 = arith.constant dense<0.000000e+00> : vector<4x32xf32>
    %311 = tpu.matmul %308, %310, %cst_305 {dimension_numbers = #tpu.dot_dimension_numbers<[1], [0], [0], [1], [0, 0, 1, 1], [], []>} : vector<4x32xf32>, vector<32x32xf32>, vector<4x32xf32> -> vector<4x32xf32>
    %312 = arith.addf %307, %311 : vector<4x32xf32>
    %c3_306 = arith.constant 3 : index
    %c0_307 = arith.constant 0 : index
    %313 = tpu.strided_load %arg10[%c3_306, %c0_307] {strides = array<i32: 2, 1>} : memref<136x32xf32, #tpu.memory_space<vmem>>, vector<4x32xf32>
    %c2_308 = arith.constant 2 : index
    %c0_309 = arith.constant 0 : index
    %c0_310 = arith.constant 0 : index
    %314 = vector.load %arg6[%c2_308, %c0_309, %c0_310] : memref<3x32x32xf32, #tpu.memory_space<vmem>>, vector<1x32x32xf32>
    %315 = vector.shape_cast %314 : vector<1x32x32xf32> to vector<32x32xf32>
    %cst_311 = arith.constant dense<0.000000e+00> : vector<4x32xf32>
    %316 = tpu.matmul %313, %315, %cst_311 {dimension_numbers = #tpu.dot_dimension_numbers<[1], [0], [0], [1], [0, 0, 1, 1], [], []>} : vector<4x32xf32>, vector<32x32xf32>, vector<4x32xf32> -> vector<4x32xf32>
    %317 = arith.addf %312, %316 : vector<4x32xf32>
    %318 = arith.maximumf %301, %317 : vector<4x32xf32>
    %c4_312 = arith.constant 4 : index
    %c0_313 = arith.constant 0 : index
    %319 = vector.load %arg8[%c4_312, %c0_313] : memref<8x32xf32, #tpu.memory_space<vmem>>, vector<1x32xf32>
    %320 = vector.broadcast %319 : vector<1x32xf32> to vector<4x32xf32>
    %321 = arith.cmpf oge, %318, %320 : vector<4x32xf32>
    %cst_314 = arith.constant 1.000000e+00 : f32
    %cst_315 = arith.constant -1.000000e+00 : f32
    %322 = vector.broadcast %cst_314 : f32 to vector<4x32xf32>
    %323 = vector.broadcast %cst_315 : f32 to vector<4x32xf32>
    %324 = arith.select %321, %322, %323 : vector<4x32xi1>, vector<4x32xf32>
    %cst_316 = arith.constant 0.000000e+00 : f32
    %325 = vector.broadcast %cst_316 : f32 to vector<1x32xf32>
    %c0_317 = arith.constant 0 : index
    %c0_318 = arith.constant 0 : index
    %326 = vector.load %arg10[%c0_317, %c0_318] : memref<136x32xf32, #tpu.memory_space<vmem>>, vector<1x32xf32>
    tpu.vector_store %arg10[%c0_317, %c0_318], %325 {strides = array<i32>} : memref<136x32xf32, #tpu.memory_space<vmem>>, vector<1x32xf32>,
    %c5_319 = arith.constant 5 : index
    %c0_320 = arith.constant 0 : index
    %327 = vector.load %arg10[%c5_319, %c0_320] : memref<136x32xf32, #tpu.memory_space<vmem>>, vector<1x32xf32>
    tpu.vector_store %arg10[%c5_319, %c0_320], %325 {strides = array<i32>} : memref<136x32xf32, #tpu.memory_space<vmem>>, vector<1x32xf32>,
    %c1_321 = arith.constant 1 : index
    %c0_322 = arith.constant 0 : index
    %328 = vector.load %arg10[%c1_321, %c0_322] : memref<136x32xf32, #tpu.memory_space<vmem>>, vector<4x32xf32>
    tpu.vector_store %arg10[%c1_321, %c0_322], %324 {strides = array<i32>} : memref<136x32xf32, #tpu.memory_space<vmem>>, vector<4x32xf32>,
    %cst_323 = arith.constant 0.000000e+00 : f32
    %329 = vector.broadcast %cst_323 : f32 to vector<4x5xf32>
    %c0_324 = arith.constant 0 : index
    %c0_325 = arith.constant 0 : index
    %330 = vector.load %arg10[%c0_324, %c0_325] : memref<136x32xf32, #tpu.memory_space<vmem>>, vector<4x32xf32>
    %c0_326 = arith.constant 0 : index
    %c0_327 = arith.constant 0 : index
    %c0_328 = arith.constant 0 : index
    %331 = vector.load %arg7[%c0_326, %c0_327, %c0_328] : memref<3x32x5xf32, #tpu.memory_space<vmem>>, vector<1x32x5xf32>
    %332 = vector.shape_cast %331 : vector<1x32x5xf32> to vector<32x5xf32>
    %cst_329 = arith.constant dense<0.000000e+00> : vector<4x5xf32>
    %333 = tpu.matmul %330, %332, %cst_329 {dimension_numbers = #tpu.dot_dimension_numbers<[1], [0], [0], [1], [0, 0, 1, 1], [], []>} : vector<4x32xf32>, vector<32x5xf32>, vector<4x5xf32> -> vector<4x5xf32>
    %334 = arith.addf %329, %333 : vector<4x5xf32>
    %c1_330 = arith.constant 1 : index
    %c0_331 = arith.constant 0 : index
    %335 = vector.load %arg10[%c1_330, %c0_331] : memref<136x32xf32, #tpu.memory_space<vmem>>, vector<4x32xf32>
    %c1_332 = arith.constant 1 : index
    %c0_333 = arith.constant 0 : index
    %c0_334 = arith.constant 0 : index
    %336 = vector.load %arg7[%c1_332, %c0_333, %c0_334] : memref<3x32x5xf32, #tpu.memory_space<vmem>>, vector<1x32x5xf32>
    %337 = vector.shape_cast %336 : vector<1x32x5xf32> to vector<32x5xf32>
    %cst_335 = arith.constant dense<0.000000e+00> : vector<4x5xf32>
    %338 = tpu.matmul %335, %337, %cst_335 {dimension_numbers = #tpu.dot_dimension_numbers<[1], [0], [0], [1], [0, 0, 1, 1], [], []>} : vector<4x32xf32>, vector<32x5xf32>, vector<4x5xf32> -> vector<4x5xf32>
    %339 = arith.addf %334, %338 : vector<4x5xf32>
    %c2_336 = arith.constant 2 : index
    %c0_337 = arith.constant 0 : index
    %340 = vector.load %arg10[%c2_336, %c0_337] : memref<136x32xf32, #tpu.memory_space<vmem>>, vector<4x32xf32>
    %c2_338 = arith.constant 2 : index
    %c0_339 = arith.constant 0 : index
    %c0_340 = arith.constant 0 : index
    %341 = vector.load %arg7[%c2_338, %c0_339, %c0_340] : memref<3x32x5xf32, #tpu.memory_space<vmem>>, vector<1x32x5xf32>
    %342 = vector.shape_cast %341 : vector<1x32x5xf32> to vector<32x5xf32>
    %cst_341 = arith.constant dense<0.000000e+00> : vector<4x5xf32>
    %343 = tpu.matmul %340, %342, %cst_341 {dimension_numbers = #tpu.dot_dimension_numbers<[1], [0], [0], [1], [0, 0, 1, 1], [], []>} : vector<4x32xf32>, vector<32x5xf32>, vector<4x5xf32> -> vector<4x5xf32>
    %344 = arith.addf %339, %343 : vector<4x5xf32>
    %cst_342 = arith.constant dense<0xFF800000> : vector<5xf32>
    %345 = vector.multi_reduction <maximumf>, %344, %cst_342 [0] : vector<4x5xf32> to vector<5xf32>
    %346 = vector.shape_cast %345 : vector<5xf32> to vector<1x5xf32>
    %c5_343 = arith.constant 5 : index
    %c0_344 = arith.constant 0 : index
    %347 = vector.load %arg8[%c5_343, %c0_344] : memref<8x32xf32, #tpu.memory_space<vmem>>, vector<1x5xf32>
    %c6_345 = arith.constant 6 : index
    %c0_346 = arith.constant 0 : index
    %348 = vector.load %arg8[%c6_345, %c0_346] : memref<8x32xf32, #tpu.memory_space<vmem>>, vector<1x5xf32>
    %349 = arith.mulf %347, %346 : vector<1x5xf32>
    %350 = arith.addf %349, %348 : vector<1x5xf32>
    %c0_347 = arith.constant 0 : index
    %c0_348 = arith.constant 0 : index
    %c0_349 = arith.constant 0 : index
    %351 = vector.load %arg9[%c0_347, %c0_348, %c0_349] : memref<2x1x5xf32, #tpu.memory_space<vmem>>, vector<1x1x5xf32>
    %352 = vector.shape_cast %351 : vector<1x1x5xf32> to vector<1x5xf32>
    %353 = vector.shape_cast %350 : vector<1x5xf32> to vector<1x1x5xf32>
    tpu.vector_store %arg9[%c0_347, %c0_348, %c0_349], %353 {strides = array<i32>} : memref<2x1x5xf32, #tpu.memory_space<vmem>>, vector<1x1x5xf32>,
    %cst_350 = arith.constant 0.000000e+00 : f32
    %354 = vector.broadcast %cst_350 : f32 to vector<3x1xf32>
    %c0_351 = arith.constant 0 : index
    %c0_352 = arith.constant 0 : index
    %355 = vector.load %arg10[%c0_351, %c0_352] : memref<136x32xf32, #tpu.memory_space<vmem>>, vector<3x1xf32>
    tpu.vector_store %arg10[%c0_351, %c0_352], %354 {strides = array<i32>} : memref<136x32xf32, #tpu.memory_space<vmem>>, vector<3x1xf32>,
    %c131_353 = arith.constant 131 : index
    %c0_354 = arith.constant 0 : index
    %356 = vector.load %arg10[%c131_353, %c0_354] : memref<136x32xf32, #tpu.memory_space<vmem>>, vector<3x1xf32>
    tpu.vector_store %arg10[%c131_353, %c0_354], %354 {strides = array<i32>} : memref<136x32xf32, #tpu.memory_space<vmem>>, vector<3x1xf32>,
    %c1_355 = arith.constant 1 : index
    %c0_356 = arith.constant 0 : index
    %c0_357 = arith.constant 0 : index
    %357 = vector.load %arg1[%c1_355, %c0_356, %c0_357] : memref<2x128x1xf32, #tpu.memory_space<vmem>>, vector<1x128x1xf32>
    %358 = vector.shape_cast %357 : vector<1x128x1xf32> to vector<128x1xf32>
    %c3_358 = arith.constant 3 : index
    %c0_359 = arith.constant 0 : index
    %359 = vector.load %arg10[%c3_358, %c0_359] : memref<136x32xf32, #tpu.memory_space<vmem>>, vector<128x1xf32>
    tpu.vector_store %arg10[%c3_358, %c0_359], %358 {strides = array<i32>} : memref<136x32xf32, #tpu.memory_space<vmem>>, vector<128x1xf32>,
    %cst_360 = arith.constant 0.000000e+00 : f32
    %360 = vector.broadcast %cst_360 : f32 to vector<64x8xf32>
    %c0_361 = arith.constant 0 : index
    %c0_362 = arith.constant 0 : index
    %361 = tpu.strided_load %arg10[%c0_361, %c0_362] {strides = array<i32: 2, 1>} : memref<136x32xf32, #tpu.memory_space<vmem>>, vector<64x1xf32>
    %c0_363 = arith.constant 0 : index
    %c0_364 = arith.constant 0 : index
    %c0_365 = arith.constant 0 : index
    %362 = vector.load %arg2[%c0_363, %c0_364, %c0_365] : memref<7x1x8xf32, #tpu.memory_space<vmem>>, vector<1x1x8xf32>
    %363 = vector.shape_cast %362 : vector<1x1x8xf32> to vector<1x8xf32>
    %364 = vector.broadcast %361 : vector<64x1xf32> to vector<64x8xf32>
    %365 = vector.broadcast %363 : vector<1x8xf32> to vector<64x8xf32>
    %366 = arith.mulf %364, %365 : vector<64x8xf32>
    %367 = arith.addf %360, %366 : vector<64x8xf32>
    %c1_366 = arith.constant 1 : index
    %c0_367 = arith.constant 0 : index
    %368 = tpu.strided_load %arg10[%c1_366, %c0_367] {strides = array<i32: 2, 1>} : memref<136x32xf32, #tpu.memory_space<vmem>>, vector<64x1xf32>
    %c1_368 = arith.constant 1 : index
    %c0_369 = arith.constant 0 : index
    %c0_370 = arith.constant 0 : index
    %369 = vector.load %arg2[%c1_368, %c0_369, %c0_370] : memref<7x1x8xf32, #tpu.memory_space<vmem>>, vector<1x1x8xf32>
    %370 = vector.shape_cast %369 : vector<1x1x8xf32> to vector<1x8xf32>
    %371 = vector.broadcast %368 : vector<64x1xf32> to vector<64x8xf32>
    %372 = vector.broadcast %370 : vector<1x8xf32> to vector<64x8xf32>
    %373 = arith.mulf %371, %372 : vector<64x8xf32>
    %374 = arith.addf %367, %373 : vector<64x8xf32>
    %c2_371 = arith.constant 2 : index
    %c0_372 = arith.constant 0 : index
    %375 = tpu.strided_load %arg10[%c2_371, %c0_372] {strides = array<i32: 2, 1>} : memref<136x32xf32, #tpu.memory_space<vmem>>, vector<64x1xf32>
    %c2_373 = arith.constant 2 : index
    %c0_374 = arith.constant 0 : index
    %c0_375 = arith.constant 0 : index
    %376 = vector.load %arg2[%c2_373, %c0_374, %c0_375] : memref<7x1x8xf32, #tpu.memory_space<vmem>>, vector<1x1x8xf32>
    %377 = vector.shape_cast %376 : vector<1x1x8xf32> to vector<1x8xf32>
    %378 = vector.broadcast %375 : vector<64x1xf32> to vector<64x8xf32>
    %379 = vector.broadcast %377 : vector<1x8xf32> to vector<64x8xf32>
    %380 = arith.mulf %378, %379 : vector<64x8xf32>
    %381 = arith.addf %374, %380 : vector<64x8xf32>
    %c3_376 = arith.constant 3 : index
    %c0_377 = arith.constant 0 : index
    %382 = tpu.strided_load %arg10[%c3_376, %c0_377] {strides = array<i32: 2, 1>} : memref<136x32xf32, #tpu.memory_space<vmem>>, vector<64x1xf32>
    %c3_378 = arith.constant 3 : index
    %c0_379 = arith.constant 0 : index
    %c0_380 = arith.constant 0 : index
    %383 = vector.load %arg2[%c3_378, %c0_379, %c0_380] : memref<7x1x8xf32, #tpu.memory_space<vmem>>, vector<1x1x8xf32>
    %384 = vector.shape_cast %383 : vector<1x1x8xf32> to vector<1x8xf32>
    %385 = vector.broadcast %382 : vector<64x1xf32> to vector<64x8xf32>
    %386 = vector.broadcast %384 : vector<1x8xf32> to vector<64x8xf32>
    %387 = arith.mulf %385, %386 : vector<64x8xf32>
    %388 = arith.addf %381, %387 : vector<64x8xf32>
    %c4_381 = arith.constant 4 : index
    %c0_382 = arith.constant 0 : index
    %389 = tpu.strided_load %arg10[%c4_381, %c0_382] {strides = array<i32: 2, 1>} : memref<136x32xf32, #tpu.memory_space<vmem>>, vector<64x1xf32>
    %c4_383 = arith.constant 4 : index
    %c0_384 = arith.constant 0 : index
    %c0_385 = arith.constant 0 : index
    %390 = vector.load %arg2[%c4_383, %c0_384, %c0_385] : memref<7x1x8xf32, #tpu.memory_space<vmem>>, vector<1x1x8xf32>
    %391 = vector.shape_cast %390 : vector<1x1x8xf32> to vector<1x8xf32>
    %392 = vector.broadcast %389 : vector<64x1xf32> to vector<64x8xf32>
    %393 = vector.broadcast %391 : vector<1x8xf32> to vector<64x8xf32>
    %394 = arith.mulf %392, %393 : vector<64x8xf32>
    %395 = arith.addf %388, %394 : vector<64x8xf32>
    %c5_386 = arith.constant 5 : index
    %c0_387 = arith.constant 0 : index
    %396 = tpu.strided_load %arg10[%c5_386, %c0_387] {strides = array<i32: 2, 1>} : memref<136x32xf32, #tpu.memory_space<vmem>>, vector<64x1xf32>
    %c5_388 = arith.constant 5 : index
    %c0_389 = arith.constant 0 : index
    %c0_390 = arith.constant 0 : index
    %397 = vector.load %arg2[%c5_388, %c0_389, %c0_390] : memref<7x1x8xf32, #tpu.memory_space<vmem>>, vector<1x1x8xf32>
    %398 = vector.shape_cast %397 : vector<1x1x8xf32> to vector<1x8xf32>
    %399 = vector.broadcast %396 : vector<64x1xf32> to vector<64x8xf32>
    %400 = vector.broadcast %398 : vector<1x8xf32> to vector<64x8xf32>
    %401 = arith.mulf %399, %400 : vector<64x8xf32>
    %402 = arith.addf %395, %401 : vector<64x8xf32>
    %c6_391 = arith.constant 6 : index
    %c0_392 = arith.constant 0 : index
    %403 = tpu.strided_load %arg10[%c6_391, %c0_392] {strides = array<i32: 2, 1>} : memref<136x32xf32, #tpu.memory_space<vmem>>, vector<64x1xf32>
    %c6_393 = arith.constant 6 : index
    %c0_394 = arith.constant 0 : index
    %c0_395 = arith.constant 0 : index
    %404 = vector.load %arg2[%c6_393, %c0_394, %c0_395] : memref<7x1x8xf32, #tpu.memory_space<vmem>>, vector<1x1x8xf32>
    %405 = vector.shape_cast %404 : vector<1x1x8xf32> to vector<1x8xf32>
    %406 = vector.broadcast %403 : vector<64x1xf32> to vector<64x8xf32>
    %407 = vector.broadcast %405 : vector<1x8xf32> to vector<64x8xf32>
    %408 = arith.mulf %406, %407 : vector<64x8xf32>
    %409 = arith.addf %402, %408 : vector<64x8xf32>
    %cst_396 = arith.constant 0.000000e+00 : f32
    %410 = vector.broadcast %cst_396 : f32 to vector<64x8xf32>
    %c1_397 = arith.constant 1 : index
    %c0_398 = arith.constant 0 : index
    %411 = tpu.strided_load %arg10[%c1_397, %c0_398] {strides = array<i32: 2, 1>} : memref<136x32xf32, #tpu.memory_space<vmem>>, vector<64x1xf32>
    %c0_399 = arith.constant 0 : index
    %c0_400 = arith.constant 0 : index
    %c0_401 = arith.constant 0 : index
    %412 = vector.load %arg2[%c0_399, %c0_400, %c0_401] : memref<7x1x8xf32, #tpu.memory_space<vmem>>, vector<1x1x8xf32>
    %413 = vector.shape_cast %412 : vector<1x1x8xf32> to vector<1x8xf32>
    %414 = vector.broadcast %411 : vector<64x1xf32> to vector<64x8xf32>
    %415 = vector.broadcast %413 : vector<1x8xf32> to vector<64x8xf32>
    %416 = arith.mulf %414, %415 : vector<64x8xf32>
    %417 = arith.addf %410, %416 : vector<64x8xf32>
    %c2_402 = arith.constant 2 : index
    %c0_403 = arith.constant 0 : index
    %418 = tpu.strided_load %arg10[%c2_402, %c0_403] {strides = array<i32: 2, 1>} : memref<136x32xf32, #tpu.memory_space<vmem>>, vector<64x1xf32>
    %c1_404 = arith.constant 1 : index
    %c0_405 = arith.constant 0 : index
    %c0_406 = arith.constant 0 : index
    %419 = vector.load %arg2[%c1_404, %c0_405, %c0_406] : memref<7x1x8xf32, #tpu.memory_space<vmem>>, vector<1x1x8xf32>
    %420 = vector.shape_cast %419 : vector<1x1x8xf32> to vector<1x8xf32>
    %421 = vector.broadcast %418 : vector<64x1xf32> to vector<64x8xf32>
    %422 = vector.broadcast %420 : vector<1x8xf32> to vector<64x8xf32>
    %423 = arith.mulf %421, %422 : vector<64x8xf32>
    %424 = arith.addf %417, %423 : vector<64x8xf32>
    %c3_407 = arith.constant 3 : index
    %c0_408 = arith.constant 0 : index
    %425 = tpu.strided_load %arg10[%c3_407, %c0_408] {strides = array<i32: 2, 1>} : memref<136x32xf32, #tpu.memory_space<vmem>>, vector<64x1xf32>
    %c2_409 = arith.constant 2 : index
    %c0_410 = arith.constant 0 : index
    %c0_411 = arith.constant 0 : index
    %426 = vector.load %arg2[%c2_409, %c0_410, %c0_411] : memref<7x1x8xf32, #tpu.memory_space<vmem>>, vector<1x1x8xf32>
    %427 = vector.shape_cast %426 : vector<1x1x8xf32> to vector<1x8xf32>
    %428 = vector.broadcast %425 : vector<64x1xf32> to vector<64x8xf32>
    %429 = vector.broadcast %427 : vector<1x8xf32> to vector<64x8xf32>
    %430 = arith.mulf %428, %429 : vector<64x8xf32>
    %431 = arith.addf %424, %430 : vector<64x8xf32>
    %c4_412 = arith.constant 4 : index
    %c0_413 = arith.constant 0 : index
    %432 = tpu.strided_load %arg10[%c4_412, %c0_413] {strides = array<i32: 2, 1>} : memref<136x32xf32, #tpu.memory_space<vmem>>, vector<64x1xf32>
    %c3_414 = arith.constant 3 : index
    %c0_415 = arith.constant 0 : index
    %c0_416 = arith.constant 0 : index
    %433 = vector.load %arg2[%c3_414, %c0_415, %c0_416] : memref<7x1x8xf32, #tpu.memory_space<vmem>>, vector<1x1x8xf32>
    %434 = vector.shape_cast %433 : vector<1x1x8xf32> to vector<1x8xf32>
    %435 = vector.broadcast %432 : vector<64x1xf32> to vector<64x8xf32>
    %436 = vector.broadcast %434 : vector<1x8xf32> to vector<64x8xf32>
    %437 = arith.mulf %435, %436 : vector<64x8xf32>
    %438 = arith.addf %431, %437 : vector<64x8xf32>
    %c5_417 = arith.constant 5 : index
    %c0_418 = arith.constant 0 : index
    %439 = tpu.strided_load %arg10[%c5_417, %c0_418] {strides = array<i32: 2, 1>} : memref<136x32xf32, #tpu.memory_space<vmem>>, vector<64x1xf32>
    %c4_419 = arith.constant 4 : index
    %c0_420 = arith.constant 0 : index
    %c0_421 = arith.constant 0 : index
    %440 = vector.load %arg2[%c4_419, %c0_420, %c0_421] : memref<7x1x8xf32, #tpu.memory_space<vmem>>, vector<1x1x8xf32>
    %441 = vector.shape_cast %440 : vector<1x1x8xf32> to vector<1x8xf32>
    %442 = vector.broadcast %439 : vector<64x1xf32> to vector<64x8xf32>
    %443 = vector.broadcast %441 : vector<1x8xf32> to vector<64x8xf32>
    %444 = arith.mulf %442, %443 : vector<64x8xf32>
    %445 = arith.addf %438, %444 : vector<64x8xf32>
    %c6_422 = arith.constant 6 : index
    %c0_423 = arith.constant 0 : index
    %446 = tpu.strided_load %arg10[%c6_422, %c0_423] {strides = array<i32: 2, 1>} : memref<136x32xf32, #tpu.memory_space<vmem>>, vector<64x1xf32>
    %c5_424 = arith.constant 5 : index
    %c0_425 = arith.constant 0 : index
    %c0_426 = arith.constant 0 : index
    %447 = vector.load %arg2[%c5_424, %c0_425, %c0_426] : memref<7x1x8xf32, #tpu.memory_space<vmem>>, vector<1x1x8xf32>
    %448 = vector.shape_cast %447 : vector<1x1x8xf32> to vector<1x8xf32>
    %449 = vector.broadcast %446 : vector<64x1xf32> to vector<64x8xf32>
    %450 = vector.broadcast %448 : vector<1x8xf32> to vector<64x8xf32>
    %451 = arith.mulf %449, %450 : vector<64x8xf32>
    %452 = arith.addf %445, %451 : vector<64x8xf32>
    %c7_427 = arith.constant 7 : index
    %c0_428 = arith.constant 0 : index
    %453 = tpu.strided_load %arg10[%c7_427, %c0_428] {strides = array<i32: 2, 1>} : memref<136x32xf32, #tpu.memory_space<vmem>>, vector<64x1xf32>
    %c6_429 = arith.constant 6 : index
    %c0_430 = arith.constant 0 : index
    %c0_431 = arith.constant 0 : index
    %454 = vector.load %arg2[%c6_429, %c0_430, %c0_431] : memref<7x1x8xf32, #tpu.memory_space<vmem>>, vector<1x1x8xf32>
    %455 = vector.shape_cast %454 : vector<1x1x8xf32> to vector<1x8xf32>
    %456 = vector.broadcast %453 : vector<64x1xf32> to vector<64x8xf32>
    %457 = vector.broadcast %455 : vector<1x8xf32> to vector<64x8xf32>
    %458 = arith.mulf %456, %457 : vector<64x8xf32>
    %459 = arith.addf %452, %458 : vector<64x8xf32>
    %460 = arith.maximumf %409, %459 : vector<64x8xf32>
    %c0_432 = arith.constant 0 : index
    %c0_433 = arith.constant 0 : index
    %461 = vector.load %arg8[%c0_432, %c0_433] : memref<8x32xf32, #tpu.memory_space<vmem>>, vector<1x8xf32>
    %462 = vector.broadcast %461 : vector<1x8xf32> to vector<64x8xf32>
    %463 = arith.cmpf oge, %460, %462 : vector<64x8xf32>
    %cst_434 = arith.constant 1.000000e+00 : f32
    %cst_435 = arith.constant -1.000000e+00 : f32
    %464 = vector.broadcast %cst_434 : f32 to vector<64x8xf32>
    %465 = vector.broadcast %cst_435 : f32 to vector<64x8xf32>
    %466 = arith.select %463, %464, %465 : vector<64x8xi1>, vector<64x8xf32>
    %cst_436 = arith.constant 0.000000e+00 : f32
    %467 = vector.broadcast %cst_436 : f32 to vector<2x8xf32>
    %c0_437 = arith.constant 0 : index
    %c0_438 = arith.constant 0 : index
    %468 = vector.load %arg10[%c0_437, %c0_438] : memref<136x32xf32, #tpu.memory_space<vmem>>, vector<2x8xf32>
    tpu.vector_store %arg10[%c0_437, %c0_438], %467 {strides = array<i32>} : memref<136x32xf32, #tpu.memory_space<vmem>>, vector<2x8xf32>,
    %c66_439 = arith.constant 66 : index
    %c0_440 = arith.constant 0 : index
    %469 = vector.load %arg10[%c66_439, %c0_440] : memref<136x32xf32, #tpu.memory_space<vmem>>, vector<2x8xf32>
    tpu.vector_store %arg10[%c66_439, %c0_440], %467 {strides = array<i32>} : memref<136x32xf32, #tpu.memory_space<vmem>>, vector<2x8xf32>,
    %c2_441 = arith.constant 2 : index
    %c0_442 = arith.constant 0 : index
    %470 = vector.load %arg10[%c2_441, %c0_442] : memref<136x32xf32, #tpu.memory_space<vmem>>, vector<64x8xf32>
    tpu.vector_store %arg10[%c2_441, %c0_442], %466 {strides = array<i32>} : memref<136x32xf32, #tpu.memory_space<vmem>>, vector<64x8xf32>,
    %cst_443 = arith.constant 0.000000e+00 : f32
    %471 = vector.broadcast %cst_443 : f32 to vector<32x16xf32>
    %c0_444 = arith.constant 0 : index
    %c0_445 = arith.constant 0 : index
    %472 = tpu.strided_load %arg10[%c0_444, %c0_445] {strides = array<i32: 2, 1>} : memref<136x32xf32, #tpu.memory_space<vmem>>, vector<32x8xf32>
    %c0_446 = arith.constant 0 : index
    %c0_447 = arith.constant 0 : index
    %c0_448 = arith.constant 0 : index
    %473 = vector.load %arg3[%c0_446, %c0_447, %c0_448] : memref<5x8x16xf32, #tpu.memory_space<vmem>>, vector<1x8x16xf32>
    %474 = vector.shape_cast %473 : vector<1x8x16xf32> to vector<8x16xf32>
    %cst_449 = arith.constant dense<0.000000e+00> : vector<32x16xf32>
    %475 = tpu.matmul %472, %474, %cst_449 {dimension_numbers = #tpu.dot_dimension_numbers<[1], [0], [0], [1], [0, 0, 1, 1], [], []>} : vector<32x8xf32>, vector<8x16xf32>, vector<32x16xf32> -> vector<32x16xf32>
    %476 = arith.addf %471, %475 : vector<32x16xf32>
    %c1_450 = arith.constant 1 : index
    %c0_451 = arith.constant 0 : index
    %477 = tpu.strided_load %arg10[%c1_450, %c0_451] {strides = array<i32: 2, 1>} : memref<136x32xf32, #tpu.memory_space<vmem>>, vector<32x8xf32>
    %c1_452 = arith.constant 1 : index
    %c0_453 = arith.constant 0 : index
    %c0_454 = arith.constant 0 : index
    %478 = vector.load %arg3[%c1_452, %c0_453, %c0_454] : memref<5x8x16xf32, #tpu.memory_space<vmem>>, vector<1x8x16xf32>
    %479 = vector.shape_cast %478 : vector<1x8x16xf32> to vector<8x16xf32>
    %cst_455 = arith.constant dense<0.000000e+00> : vector<32x16xf32>
    %480 = tpu.matmul %477, %479, %cst_455 {dimension_numbers = #tpu.dot_dimension_numbers<[1], [0], [0], [1], [0, 0, 1, 1], [], []>} : vector<32x8xf32>, vector<8x16xf32>, vector<32x16xf32> -> vector<32x16xf32>
    %481 = arith.addf %476, %480 : vector<32x16xf32>
    %c2_456 = arith.constant 2 : index
    %c0_457 = arith.constant 0 : index
    %482 = tpu.strided_load %arg10[%c2_456, %c0_457] {strides = array<i32: 2, 1>} : memref<136x32xf32, #tpu.memory_space<vmem>>, vector<32x8xf32>
    %c2_458 = arith.constant 2 : index
    %c0_459 = arith.constant 0 : index
    %c0_460 = arith.constant 0 : index
    %483 = vector.load %arg3[%c2_458, %c0_459, %c0_460] : memref<5x8x16xf32, #tpu.memory_space<vmem>>, vector<1x8x16xf32>
    %484 = vector.shape_cast %483 : vector<1x8x16xf32> to vector<8x16xf32>
    %cst_461 = arith.constant dense<0.000000e+00> : vector<32x16xf32>
    %485 = tpu.matmul %482, %484, %cst_461 {dimension_numbers = #tpu.dot_dimension_numbers<[1], [0], [0], [1], [0, 0, 1, 1], [], []>} : vector<32x8xf32>, vector<8x16xf32>, vector<32x16xf32> -> vector<32x16xf32>
    %486 = arith.addf %481, %485 : vector<32x16xf32>
    %c3_462 = arith.constant 3 : index
    %c0_463 = arith.constant 0 : index
    %487 = tpu.strided_load %arg10[%c3_462, %c0_463] {strides = array<i32: 2, 1>} : memref<136x32xf32, #tpu.memory_space<vmem>>, vector<32x8xf32>
    %c3_464 = arith.constant 3 : index
    %c0_465 = arith.constant 0 : index
    %c0_466 = arith.constant 0 : index
    %488 = vector.load %arg3[%c3_464, %c0_465, %c0_466] : memref<5x8x16xf32, #tpu.memory_space<vmem>>, vector<1x8x16xf32>
    %489 = vector.shape_cast %488 : vector<1x8x16xf32> to vector<8x16xf32>
    %cst_467 = arith.constant dense<0.000000e+00> : vector<32x16xf32>
    %490 = tpu.matmul %487, %489, %cst_467 {dimension_numbers = #tpu.dot_dimension_numbers<[1], [0], [0], [1], [0, 0, 1, 1], [], []>} : vector<32x8xf32>, vector<8x16xf32>, vector<32x16xf32> -> vector<32x16xf32>
    %491 = arith.addf %486, %490 : vector<32x16xf32>
    %c4_468 = arith.constant 4 : index
    %c0_469 = arith.constant 0 : index
    %492 = tpu.strided_load %arg10[%c4_468, %c0_469] {strides = array<i32: 2, 1>} : memref<136x32xf32, #tpu.memory_space<vmem>>, vector<32x8xf32>
    %c4_470 = arith.constant 4 : index
    %c0_471 = arith.constant 0 : index
    %c0_472 = arith.constant 0 : index
    %493 = vector.load %arg3[%c4_470, %c0_471, %c0_472] : memref<5x8x16xf32, #tpu.memory_space<vmem>>, vector<1x8x16xf32>
    %494 = vector.shape_cast %493 : vector<1x8x16xf32> to vector<8x16xf32>
    %cst_473 = arith.constant dense<0.000000e+00> : vector<32x16xf32>
    %495 = tpu.matmul %492, %494, %cst_473 {dimension_numbers = #tpu.dot_dimension_numbers<[1], [0], [0], [1], [0, 0, 1, 1], [], []>} : vector<32x8xf32>, vector<8x16xf32>, vector<32x16xf32> -> vector<32x16xf32>
    %496 = arith.addf %491, %495 : vector<32x16xf32>
    %cst_474 = arith.constant 0.000000e+00 : f32
    %497 = vector.broadcast %cst_474 : f32 to vector<32x16xf32>
    %c1_475 = arith.constant 1 : index
    %c0_476 = arith.constant 0 : index
    %498 = tpu.strided_load %arg10[%c1_475, %c0_476] {strides = array<i32: 2, 1>} : memref<136x32xf32, #tpu.memory_space<vmem>>, vector<32x8xf32>
    %c0_477 = arith.constant 0 : index
    %c0_478 = arith.constant 0 : index
    %c0_479 = arith.constant 0 : index
    %499 = vector.load %arg3[%c0_477, %c0_478, %c0_479] : memref<5x8x16xf32, #tpu.memory_space<vmem>>, vector<1x8x16xf32>
    %500 = vector.shape_cast %499 : vector<1x8x16xf32> to vector<8x16xf32>
    %cst_480 = arith.constant dense<0.000000e+00> : vector<32x16xf32>
    %501 = tpu.matmul %498, %500, %cst_480 {dimension_numbers = #tpu.dot_dimension_numbers<[1], [0], [0], [1], [0, 0, 1, 1], [], []>} : vector<32x8xf32>, vector<8x16xf32>, vector<32x16xf32> -> vector<32x16xf32>
    %502 = arith.addf %497, %501 : vector<32x16xf32>
    %c2_481 = arith.constant 2 : index
    %c0_482 = arith.constant 0 : index
    %503 = tpu.strided_load %arg10[%c2_481, %c0_482] {strides = array<i32: 2, 1>} : memref<136x32xf32, #tpu.memory_space<vmem>>, vector<32x8xf32>
    %c1_483 = arith.constant 1 : index
    %c0_484 = arith.constant 0 : index
    %c0_485 = arith.constant 0 : index
    %504 = vector.load %arg3[%c1_483, %c0_484, %c0_485] : memref<5x8x16xf32, #tpu.memory_space<vmem>>, vector<1x8x16xf32>
    %505 = vector.shape_cast %504 : vector<1x8x16xf32> to vector<8x16xf32>
    %cst_486 = arith.constant dense<0.000000e+00> : vector<32x16xf32>
    %506 = tpu.matmul %503, %505, %cst_486 {dimension_numbers = #tpu.dot_dimension_numbers<[1], [0], [0], [1], [0, 0, 1, 1], [], []>} : vector<32x8xf32>, vector<8x16xf32>, vector<32x16xf32> -> vector<32x16xf32>
    %507 = arith.addf %502, %506 : vector<32x16xf32>
    %c3_487 = arith.constant 3 : index
    %c0_488 = arith.constant 0 : index
    %508 = tpu.strided_load %arg10[%c3_487, %c0_488] {strides = array<i32: 2, 1>} : memref<136x32xf32, #tpu.memory_space<vmem>>, vector<32x8xf32>
    %c2_489 = arith.constant 2 : index
    %c0_490 = arith.constant 0 : index
    %c0_491 = arith.constant 0 : index
    %509 = vector.load %arg3[%c2_489, %c0_490, %c0_491] : memref<5x8x16xf32, #tpu.memory_space<vmem>>, vector<1x8x16xf32>
    %510 = vector.shape_cast %509 : vector<1x8x16xf32> to vector<8x16xf32>
    %cst_492 = arith.constant dense<0.000000e+00> : vector<32x16xf32>
    %511 = tpu.matmul %508, %510, %cst_492 {dimension_numbers = #tpu.dot_dimension_numbers<[1], [0], [0], [1], [0, 0, 1, 1], [], []>} : vector<32x8xf32>, vector<8x16xf32>, vector<32x16xf32> -> vector<32x16xf32>
    %512 = arith.addf %507, %511 : vector<32x16xf32>
    %c4_493 = arith.constant 4 : index
    %c0_494 = arith.constant 0 : index
    %513 = tpu.strided_load %arg10[%c4_493, %c0_494] {strides = array<i32: 2, 1>} : memref<136x32xf32, #tpu.memory_space<vmem>>, vector<32x8xf32>
    %c3_495 = arith.constant 3 : index
    %c0_496 = arith.constant 0 : index
    %c0_497 = arith.constant 0 : index
    %514 = vector.load %arg3[%c3_495, %c0_496, %c0_497] : memref<5x8x16xf32, #tpu.memory_space<vmem>>, vector<1x8x16xf32>
    %515 = vector.shape_cast %514 : vector<1x8x16xf32> to vector<8x16xf32>
    %cst_498 = arith.constant dense<0.000000e+00> : vector<32x16xf32>
    %516 = tpu.matmul %513, %515, %cst_498 {dimension_numbers = #tpu.dot_dimension_numbers<[1], [0], [0], [1], [0, 0, 1, 1], [], []>} : vector<32x8xf32>, vector<8x16xf32>, vector<32x16xf32> -> vector<32x16xf32>
    %517 = arith.addf %512, %516 : vector<32x16xf32>
    %c5_499 = arith.constant 5 : index
    %c0_500 = arith.constant 0 : index
    %518 = tpu.strided_load %arg10[%c5_499, %c0_500] {strides = array<i32: 2, 1>} : memref<136x32xf32, #tpu.memory_space<vmem>>, vector<32x8xf32>
    %c4_501 = arith.constant 4 : index
    %c0_502 = arith.constant 0 : index
    %c0_503 = arith.constant 0 : index
    %519 = vector.load %arg3[%c4_501, %c0_502, %c0_503] : memref<5x8x16xf32, #tpu.memory_space<vmem>>, vector<1x8x16xf32>
    %520 = vector.shape_cast %519 : vector<1x8x16xf32> to vector<8x16xf32>
    %cst_504 = arith.constant dense<0.000000e+00> : vector<32x16xf32>
    %521 = tpu.matmul %518, %520, %cst_504 {dimension_numbers = #tpu.dot_dimension_numbers<[1], [0], [0], [1], [0, 0, 1, 1], [], []>} : vector<32x8xf32>, vector<8x16xf32>, vector<32x16xf32> -> vector<32x16xf32>
    %522 = arith.addf %517, %521 : vector<32x16xf32>
    %523 = arith.maximumf %496, %522 : vector<32x16xf32>
    %c1_505 = arith.constant 1 : index
    %c0_506 = arith.constant 0 : index
    %524 = vector.load %arg8[%c1_505, %c0_506] : memref<8x32xf32, #tpu.memory_space<vmem>>, vector<1x16xf32>
    %525 = vector.broadcast %524 : vector<1x16xf32> to vector<32x16xf32>
    %526 = arith.cmpf oge, %523, %525 : vector<32x16xf32>
    %cst_507 = arith.constant 1.000000e+00 : f32
    %cst_508 = arith.constant -1.000000e+00 : f32
    %527 = vector.broadcast %cst_507 : f32 to vector<32x16xf32>
    %528 = vector.broadcast %cst_508 : f32 to vector<32x16xf32>
    %529 = arith.select %526, %527, %528 : vector<32x16xi1>, vector<32x16xf32>
    %cst_509 = arith.constant 0.000000e+00 : f32
    %530 = vector.broadcast %cst_509 : f32 to vector<2x16xf32>
    %c0_510 = arith.constant 0 : index
    %c0_511 = arith.constant 0 : index
    %531 = vector.load %arg10[%c0_510, %c0_511] : memref<136x32xf32, #tpu.memory_space<vmem>>, vector<2x16xf32>
    tpu.vector_store %arg10[%c0_510, %c0_511], %530 {strides = array<i32>} : memref<136x32xf32, #tpu.memory_space<vmem>>, vector<2x16xf32>,
    %c34_512 = arith.constant 34 : index
    %c0_513 = arith.constant 0 : index
    %532 = vector.load %arg10[%c34_512, %c0_513] : memref<136x32xf32, #tpu.memory_space<vmem>>, vector<2x16xf32>
    tpu.vector_store %arg10[%c34_512, %c0_513], %530 {strides = array<i32>} : memref<136x32xf32, #tpu.memory_space<vmem>>, vector<2x16xf32>,
    %c2_514 = arith.constant 2 : index
    %c0_515 = arith.constant 0 : index
    %533 = vector.load %arg10[%c2_514, %c0_515] : memref<136x32xf32, #tpu.memory_space<vmem>>, vector<32x16xf32>
    tpu.vector_store %arg10[%c2_514, %c0_515], %529 {strides = array<i32>} : memref<136x32xf32, #tpu.memory_space<vmem>>, vector<32x16xf32>,
    %cst_516 = arith.constant 0.000000e+00 : f32
    %534 = vector.broadcast %cst_516 : f32 to vector<16x16xf32>
    %c0_517 = arith.constant 0 : index
    %c0_518 = arith.constant 0 : index
    %535 = tpu.strided_load %arg10[%c0_517, %c0_518] {strides = array<i32: 2, 1>} : memref<136x32xf32, #tpu.memory_space<vmem>>, vector<16x16xf32>
    %c0_519 = arith.constant 0 : index
    %c0_520 = arith.constant 0 : index
    %c0_521 = arith.constant 0 : index
    %536 = vector.load %arg4[%c0_519, %c0_520, %c0_521] : memref<5x16x16xf32, #tpu.memory_space<vmem>>, vector<1x16x16xf32>
    %537 = vector.shape_cast %536 : vector<1x16x16xf32> to vector<16x16xf32>
    %cst_522 = arith.constant dense<0.000000e+00> : vector<16x16xf32>
    %538 = tpu.matmul %535, %537, %cst_522 {dimension_numbers = #tpu.dot_dimension_numbers<[1], [0], [0], [1], [0, 0, 1, 1], [], []>} : vector<16x16xf32>, vector<16x16xf32>, vector<16x16xf32> -> vector<16x16xf32>
    %539 = arith.addf %534, %538 : vector<16x16xf32>
    %c1_523 = arith.constant 1 : index
    %c0_524 = arith.constant 0 : index
    %540 = tpu.strided_load %arg10[%c1_523, %c0_524] {strides = array<i32: 2, 1>} : memref<136x32xf32, #tpu.memory_space<vmem>>, vector<16x16xf32>
    %c1_525 = arith.constant 1 : index
    %c0_526 = arith.constant 0 : index
    %c0_527 = arith.constant 0 : index
    %541 = vector.load %arg4[%c1_525, %c0_526, %c0_527] : memref<5x16x16xf32, #tpu.memory_space<vmem>>, vector<1x16x16xf32>
    %542 = vector.shape_cast %541 : vector<1x16x16xf32> to vector<16x16xf32>
    %cst_528 = arith.constant dense<0.000000e+00> : vector<16x16xf32>
    %543 = tpu.matmul %540, %542, %cst_528 {dimension_numbers = #tpu.dot_dimension_numbers<[1], [0], [0], [1], [0, 0, 1, 1], [], []>} : vector<16x16xf32>, vector<16x16xf32>, vector<16x16xf32> -> vector<16x16xf32>
    %544 = arith.addf %539, %543 : vector<16x16xf32>
    %c2_529 = arith.constant 2 : index
    %c0_530 = arith.constant 0 : index
    %545 = tpu.strided_load %arg10[%c2_529, %c0_530] {strides = array<i32: 2, 1>} : memref<136x32xf32, #tpu.memory_space<vmem>>, vector<16x16xf32>
    %c2_531 = arith.constant 2 : index
    %c0_532 = arith.constant 0 : index
    %c0_533 = arith.constant 0 : index
    %546 = vector.load %arg4[%c2_531, %c0_532, %c0_533] : memref<5x16x16xf32, #tpu.memory_space<vmem>>, vector<1x16x16xf32>
    %547 = vector.shape_cast %546 : vector<1x16x16xf32> to vector<16x16xf32>
    %cst_534 = arith.constant dense<0.000000e+00> : vector<16x16xf32>
    %548 = tpu.matmul %545, %547, %cst_534 {dimension_numbers = #tpu.dot_dimension_numbers<[1], [0], [0], [1], [0, 0, 1, 1], [], []>} : vector<16x16xf32>, vector<16x16xf32>, vector<16x16xf32> -> vector<16x16xf32>
    %549 = arith.addf %544, %548 : vector<16x16xf32>
    %c3_535 = arith.constant 3 : index
    %c0_536 = arith.constant 0 : index
    %550 = tpu.strided_load %arg10[%c3_535, %c0_536] {strides = array<i32: 2, 1>} : memref<136x32xf32, #tpu.memory_space<vmem>>, vector<16x16xf32>
    %c3_537 = arith.constant 3 : index
    %c0_538 = arith.constant 0 : index
    %c0_539 = arith.constant 0 : index
    %551 = vector.load %arg4[%c3_537, %c0_538, %c0_539] : memref<5x16x16xf32, #tpu.memory_space<vmem>>, vector<1x16x16xf32>
    %552 = vector.shape_cast %551 : vector<1x16x16xf32> to vector<16x16xf32>
    %cst_540 = arith.constant dense<0.000000e+00> : vector<16x16xf32>
    %553 = tpu.matmul %550, %552, %cst_540 {dimension_numbers = #tpu.dot_dimension_numbers<[1], [0], [0], [1], [0, 0, 1, 1], [], []>} : vector<16x16xf32>, vector<16x16xf32>, vector<16x16xf32> -> vector<16x16xf32>
    %554 = arith.addf %549, %553 : vector<16x16xf32>
    %c4_541 = arith.constant 4 : index
    %c0_542 = arith.constant 0 : index
    %555 = tpu.strided_load %arg10[%c4_541, %c0_542] {strides = array<i32: 2, 1>} : memref<136x32xf32, #tpu.memory_space<vmem>>, vector<16x16xf32>
    %c4_543 = arith.constant 4 : index
    %c0_544 = arith.constant 0 : index
    %c0_545 = arith.constant 0 : index
    %556 = vector.load %arg4[%c4_543, %c0_544, %c0_545] : memref<5x16x16xf32, #tpu.memory_space<vmem>>, vector<1x16x16xf32>
    %557 = vector.shape_cast %556 : vector<1x16x16xf32> to vector<16x16xf32>
    %cst_546 = arith.constant dense<0.000000e+00> : vector<16x16xf32>
    %558 = tpu.matmul %555, %557, %cst_546 {dimension_numbers = #tpu.dot_dimension_numbers<[1], [0], [0], [1], [0, 0, 1, 1], [], []>} : vector<16x16xf32>, vector<16x16xf32>, vector<16x16xf32> -> vector<16x16xf32>
    %559 = arith.addf %554, %558 : vector<16x16xf32>
    %cst_547 = arith.constant 0.000000e+00 : f32
    %560 = vector.broadcast %cst_547 : f32 to vector<16x16xf32>
    %c1_548 = arith.constant 1 : index
    %c0_549 = arith.constant 0 : index
    %561 = tpu.strided_load %arg10[%c1_548, %c0_549] {strides = array<i32: 2, 1>} : memref<136x32xf32, #tpu.memory_space<vmem>>, vector<16x16xf32>
    %c0_550 = arith.constant 0 : index
    %c0_551 = arith.constant 0 : index
    %c0_552 = arith.constant 0 : index
    %562 = vector.load %arg4[%c0_550, %c0_551, %c0_552] : memref<5x16x16xf32, #tpu.memory_space<vmem>>, vector<1x16x16xf32>
    %563 = vector.shape_cast %562 : vector<1x16x16xf32> to vector<16x16xf32>
    %cst_553 = arith.constant dense<0.000000e+00> : vector<16x16xf32>
    %564 = tpu.matmul %561, %563, %cst_553 {dimension_numbers = #tpu.dot_dimension_numbers<[1], [0], [0], [1], [0, 0, 1, 1], [], []>} : vector<16x16xf32>, vector<16x16xf32>, vector<16x16xf32> -> vector<16x16xf32>
    %565 = arith.addf %560, %564 : vector<16x16xf32>
    %c2_554 = arith.constant 2 : index
    %c0_555 = arith.constant 0 : index
    %566 = tpu.strided_load %arg10[%c2_554, %c0_555] {strides = array<i32: 2, 1>} : memref<136x32xf32, #tpu.memory_space<vmem>>, vector<16x16xf32>
    %c1_556 = arith.constant 1 : index
    %c0_557 = arith.constant 0 : index
    %c0_558 = arith.constant 0 : index
    %567 = vector.load %arg4[%c1_556, %c0_557, %c0_558] : memref<5x16x16xf32, #tpu.memory_space<vmem>>, vector<1x16x16xf32>
    %568 = vector.shape_cast %567 : vector<1x16x16xf32> to vector<16x16xf32>
    %cst_559 = arith.constant dense<0.000000e+00> : vector<16x16xf32>
    %569 = tpu.matmul %566, %568, %cst_559 {dimension_numbers = #tpu.dot_dimension_numbers<[1], [0], [0], [1], [0, 0, 1, 1], [], []>} : vector<16x16xf32>, vector<16x16xf32>, vector<16x16xf32> -> vector<16x16xf32>
    %570 = arith.addf %565, %569 : vector<16x16xf32>
    %c3_560 = arith.constant 3 : index
    %c0_561 = arith.constant 0 : index
    %571 = tpu.strided_load %arg10[%c3_560, %c0_561] {strides = array<i32: 2, 1>} : memref<136x32xf32, #tpu.memory_space<vmem>>, vector<16x16xf32>
    %c2_562 = arith.constant 2 : index
    %c0_563 = arith.constant 0 : index
    %c0_564 = arith.constant 0 : index
    %572 = vector.load %arg4[%c2_562, %c0_563, %c0_564] : memref<5x16x16xf32, #tpu.memory_space<vmem>>, vector<1x16x16xf32>
    %573 = vector.shape_cast %572 : vector<1x16x16xf32> to vector<16x16xf32>
    %cst_565 = arith.constant dense<0.000000e+00> : vector<16x16xf32>
    %574 = tpu.matmul %571, %573, %cst_565 {dimension_numbers = #tpu.dot_dimension_numbers<[1], [0], [0], [1], [0, 0, 1, 1], [], []>} : vector<16x16xf32>, vector<16x16xf32>, vector<16x16xf32> -> vector<16x16xf32>
    %575 = arith.addf %570, %574 : vector<16x16xf32>
    %c4_566 = arith.constant 4 : index
    %c0_567 = arith.constant 0 : index
    %576 = tpu.strided_load %arg10[%c4_566, %c0_567] {strides = array<i32: 2, 1>} : memref<136x32xf32, #tpu.memory_space<vmem>>, vector<16x16xf32>
    %c3_568 = arith.constant 3 : index
    %c0_569 = arith.constant 0 : index
    %c0_570 = arith.constant 0 : index
    %577 = vector.load %arg4[%c3_568, %c0_569, %c0_570] : memref<5x16x16xf32, #tpu.memory_space<vmem>>, vector<1x16x16xf32>
    %578 = vector.shape_cast %577 : vector<1x16x16xf32> to vector<16x16xf32>
    %cst_571 = arith.constant dense<0.000000e+00> : vector<16x16xf32>
    %579 = tpu.matmul %576, %578, %cst_571 {dimension_numbers = #tpu.dot_dimension_numbers<[1], [0], [0], [1], [0, 0, 1, 1], [], []>} : vector<16x16xf32>, vector<16x16xf32>, vector<16x16xf32> -> vector<16x16xf32>
    %580 = arith.addf %575, %579 : vector<16x16xf32>
    %c5_572 = arith.constant 5 : index
    %c0_573 = arith.constant 0 : index
    %581 = tpu.strided_load %arg10[%c5_572, %c0_573] {strides = array<i32: 2, 1>} : memref<136x32xf32, #tpu.memory_space<vmem>>, vector<16x16xf32>
    %c4_574 = arith.constant 4 : index
    %c0_575 = arith.constant 0 : index
    %c0_576 = arith.constant 0 : index
    %582 = vector.load %arg4[%c4_574, %c0_575, %c0_576] : memref<5x16x16xf32, #tpu.memory_space<vmem>>, vector<1x16x16xf32>
    %583 = vector.shape_cast %582 : vector<1x16x16xf32> to vector<16x16xf32>
    %cst_577 = arith.constant dense<0.000000e+00> : vector<16x16xf32>
    %584 = tpu.matmul %581, %583, %cst_577 {dimension_numbers = #tpu.dot_dimension_numbers<[1], [0], [0], [1], [0, 0, 1, 1], [], []>} : vector<16x16xf32>, vector<16x16xf32>, vector<16x16xf32> -> vector<16x16xf32>
    %585 = arith.addf %580, %584 : vector<16x16xf32>
    %586 = arith.maximumf %559, %585 : vector<16x16xf32>
    %c2_578 = arith.constant 2 : index
    %c0_579 = arith.constant 0 : index
    %587 = vector.load %arg8[%c2_578, %c0_579] : memref<8x32xf32, #tpu.memory_space<vmem>>, vector<1x16xf32>
    %588 = vector.broadcast %587 : vector<1x16xf32> to vector<16x16xf32>
    %589 = arith.cmpf oge, %586, %588 : vector<16x16xf32>
    %cst_580 = arith.constant 1.000000e+00 : f32
    %cst_581 = arith.constant -1.000000e+00 : f32
    %590 = vector.broadcast %cst_580 : f32 to vector<16x16xf32>
    %591 = vector.broadcast %cst_581 : f32 to vector<16x16xf32>
    %592 = arith.select %589, %590, %591 : vector<16x16xi1>, vector<16x16xf32>
    %cst_582 = arith.constant 0.000000e+00 : f32
    %593 = vector.broadcast %cst_582 : f32 to vector<1x16xf32>
    %c0_583 = arith.constant 0 : index
    %c0_584 = arith.constant 0 : index
    %594 = vector.load %arg10[%c0_583, %c0_584] : memref<136x32xf32, #tpu.memory_space<vmem>>, vector<1x16xf32>
    tpu.vector_store %arg10[%c0_583, %c0_584], %593 {strides = array<i32>} : memref<136x32xf32, #tpu.memory_space<vmem>>, vector<1x16xf32>,
    %c17_585 = arith.constant 17 : index
    %c0_586 = arith.constant 0 : index
    %595 = vector.load %arg10[%c17_585, %c0_586] : memref<136x32xf32, #tpu.memory_space<vmem>>, vector<1x16xf32>
    tpu.vector_store %arg10[%c17_585, %c0_586], %593 {strides = array<i32>} : memref<136x32xf32, #tpu.memory_space<vmem>>, vector<1x16xf32>,
    %c1_587 = arith.constant 1 : index
    %c0_588 = arith.constant 0 : index
    %596 = vector.load %arg10[%c1_587, %c0_588] : memref<136x32xf32, #tpu.memory_space<vmem>>, vector<16x16xf32>
    tpu.vector_store %arg10[%c1_587, %c0_588], %592 {strides = array<i32>} : memref<136x32xf32, #tpu.memory_space<vmem>>, vector<16x16xf32>,
    %cst_589 = arith.constant 0.000000e+00 : f32
    %597 = vector.broadcast %cst_589 : f32 to vector<8x32xf32>
    %c0_590 = arith.constant 0 : index
    %c0_591 = arith.constant 0 : index
    %598 = tpu.strided_load %arg10[%c0_590, %c0_591] {strides = array<i32: 2, 1>} : memref<136x32xf32, #tpu.memory_space<vmem>>, vector<8x16xf32>
    %c0_592 = arith.constant 0 : index
    %c0_593 = arith.constant 0 : index
    %c0_594 = arith.constant 0 : index
    %599 = vector.load %arg5[%c0_592, %c0_593, %c0_594] : memref<3x16x32xf32, #tpu.memory_space<vmem>>, vector<1x16x32xf32>
    %600 = vector.shape_cast %599 : vector<1x16x32xf32> to vector<16x32xf32>
    %cst_595 = arith.constant dense<0.000000e+00> : vector<8x32xf32>
    %601 = tpu.matmul %598, %600, %cst_595 {dimension_numbers = #tpu.dot_dimension_numbers<[1], [0], [0], [1], [0, 0, 1, 1], [], []>} : vector<8x16xf32>, vector<16x32xf32>, vector<8x32xf32> -> vector<8x32xf32>
    %602 = arith.addf %597, %601 : vector<8x32xf32>
    %c1_596 = arith.constant 1 : index
    %c0_597 = arith.constant 0 : index
    %603 = tpu.strided_load %arg10[%c1_596, %c0_597] {strides = array<i32: 2, 1>} : memref<136x32xf32, #tpu.memory_space<vmem>>, vector<8x16xf32>
    %c1_598 = arith.constant 1 : index
    %c0_599 = arith.constant 0 : index
    %c0_600 = arith.constant 0 : index
    %604 = vector.load %arg5[%c1_598, %c0_599, %c0_600] : memref<3x16x32xf32, #tpu.memory_space<vmem>>, vector<1x16x32xf32>
    %605 = vector.shape_cast %604 : vector<1x16x32xf32> to vector<16x32xf32>
    %cst_601 = arith.constant dense<0.000000e+00> : vector<8x32xf32>
    %606 = tpu.matmul %603, %605, %cst_601 {dimension_numbers = #tpu.dot_dimension_numbers<[1], [0], [0], [1], [0, 0, 1, 1], [], []>} : vector<8x16xf32>, vector<16x32xf32>, vector<8x32xf32> -> vector<8x32xf32>
    %607 = arith.addf %602, %606 : vector<8x32xf32>
    %c2_602 = arith.constant 2 : index
    %c0_603 = arith.constant 0 : index
    %608 = tpu.strided_load %arg10[%c2_602, %c0_603] {strides = array<i32: 2, 1>} : memref<136x32xf32, #tpu.memory_space<vmem>>, vector<8x16xf32>
    %c2_604 = arith.constant 2 : index
    %c0_605 = arith.constant 0 : index
    %c0_606 = arith.constant 0 : index
    %609 = vector.load %arg5[%c2_604, %c0_605, %c0_606] : memref<3x16x32xf32, #tpu.memory_space<vmem>>, vector<1x16x32xf32>
    %610 = vector.shape_cast %609 : vector<1x16x32xf32> to vector<16x32xf32>
    %cst_607 = arith.constant dense<0.000000e+00> : vector<8x32xf32>
    %611 = tpu.matmul %608, %610, %cst_607 {dimension_numbers = #tpu.dot_dimension_numbers<[1], [0], [0], [1], [0, 0, 1, 1], [], []>} : vector<8x16xf32>, vector<16x32xf32>, vector<8x32xf32> -> vector<8x32xf32>
    %612 = arith.addf %607, %611 : vector<8x32xf32>
    %cst_608 = arith.constant 0.000000e+00 : f32
    %613 = vector.broadcast %cst_608 : f32 to vector<8x32xf32>
    %c1_609 = arith.constant 1 : index
    %c0_610 = arith.constant 0 : index
    %614 = tpu.strided_load %arg10[%c1_609, %c0_610] {strides = array<i32: 2, 1>} : memref<136x32xf32, #tpu.memory_space<vmem>>, vector<8x16xf32>
    %c0_611 = arith.constant 0 : index
    %c0_612 = arith.constant 0 : index
    %c0_613 = arith.constant 0 : index
    %615 = vector.load %arg5[%c0_611, %c0_612, %c0_613] : memref<3x16x32xf32, #tpu.memory_space<vmem>>, vector<1x16x32xf32>
    %616 = vector.shape_cast %615 : vector<1x16x32xf32> to vector<16x32xf32>
    %cst_614 = arith.constant dense<0.000000e+00> : vector<8x32xf32>
    %617 = tpu.matmul %614, %616, %cst_614 {dimension_numbers = #tpu.dot_dimension_numbers<[1], [0], [0], [1], [0, 0, 1, 1], [], []>} : vector<8x16xf32>, vector<16x32xf32>, vector<8x32xf32> -> vector<8x32xf32>
    %618 = arith.addf %613, %617 : vector<8x32xf32>
    %c2_615 = arith.constant 2 : index
    %c0_616 = arith.constant 0 : index
    %619 = tpu.strided_load %arg10[%c2_615, %c0_616] {strides = array<i32: 2, 1>} : memref<136x32xf32, #tpu.memory_space<vmem>>, vector<8x16xf32>
    %c1_617 = arith.constant 1 : index
    %c0_618 = arith.constant 0 : index
    %c0_619 = arith.constant 0 : index
    %620 = vector.load %arg5[%c1_617, %c0_618, %c0_619] : memref<3x16x32xf32, #tpu.memory_space<vmem>>, vector<1x16x32xf32>
    %621 = vector.shape_cast %620 : vector<1x16x32xf32> to vector<16x32xf32>
    %cst_620 = arith.constant dense<0.000000e+00> : vector<8x32xf32>
    %622 = tpu.matmul %619, %621, %cst_620 {dimension_numbers = #tpu.dot_dimension_numbers<[1], [0], [0], [1], [0, 0, 1, 1], [], []>} : vector<8x16xf32>, vector<16x32xf32>, vector<8x32xf32> -> vector<8x32xf32>
    %623 = arith.addf %618, %622 : vector<8x32xf32>
    %c3_621 = arith.constant 3 : index
    %c0_622 = arith.constant 0 : index
    %624 = tpu.strided_load %arg10[%c3_621, %c0_622] {strides = array<i32: 2, 1>} : memref<136x32xf32, #tpu.memory_space<vmem>>, vector<8x16xf32>
    %c2_623 = arith.constant 2 : index
    %c0_624 = arith.constant 0 : index
    %c0_625 = arith.constant 0 : index
    %625 = vector.load %arg5[%c2_623, %c0_624, %c0_625] : memref<3x16x32xf32, #tpu.memory_space<vmem>>, vector<1x16x32xf32>
    %626 = vector.shape_cast %625 : vector<1x16x32xf32> to vector<16x32xf32>
    %cst_626 = arith.constant dense<0.000000e+00> : vector<8x32xf32>
    %627 = tpu.matmul %624, %626, %cst_626 {dimension_numbers = #tpu.dot_dimension_numbers<[1], [0], [0], [1], [0, 0, 1, 1], [], []>} : vector<8x16xf32>, vector<16x32xf32>, vector<8x32xf32> -> vector<8x32xf32>
    %628 = arith.addf %623, %627 : vector<8x32xf32>
    %629 = arith.maximumf %612, %628 : vector<8x32xf32>
    %c3_627 = arith.constant 3 : index
    %c0_628 = arith.constant 0 : index
    %630 = vector.load %arg8[%c3_627, %c0_628] : memref<8x32xf32, #tpu.memory_space<vmem>>, vector<1x32xf32>
    %631 = vector.broadcast %630 : vector<1x32xf32> to vector<8x32xf32>
    %632 = arith.cmpf oge, %629, %631 : vector<8x32xf32>
    %cst_629 = arith.constant 1.000000e+00 : f32
    %cst_630 = arith.constant -1.000000e+00 : f32
    %633 = vector.broadcast %cst_629 : f32 to vector<8x32xf32>
    %634 = vector.broadcast %cst_630 : f32 to vector<8x32xf32>
    %635 = arith.select %632, %633, %634 : vector<8x32xi1>, vector<8x32xf32>
    %cst_631 = arith.constant 0.000000e+00 : f32
    %636 = vector.broadcast %cst_631 : f32 to vector<1x32xf32>
    %c0_632 = arith.constant 0 : index
    %c0_633 = arith.constant 0 : index
    %637 = vector.load %arg10[%c0_632, %c0_633] : memref<136x32xf32, #tpu.memory_space<vmem>>, vector<1x32xf32>
    tpu.vector_store %arg10[%c0_632, %c0_633], %636 {strides = array<i32>} : memref<136x32xf32, #tpu.memory_space<vmem>>, vector<1x32xf32>,
    %c9_634 = arith.constant 9 : index
    %c0_635 = arith.constant 0 : index
    %638 = vector.load %arg10[%c9_634, %c0_635] : memref<136x32xf32, #tpu.memory_space<vmem>>, vector<1x32xf32>
    tpu.vector_store %arg10[%c9_634, %c0_635], %636 {strides = array<i32>} : memref<136x32xf32, #tpu.memory_space<vmem>>, vector<1x32xf32>,
    %c1_636 = arith.constant 1 : index
    %c0_637 = arith.constant 0 : index
    %639 = vector.load %arg10[%c1_636, %c0_637] : memref<136x32xf32, #tpu.memory_space<vmem>>, vector<8x32xf32>
    tpu.vector_store %arg10[%c1_636, %c0_637], %635 {strides = array<i32>} : memref<136x32xf32, #tpu.memory_space<vmem>>, vector<8x32xf32>,
    %cst_638 = arith.constant 0.000000e+00 : f32
    %640 = vector.broadcast %cst_638 : f32 to vector<4x32xf32>
    %c0_639 = arith.constant 0 : index
    %c0_640 = arith.constant 0 : index
    %641 = tpu.strided_load %arg10[%c0_639, %c0_640] {strides = array<i32: 2, 1>} : memref<136x32xf32, #tpu.memory_space<vmem>>, vector<4x32xf32>
    %c0_641 = arith.constant 0 : index
    %c0_642 = arith.constant 0 : index
    %c0_643 = arith.constant 0 : index
    %642 = vector.load %arg6[%c0_641, %c0_642, %c0_643] : memref<3x32x32xf32, #tpu.memory_space<vmem>>, vector<1x32x32xf32>
    %643 = vector.shape_cast %642 : vector<1x32x32xf32> to vector<32x32xf32>
    %cst_644 = arith.constant dense<0.000000e+00> : vector<4x32xf32>
    %644 = tpu.matmul %641, %643, %cst_644 {dimension_numbers = #tpu.dot_dimension_numbers<[1], [0], [0], [1], [0, 0, 1, 1], [], []>} : vector<4x32xf32>, vector<32x32xf32>, vector<4x32xf32> -> vector<4x32xf32>
    %645 = arith.addf %640, %644 : vector<4x32xf32>
    %c1_645 = arith.constant 1 : index
    %c0_646 = arith.constant 0 : index
    %646 = tpu.strided_load %arg10[%c1_645, %c0_646] {strides = array<i32: 2, 1>} : memref<136x32xf32, #tpu.memory_space<vmem>>, vector<4x32xf32>
    %c1_647 = arith.constant 1 : index
    %c0_648 = arith.constant 0 : index
    %c0_649 = arith.constant 0 : index
    %647 = vector.load %arg6[%c1_647, %c0_648, %c0_649] : memref<3x32x32xf32, #tpu.memory_space<vmem>>, vector<1x32x32xf32>
    %648 = vector.shape_cast %647 : vector<1x32x32xf32> to vector<32x32xf32>
    %cst_650 = arith.constant dense<0.000000e+00> : vector<4x32xf32>
    %649 = tpu.matmul %646, %648, %cst_650 {dimension_numbers = #tpu.dot_dimension_numbers<[1], [0], [0], [1], [0, 0, 1, 1], [], []>} : vector<4x32xf32>, vector<32x32xf32>, vector<4x32xf32> -> vector<4x32xf32>
    %650 = arith.addf %645, %649 : vector<4x32xf32>
    %c2_651 = arith.constant 2 : index
    %c0_652 = arith.constant 0 : index
    %651 = tpu.strided_load %arg10[%c2_651, %c0_652] {strides = array<i32: 2, 1>} : memref<136x32xf32, #tpu.memory_space<vmem>>, vector<4x32xf32>
    %c2_653 = arith.constant 2 : index
    %c0_654 = arith.constant 0 : index
    %c0_655 = arith.constant 0 : index
    %652 = vector.load %arg6[%c2_653, %c0_654, %c0_655] : memref<3x32x32xf32, #tpu.memory_space<vmem>>, vector<1x32x32xf32>
    %653 = vector.shape_cast %652 : vector<1x32x32xf32> to vector<32x32xf32>
    %cst_656 = arith.constant dense<0.000000e+00> : vector<4x32xf32>
    %654 = tpu.matmul %651, %653, %cst_656 {dimension_numbers = #tpu.dot_dimension_numbers<[1], [0], [0], [1], [0, 0, 1, 1], [], []>} : vector<4x32xf32>, vector<32x32xf32>, vector<4x32xf32> -> vector<4x32xf32>
    %655 = arith.addf %650, %654 : vector<4x32xf32>
    %cst_657 = arith.constant 0.000000e+00 : f32
    %656 = vector.broadcast %cst_657 : f32 to vector<4x32xf32>
    %c1_658 = arith.constant 1 : index
    %c0_659 = arith.constant 0 : index
    %657 = tpu.strided_load %arg10[%c1_658, %c0_659] {strides = array<i32: 2, 1>} : memref<136x32xf32, #tpu.memory_space<vmem>>, vector<4x32xf32>
    %c0_660 = arith.constant 0 : index
    %c0_661 = arith.constant 0 : index
    %c0_662 = arith.constant 0 : index
    %658 = vector.load %arg6[%c0_660, %c0_661, %c0_662] : memref<3x32x32xf32, #tpu.memory_space<vmem>>, vector<1x32x32xf32>
    %659 = vector.shape_cast %658 : vector<1x32x32xf32> to vector<32x32xf32>
    %cst_663 = arith.constant dense<0.000000e+00> : vector<4x32xf32>
    %660 = tpu.matmul %657, %659, %cst_663 {dimension_numbers = #tpu.dot_dimension_numbers<[1], [0], [0], [1], [0, 0, 1, 1], [], []>} : vector<4x32xf32>, vector<32x32xf32>, vector<4x32xf32> -> vector<4x32xf32>
    %661 = arith.addf %656, %660 : vector<4x32xf32>
    %c2_664 = arith.constant 2 : index
    %c0_665 = arith.constant 0 : index
    %662 = tpu.strided_load %arg10[%c2_664, %c0_665] {strides = array<i32: 2, 1>} : memref<136x32xf32, #tpu.memory_space<vmem>>, vector<4x32xf32>
    %c1_666 = arith.constant 1 : index
    %c0_667 = arith.constant 0 : index
    %c0_668 = arith.constant 0 : index
    %663 = vector.load %arg6[%c1_666, %c0_667, %c0_668] : memref<3x32x32xf32, #tpu.memory_space<vmem>>, vector<1x32x32xf32>
    %664 = vector.shape_cast %663 : vector<1x32x32xf32> to vector<32x32xf32>
    %cst_669 = arith.constant dense<0.000000e+00> : vector<4x32xf32>
    %665 = tpu.matmul %662, %664, %cst_669 {dimension_numbers = #tpu.dot_dimension_numbers<[1], [0], [0], [1], [0, 0, 1, 1], [], []>} : vector<4x32xf32>, vector<32x32xf32>, vector<4x32xf32> -> vector<4x32xf32>
    %666 = arith.addf %661, %665 : vector<4x32xf32>
    %c3_670 = arith.constant 3 : index
    %c0_671 = arith.constant 0 : index
    %667 = tpu.strided_load %arg10[%c3_670, %c0_671] {strides = array<i32: 2, 1>} : memref<136x32xf32, #tpu.memory_space<vmem>>, vector<4x32xf32>
    %c2_672 = arith.constant 2 : index
    %c0_673 = arith.constant 0 : index
    %c0_674 = arith.constant 0 : index
    %668 = vector.load %arg6[%c2_672, %c0_673, %c0_674] : memref<3x32x32xf32, #tpu.memory_space<vmem>>, vector<1x32x32xf32>
    %669 = vector.shape_cast %668 : vector<1x32x32xf32> to vector<32x32xf32>
    %cst_675 = arith.constant dense<0.000000e+00> : vector<4x32xf32>
    %670 = tpu.matmul %667, %669, %cst_675 {dimension_numbers = #tpu.dot_dimension_numbers<[1], [0], [0], [1], [0, 0, 1, 1], [], []>} : vector<4x32xf32>, vector<32x32xf32>, vector<4x32xf32> -> vector<4x32xf32>
    %671 = arith.addf %666, %670 : vector<4x32xf32>
    %672 = arith.maximumf %655, %671 : vector<4x32xf32>
    %c4_676 = arith.constant 4 : index
    %c0_677 = arith.constant 0 : index
    %673 = vector.load %arg8[%c4_676, %c0_677] : memref<8x32xf32, #tpu.memory_space<vmem>>, vector<1x32xf32>
    %674 = vector.broadcast %673 : vector<1x32xf32> to vector<4x32xf32>
    %675 = arith.cmpf oge, %672, %674 : vector<4x32xf32>
    %cst_678 = arith.constant 1.000000e+00 : f32
    %cst_679 = arith.constant -1.000000e+00 : f32
    %676 = vector.broadcast %cst_678 : f32 to vector<4x32xf32>
    %677 = vector.broadcast %cst_679 : f32 to vector<4x32xf32>
    %678 = arith.select %675, %676, %677 : vector<4x32xi1>, vector<4x32xf32>
    %cst_680 = arith.constant 0.000000e+00 : f32
    %679 = vector.broadcast %cst_680 : f32 to vector<1x32xf32>
    %c0_681 = arith.constant 0 : index
    %c0_682 = arith.constant 0 : index
    %680 = vector.load %arg10[%c0_681, %c0_682] : memref<136x32xf32, #tpu.memory_space<vmem>>, vector<1x32xf32>
    tpu.vector_store %arg10[%c0_681, %c0_682], %679 {strides = array<i32>} : memref<136x32xf32, #tpu.memory_space<vmem>>, vector<1x32xf32>,
    %c5_683 = arith.constant 5 : index
    %c0_684 = arith.constant 0 : index
    %681 = vector.load %arg10[%c5_683, %c0_684] : memref<136x32xf32, #tpu.memory_space<vmem>>, vector<1x32xf32>
    tpu.vector_store %arg10[%c5_683, %c0_684], %679 {strides = array<i32>} : memref<136x32xf32, #tpu.memory_space<vmem>>, vector<1x32xf32>,
    %c1_685 = arith.constant 1 : index
    %c0_686 = arith.constant 0 : index
    %682 = vector.load %arg10[%c1_685, %c0_686] : memref<136x32xf32, #tpu.memory_space<vmem>>, vector<4x32xf32>
    tpu.vector_store %arg10[%c1_685, %c0_686], %678 {strides = array<i32>} : memref<136x32xf32, #tpu.memory_space<vmem>>, vector<4x32xf32>,
    %cst_687 = arith.constant 0.000000e+00 : f32
    %683 = vector.broadcast %cst_687 : f32 to vector<4x5xf32>
    %c0_688 = arith.constant 0 : index
    %c0_689 = arith.constant 0 : index
    %684 = vector.load %arg10[%c0_688, %c0_689] : memref<136x32xf32, #tpu.memory_space<vmem>>, vector<4x32xf32>
    %c0_690 = arith.constant 0 : index
    %c0_691 = arith.constant 0 : index
    %c0_692 = arith.constant 0 : index
    %685 = vector.load %arg7[%c0_690, %c0_691, %c0_692] : memref<3x32x5xf32, #tpu.memory_space<vmem>>, vector<1x32x5xf32>
    %686 = vector.shape_cast %685 : vector<1x32x5xf32> to vector<32x5xf32>
    %cst_693 = arith.constant dense<0.000000e+00> : vector<4x5xf32>
    %687 = tpu.matmul %684, %686, %cst_693 {dimension_numbers = #tpu.dot_dimension_numbers<[1], [0], [0], [1], [0, 0, 1, 1], [], []>} : vector<4x32xf32>, vector<32x5xf32>, vector<4x5xf32> -> vector<4x5xf32>
    %688 = arith.addf %683, %687 : vector<4x5xf32>
    %c1_694 = arith.constant 1 : index
    %c0_695 = arith.constant 0 : index
    %689 = vector.load %arg10[%c1_694, %c0_695] : memref<136x32xf32, #tpu.memory_space<vmem>>, vector<4x32xf32>
    %c1_696 = arith.constant 1 : index
    %c0_697 = arith.constant 0 : index
    %c0_698 = arith.constant 0 : index
    %690 = vector.load %arg7[%c1_696, %c0_697, %c0_698] : memref<3x32x5xf32, #tpu.memory_space<vmem>>, vector<1x32x5xf32>
    %691 = vector.shape_cast %690 : vector<1x32x5xf32> to vector<32x5xf32>
    %cst_699 = arith.constant dense<0.000000e+00> : vector<4x5xf32>
    %692 = tpu.matmul %689, %691, %cst_699 {dimension_numbers = #tpu.dot_dimension_numbers<[1], [0], [0], [1], [0, 0, 1, 1], [], []>} : vector<4x32xf32>, vector<32x5xf32>, vector<4x5xf32> -> vector<4x5xf32>
    %693 = arith.addf %688, %692 : vector<4x5xf32>
    %c2_700 = arith.constant 2 : index
    %c0_701 = arith.constant 0 : index
    %694 = vector.load %arg10[%c2_700, %c0_701] : memref<136x32xf32, #tpu.memory_space<vmem>>, vector<4x32xf32>
    %c2_702 = arith.constant 2 : index
    %c0_703 = arith.constant 0 : index
    %c0_704 = arith.constant 0 : index
    %695 = vector.load %arg7[%c2_702, %c0_703, %c0_704] : memref<3x32x5xf32, #tpu.memory_space<vmem>>, vector<1x32x5xf32>
    %696 = vector.shape_cast %695 : vector<1x32x5xf32> to vector<32x5xf32>
    %cst_705 = arith.constant dense<0.000000e+00> : vector<4x5xf32>
    %697 = tpu.matmul %694, %696, %cst_705 {dimension_numbers = #tpu.dot_dimension_numbers<[1], [0], [0], [1], [0, 0, 1, 1], [], []>} : vector<4x32xf32>, vector<32x5xf32>, vector<4x5xf32> -> vector<4x5xf32>
    %698 = arith.addf %693, %697 : vector<4x5xf32>
    %cst_706 = arith.constant dense<0xFF800000> : vector<5xf32>
    %699 = vector.multi_reduction <maximumf>, %698, %cst_706 [0] : vector<4x5xf32> to vector<5xf32>
    %700 = vector.shape_cast %699 : vector<5xf32> to vector<1x5xf32>
    %c5_707 = arith.constant 5 : index
    %c0_708 = arith.constant 0 : index
    %701 = vector.load %arg8[%c5_707, %c0_708] : memref<8x32xf32, #tpu.memory_space<vmem>>, vector<1x5xf32>
    %c6_709 = arith.constant 6 : index
    %c0_710 = arith.constant 0 : index
    %702 = vector.load %arg8[%c6_709, %c0_710] : memref<8x32xf32, #tpu.memory_space<vmem>>, vector<1x5xf32>
    %703 = arith.mulf %701, %700 : vector<1x5xf32>
    %704 = arith.addf %703, %702 : vector<1x5xf32>
    %c1_711 = arith.constant 1 : index
    %c0_712 = arith.constant 0 : index
    %c0_713 = arith.constant 0 : index
    %705 = vector.load %arg9[%c1_711, %c0_712, %c0_713] : memref<2x1x5xf32, #tpu.memory_space<vmem>>, vector<1x1x5xf32>
    %706 = vector.shape_cast %705 : vector<1x1x5xf32> to vector<1x5xf32>
    %707 = vector.shape_cast %704 : vector<1x5xf32> to vector<1x1x5xf32>
    tpu.vector_store %arg9[%c1_711, %c0_712, %c0_713], %707 {strides = array<i32>} : memref<2x1x5xf32, #tpu.memory_space<vmem>>, vector<1x1x5xf32>,
    return
  }
  func.func @transform_0(%arg0: i32) -> (i32, i32, i32) {
    %c0_i32 = arith.constant 0 : i32
    %c0_i32_0 = arith.constant 0 : i32
    %c0_i32_1 = arith.constant 0 : i32
    return %arg0, %c0_i32, %c0_i32_0 : i32, i32, i32
  }
  func.func @transform_1(%arg0: i32) -> (i32, i32, i32) {
    %c0_i32 = arith.constant 0 : i32
    %c0_i32_0 = arith.constant 0 : i32
    %c0_i32_1 = arith.constant 0 : i32
    %c0_i32_2 = arith.constant 0 : i32
    return %c0_i32, %c0_i32_0, %c0_i32_1 : i32, i32, i32
  }
  func.func @transform_2(%arg0: i32) -> (i32, i32, i32) {
    %c0_i32 = arith.constant 0 : i32
    %c0_i32_0 = arith.constant 0 : i32
    %c0_i32_1 = arith.constant 0 : i32
    %c0_i32_2 = arith.constant 0 : i32
    return %c0_i32, %c0_i32_0, %c0_i32_1 : i32, i32, i32
  }
  func.func @transform_3(%arg0: i32) -> (i32, i32, i32) {
    %c0_i32 = arith.constant 0 : i32
    %c0_i32_0 = arith.constant 0 : i32
    %c0_i32_1 = arith.constant 0 : i32
    %c0_i32_2 = arith.constant 0 : i32
    return %c0_i32, %c0_i32_0, %c0_i32_1 : i32, i32, i32
  }
  func.func @transform_4(%arg0: i32) -> (i32, i32, i32) {
    %c0_i32 = arith.constant 0 : i32
    %c0_i32_0 = arith.constant 0 : i32
    %c0_i32_1 = arith.constant 0 : i32
    %c0_i32_2 = arith.constant 0 : i32
    return %c0_i32, %c0_i32_0, %c0_i32_1 : i32, i32, i32
  }
  func.func @transform_5(%arg0: i32) -> (i32, i32, i32) {
    %c0_i32 = arith.constant 0 : i32
    %c0_i32_0 = arith.constant 0 : i32
    %c0_i32_1 = arith.constant 0 : i32
    %c0_i32_2 = arith.constant 0 : i32
    return %c0_i32, %c0_i32_0, %c0_i32_1 : i32, i32, i32
  }
  func.func @transform_6(%arg0: i32) -> (i32, i32, i32) {
    %c0_i32 = arith.constant 0 : i32
    %c0_i32_0 = arith.constant 0 : i32
    %c0_i32_1 = arith.constant 0 : i32
    %c0_i32_2 = arith.constant 0 : i32
    return %c0_i32, %c0_i32_0, %c0_i32_1 : i32, i32, i32
  }
  func.func @transform_7(%arg0: i32) -> (i32, i32) {
    %c0_i32 = arith.constant 0 : i32
    %c0_i32_0 = arith.constant 0 : i32
    %c0_i32_1 = arith.constant 0 : i32
    return %c0_i32, %c0_i32_0 : i32, i32
  }
  func.func @transform_8(%arg0: i32) -> (i32, i32, i32) {
    %c0_i32 = arith.constant 0 : i32
    %c0_i32_0 = arith.constant 0 : i32
    %c0_i32_1 = arith.constant 0 : i32
    return %arg0, %c0_i32, %c0_i32_0 : i32, i32, i32
  }
}

</mosaic_0001>

<bundles_post_ra>
// kernel: ecg_xnor_forward.1
= control target key start
LH: loop header
LB: loop body
LE: loop exit
PB: predicated region body
PF: predicated region fallthrough
CT: control target
= control target key end

     0   :  { %13 = vsyncpa [#allocation4], 0  ;;  %s11153_s0 = inlined_call_operand.vmem [shape: f32[4,128,1], index: 0, kind: input, shape index: {}]   ;;  %s11154_s1 = inlined_call_operand.vmem [shape: f32[7,1,8], index: 1, kind: input, shape index: {}]   ;;  %s11155_s2 = inlined_call_operand.vmem [shape: f32[5,8,16], index: 2, kind: input, shape index: {}]   ;;  %s11156_s3 = inlined_call_operand.vmem [shape: f32[5,16,16], index: 3, kind: input, shape index: {}]   ;;  %s11157_s4 = inlined_call_operand.vmem [shape: f32[3,16,32], index: 4, kind: input, shape index: {}]   ;;  %s11158_s5 = inlined_call_operand.vmem [shape: f32[3,32,32], index: 5, kind: input, shape index: {}]   ;;  %s11159_s6 = inlined_call_operand.vmem [shape: f32[3,32,5], index: 6, kind: input, shape index: {}]   ;;  %s11160_s7 = inlined_call_operand.vmem [shape: f32[8,32], index: 7, kind: input, shape index: {}]   ;;  %s11161_s8 = inlined_call_operand.hbm [shape: f32[4,1,5], index: 8, kind: output, shape index: {}]  }
   0x1   :  { %15 = vsyncpa [#allocation4 + $0x1], 0  ;;  %s9276_s27 = smov 0   ;;  %s9278_s28 = smov 0  }
   0x2   :  { %s9280_s29 = smov 0   ;;  %s9282_s30 = smov 0  }
   0x3 LB: > { %s9297_s9 = sadd.s32 4294967295, %s9222_s30   ;;  %s7935_s10 = sadd.s32 4294967294, %s9222_s30   ;;  %s9222_s30 = sphi %s9282_s30, %s11185_s30   ;;  %s9218_s29 = sphi %s9280_s29, %s11184_s29   ;;  %s9214_s28 = sphi %s9278_s28, %s11183_s28   ;;  %s9210_s27 = sphi %s9276_s27, %s11182_s27  }
   0x4   : > { %s9301_s11 = sadd.s32 1, %s9222_s30   ;;  %s201_s12 = sadd.s32 1, %s9218_s29 }
   0x5   : > { %s198_s13 = ssub.s32 %s9222_s30, %s9301_s11  ;;  %p211_p0 = scmp.ne.s32.totalorder %s9218_s29, %s9214_s28 }
   0x6   : > { %p199_p1 = scmp.eq.s32.totalorder %s198_s13, 0  ;;  %p212_p2 = scmp.eq.s32.totalorder %s9297_s9, 1 }
   0x7   : > { %p217_p3 = scmp.ne.s32.totalorder %s9214_s28, %s9210_s27  ;;  %p218_p4 = scmp.eq.s32.totalorder %s7935_s10, 1 }
   0x8   : > { %s9312_s14 = scalar_select %p199_p1, %s9218_s29, %s201_s12  }
   0x9   : > { %p9314_p5 = por %p212_p2, %p211_p0  ;;  %p9318_p6 = por %p218_p4, %p217_p3 }
   0xa   : > { %p7938_p7 = scmp.ge.s32.totalorder %s9222_s30, 1  ;;  %p267_p8 = scmp.lt.s32.totalorder %s9222_s30, 3 }
   0xc   : > { %p268_p9 = pnand %p7938_p7, %p267_p8 }
   0xe   : > { %271 = sbr.rel (%p268_p9) target bundleno = 2579 (0xa13), region = 52 }
  0x13   : > { %s7940_s17 = sshll.u32 %s9297_s9, 1  ;;  %vm310_vm0 = vcmask 2048   ;;  %v9224_v0 = vmov 0   ;;  %v11162_v1 = vmov 0.0   ;;  %vm329_vm1 = vcmask 7168   ;;  %s299_s12 = sand.u32 1, %s9214_s28  }
  0x14   : > { %9153 = vset.pattern.permute.xlu1 %v9224_v0  ;;  %9152 = vset.pattern.permute.xlu0 %v9224_v0  ;;  %p303_p10 = scmp.lt.s32.totalorder %s7940_s17, 3  ;;  %311 = vst.msk [vmem:[#allocation2] sm:$0x7] %vm310_vm0, %v11162_v1  ;;  %312 = vst.msk [vmem:[#allocation2 + $0x83] sm:$0x7] %vm310_vm0, %v11162_v1  ;;  %vm1101_vm2 = vcmask 58368  }
  0x15   : > { %vm1104_vm3 = vcmask 64512   ;;  %vm2109_vm12 = vcmask 123904   ;;  %vm2112_vm13 = vcmask 130048   ;;  %s8216_s25 = sshll.u32 %s9297_s9, 5  ;;  %s11113_s9 = scalar_lea.sflag [#allocation4], %s299_s12 }
  0x16   : > { %s11187_s17 = smov (!%p303_p10, %s7940_s17), 3  ;;  %s9228_s20 = smov [#allocation3]  }
  0x17   : > { %s8215_s18 = sshll.u32 %s11187_s17, 7  ;;  %s9166_s23 = sshll.u32 %s9228_s20, 4  ;;  %s9167_s23 = int_to_ptr.vmem [resolvable:$false] %s9166_s23 }
  0x18   : > { %s9332_s21 = scalar_lea.vmem %s11153_s0, %s8215_s18  ;;  %s7939_s18 = sshll.u32 %s299_s12, 1 }
  0x19   : > { %v322_v2 = vld [vmem:[%s9332_s21 + $0x48] sm:$0xff]  ;;  %v323_v3 = vld [vmem:[%s9332_s21 + $0x50] sm:$0xff]  ;;  %v324_v4 = vld [vmem:[%s9332_s21 + $0x58] sm:$0xff]  ;;  %s10748_s22 = scalar_lea.vmem [#allocation3], %s7939_s18  ;;  %s11105_s18 = scalar_lea.hbm %s11161_s8, %s8216_s25 }
  0x1a   : > { %339 = vst.msk [vmem:[#allocation2 + $0x4b] sm:$0xff] %vm329_vm1, %v322_v2  ;;  %340 = vst.msk [vmem:[#allocation2 + $0x53] sm:$0xff] %vm329_vm1, %v323_v3  ;;  %v318_v5 = vld [vmem:[%s9332_s21 + $0x28] sm:$0xff]  ;;  %v319_v6 = vld [vmem:[%s9332_s21 + $0x30] sm:$0xff]  ;;  %s7873_s26 = sshll.u32 %s10748_s22, 4  ;;  %s9168_s24 = scalar_lea.vmem %s9167_s23, 64  ;;  %s11107_s26 = int_to_ptr.vmem [resolvable:$true] %s7873_s26 }
  0x1b   : > { %341 = vst.msk [vmem:[#allocation2 + $0x5b] sm:$0xff] %vm329_vm1, %v324_v4  ;;  %v320_v7 = vld [vmem:[%s9332_s21 + $0x38] sm:$0xff]  ;;  %335 = vst.msk [vmem:[#allocation2 + $0x2b] sm:$0xff] %vm329_vm1, %v318_v5  ;;  %v321_v8 = vld [vmem:[%s9332_s21 + $0x40] sm:$0xff]  ;;  %s9162_s19 = scalar_lea.vmem %s11107_s26, 32  ;;  %p9169_p0 = scmp.lt.s32.totalorder %s11107_s26, %s9167_s23 }
  0x1c   : > { %336 = vst.msk [vmem:[#allocation2 + $0x33] sm:$0xff] %vm329_vm1, %v319_v6  ;;  %337 = vst.msk [vmem:[#allocation2 + $0x3b] sm:$0xff] %vm329_vm1, %v320_v7  ;;  %v325_v9 = vld [vmem:[%s9332_s21 + $0x60] sm:$0xff]  ;;  %v326_v10 = vld [vmem:[%s9332_s21 + $0x68] sm:$0xff]  ;;  %p9163_p11 = scmp.ne.s32.totalorder %s11107_s26, %s9162_s19  ;;  %p9170_p1 = scmp.lt.s32.totalorder %s9168_s24, %s9162_s19 }
  0x1d   : > { %338 = vst.msk [vmem:[#allocation2 + $0x43] sm:$0xff] %vm329_vm1, %v321_v8  ;;  %342 = vst.msk [vmem:[#allocation2 + $0x63] sm:$0xff] %vm329_vm1, %v325_v9  ;;  %v327_v11 = vld [vmem:[%s9332_s21 + $0x70] sm:$0xff]  ;;  %v328_v12 = vld [vmem:[%s9332_s21 + $0x78] sm:$0xff] }
  0x1e   : > { %343 = vst.msk [vmem:[#allocation2 + $0x6b] sm:$0xff] %vm329_vm1, %v326_v10  ;;  %v314_v13 = vld [vmem:[%s9332_s21 + $0x8] sm:$0xff]  ;;  %344 = vst.msk [vmem:[#allocation2 + $0x73] sm:$0xff] %vm329_vm1, %v327_v11  ;;  %v315_v14 = vld [vmem:[%s9332_s21 + $0x10] sm:$0xff]  ;;  %p9164_p12 = pnand %p9163_p11, %p9314_p5  ;;  %p9171_p2 = por %p9170_p1, %p9169_p0 }
  0x1f   : > { %345 = vst.msk [vmem:[#allocation2 + $0x7b] sm:$0xff] %vm329_vm1, %v328_v12  ;;  %v316_v15 = vld [vmem:[%s9332_s21 + $0x18] sm:$0xff]  ;;  %331 = vst.msk [vmem:[#allocation2 + $0xb] sm:$0xff] %vm329_vm1, %v314_v13  ;;  %v313_v16 = vld [vmem:[%s9332_s21] sm:$0xff] }
  0x20   : > { %332 = vst.msk [vmem:[#allocation2 + $0x13] sm:$0xff] %vm329_vm1, %v315_v14  ;;  %333 = vst.msk [vmem:[#allocation2 + $0x1b] sm:$0xff] %vm329_vm1, %v316_v15  ;;  %v317_v17 = vld [vmem:[%s9332_s21 + $0x20] sm:$0xff]  ;;  %v8077_v28 = vld [vmem:[%s9332_s21 + $0xc8] sm:$0xff]  ;;  %p9165_p13 = pneg %p9164_p12 }
  0x21   : > { %330 = vst.msk [vmem:[#allocation2 + $0x3] sm:$0xff] %vm329_vm1, %v313_v16  ;;  %334 = vst.msk [vmem:[#allocation2 + $0x23] sm:$0xff] %vm329_vm1, %v317_v17  ;;  %v8078_v31 = vld [vmem:[%s9332_s21 + $0xd0] sm:$0xff]  ;;  %v8079_v32 = vld [vmem:[%s9332_s21 + $0xd8] sm:$0xff] }
  0x22   : > { %v356_v18 = vld [vmem:[#allocation2 + $0x50] ss:$2 sm:$0xff]  ;;  %v435_v22 = vld [vmem:[#allocation2 + $0x51] ss:$2 sm:$0xff]  ;;  %v8080_v38 = vld [vmem:[%s9332_s21 + $0xe0] sm:$0xff]  ;;  %p9172_p3 = pnand %p9171_p2, %p9165_p13 }
  0x23   : > { %389 = vperm.xlu1 %9153, %v356_v18   ;;  %v352_v19 = vld [vmem:[#allocation2 + $0x30] ss:$2 sm:$0xff]  ;;  %v431_v20 = vld [vmem:[#allocation2 + $0x31] ss:$2 sm:$0xff]  ;;  %v8081_v39 = vld [vmem:[%s9332_s21 + $0xe8] sm:$0xff] }
  0x24   : > { %379 = vperm.xlu0 %9152, %v352_v19   ;;  %v354_v21 = vld [vmem:[#allocation2 + $0x40] ss:$2 sm:$0xff]  ;;  %v433_v23 = vld [vmem:[#allocation2 + $0x41] ss:$2 sm:$0xff]  ;;  %v8082_v0 = vld [vmem:[%s9332_s21 + $0xf0] sm:$0xff] }
  0x25   : > { %v513_v26 = vld [vmem:[#allocation2 + $0x42] ss:$2 sm:$0xff]  ;;  %v511_v27 = vld [vmem:[#allocation2 + $0x32] ss:$2 sm:$0xff]  ;;  %v593_v33 = vld [vmem:[#allocation2 + $0x43] ss:$2 sm:$0xff] }
  0x26   : > { %v358_v29 = vld [vmem:[#allocation2 + $0x60] ss:$2 sm:$0xff]  ;;  %v9379_v36 = vld [vmem:[#allocation2 + $0x45] ss:$2 sm:$0xff]  ;;  %v9381_v37 = vld [vmem:[#allocation2 + $0x35] ss:$2 sm:$0xff] }
  0x27   : > { %459 = vperm.xlu1 %9153, %v431_v20   ;;  %v515_v30 = vld [vmem:[#allocation2 + $0x52] ss:$2 sm:$0xff]  ;;  %v437_v40 = vld [vmem:[#allocation2 + $0x61] ss:$2 sm:$0xff]  ;;  %v517_v41 = vld [vmem:[#allocation2 + $0x62] ss:$2 sm:$0xff] }
  0x28   : > { %384 = vperm.xlu0 %9152, %v354_v21   ;;  %v9366_v24 = vld [vmem:[#allocation2] ss:$2 sm:$0xff]  ;;  %v9368_v25 = vld [vmem:[#allocation2 + $0x1] ss:$2 sm:$0xff]  ;;  %v360_v48 = vld [vmem:[#allocation2 + $0x70] ss:$2 sm:$0xff] }
  0x29   : > { %1102 = vst.msk [vmem:[#allocation2] sm:$0x3] %vm1101_vm2, %v11162_v1  ;;  %v9375_v34 = vld [vmem:[#allocation2 + $0x44] ss:$2 sm:$0xff]  ;;  %v9377_v35 = vld [vmem:[#allocation2 + $0x34] ss:$2 sm:$0xff] }
  0x2a   : > { %v595_v42 = vld [vmem:[#allocation2 + $0x53] ss:$2 sm:$0xff]  ;;  %v675_v43 = vld [vmem:[#allocation2 + $0x54] ss:$2 sm:$0xff]  ;;  %v597_v51 = vld [vmem:[#allocation2 + $0x63] ss:$2 sm:$0xff] }
  0x2b   : > { %469 = vperm.xlu1 %9153, %v435_v22   ;;  %v9385_v44 = vld [vmem:[#allocation2 + $0x55] ss:$2 sm:$0xff]  ;;  %v9389_v46 = vld [vmem:[#allocation2 + $0x46] ss:$2 sm:$0xff]  ;;  %v9391_v47 = vld [vmem:[#allocation2 + $0x36] ss:$2 sm:$0xff] }
  0x2c   : > { %464 = vperm.xlu0 %9152, %v433_v23   ;;  %v9387_v45 = vld [vmem:[#allocation2 + $0x75] ss:$2 sm:$0xff]  ;;  %v519_v50 = vld [vmem:[#allocation2 + $0x72] ss:$2 sm:$0xff]  ;;  %v757_v59 = vld [vmem:[#allocation2 + $0x65] ss:$2 sm:$0xff] }
  0x2d   : > { %v439_v49 = vld [vmem:[#allocation2 + $0x71] ss:$2 sm:$0xff]  ;;  %v677_v52 = vld [vmem:[#allocation2 + $0x64] ss:$2 sm:$0xff]  ;;  %v679_v63 = vld [vmem:[#allocation2 + $0x74] ss:$2 sm:$0xff] }
  0x2e   : > { %v9393_v53 = vld [vmem:[#allocation2 + $0x56] ss:$2 sm:$0xff]  ;;  %v9395_v54 = vld [vmem:[#allocation2 + $0x47] ss:$2 sm:$0xff]  ;;  %v9397_v55 = vld [vmem:[#allocation2 + $0x37] ss:$2 sm:$0xff] }
  0x2f   : > { %544 = vperm.xlu1 %9153, %v513_v26   ;;  %v9399_v56 = vld [vmem:[#allocation2 + $0x76] ss:$2 sm:$0xff]  ;;  %1103 = vst.msk [vmem:[#allocation2 + $0x42] sm:$0x3] %vm1101_vm2, %v11162_v1  ;;  %v9403_v57 = vld [vmem:[#allocation2 + $0x57] ss:$2 sm:$0xff] }
  0x30   : > { %539 = vperm.xlu0 %9152, %v511_v27   ;;  %v9405_v58 = vld [vmem:[#allocation2 + $0x77] ss:$2 sm:$0xff]  ;;  %4159 = vst.msk [vmem:[#allocation2 + $0x4b] sm:$0xff] %vm329_vm1, %v8077_v28  ;;  %v9408_v60 = vld [vmem:[#allocation2 + $0x66] ss:$2 sm:$0xff]  ;;  %4160 = vst.msk [vmem:[#allocation2 + $0x53] sm:$0xff] %vm329_vm1, %v8078_v31 }
  0x31   : > { %4132 = vst.msk [vmem:[#allocation2 + $0x83] sm:$0x7] %vm310_vm0, %v11162_v1  ;;  %v9412_v61 = vld [vmem:[#allocation2 + $0x67] ss:$2 sm:$0xff]  ;;  %v8083_v2 = vld [vmem:[%s9332_s21 + $0xf8] sm:$0xff] }
  0x32   : > { %4161 = vst.msk [vmem:[#allocation2 + $0x5b] sm:$0xff] %vm329_vm1, %v8079_v32  ;;  %4162 = vst.msk [vmem:[#allocation2 + $0x63] sm:$0xff] %vm329_vm1, %v8080_v38  ;;  %v599_v62 = vld [vmem:[#allocation2 + $0x73] ss:$2 sm:$0xff]  ;;  %v348_v4 = vld [vmem:[#allocation2 + $0x10] ss:$2 sm:$0xff] }
  0x33   : > { %394 = vperm.xlu1 %9153, %v358_v29   ;;  %4163 = vst.msk [vmem:[#allocation2 + $0x6b] sm:$0xff] %vm329_vm1, %v8081_v39  ;;  %4164 = vst.msk [vmem:[#allocation2 + $0x73] sm:$0xff] %vm329_vm1, %v8082_v0  ;;  %v591_v3 = vld [vmem:[#allocation2 + $0x33] ss:$2 sm:$0xff]  ;;  %v507_v6 = vld [vmem:[#allocation2 + $0x12] ss:$2 sm:$0xff] }
  0x34   : > { %549 = vperm.xlu0 %9152, %v515_v30   ;;  %4165 = vst.msk [vmem:[#allocation2 + $0x7b] sm:$0xff] %vm329_vm1, %v8083_v2  ;;  %v427_v5 = vld [vmem:[#allocation2 + $0x11] ss:$2 sm:$0xff]  ;;  %v505_v7 = vld [vmem:[#allocation2 + $0x2] ss:$2 sm:$0xff] }
  0x35   : > { %v350_v8 = vld [vmem:[#allocation2 + $0x20] ss:$2 sm:$0xff]  ;;  %v429_v10 = vld [vmem:[#allocation2 + $0x21] ss:$2 sm:$0xff] }
  0x36   : > { %v509_v9 = vld [vmem:[#allocation2 + $0x22] ss:$2 sm:$0xff]  ;;  %v587_v11 = vld [vmem:[#allocation2 + $0x13] ss:$2 sm:$0xff]  ;;  %v585_v12 = vld [vmem:[#allocation2 + $0x3] ss:$2 sm:$0xff] }
  0x37   : > { %474 = vperm.xlu1 %9153, %v437_v40   ;;  %v589_v13 = vld [vmem:[#allocation2 + $0x23] ss:$2 sm:$0xff]  ;;  %v667_v14 = vld [vmem:[#allocation2 + $0x14] ss:$2 sm:$0xff]  ;;  %v665_v15 = vld [vmem:[#allocation2 + $0x4] ss:$2 sm:$0xff] }
  0x38   : > { %399 = vperm.xlu0 %9152, %v360_v48   ;;  %v669_v16 = vld [vmem:[#allocation2 + $0x24] ss:$2 sm:$0xff]  ;;  %v747_v17 = vld [vmem:[#allocation2 + $0x15] ss:$2 sm:$0xff]  ;;  %v745_v18 = vld [vmem:[#allocation2 + $0x5] ss:$2 sm:$0xff] }
  0x39   : > { %v749_v19 = vld [vmem:[#allocation2 + $0x25] ss:$2 sm:$0xff]  ;;  %v827_v20 = vld [vmem:[#allocation2 + $0x16] ss:$2 sm:$0xff]  ;;  %v825_v21 = vld [vmem:[#allocation2 + $0x6] ss:$2 sm:$0xff] }
  0x3a   : > { %v1001_v22 = vld [vmem:[#allocation2 + $0x7] ss:$2 sm:$0xff]  ;;  %v829_v23 = vld [vmem:[#allocation2 + $0x26] ss:$2 sm:$0xff] }
  0x3b   : > { %554 = vperm.xlu1 %9153, %v517_v41   ;;  %v9445_v27 = vld [vmem:[%s11155_s2 + $0x8] sm:$0xff]  ;;  %v4171_v29 = vld [vmem:[#allocation2 + $0x50] ss:$2 sm:$0xff] }
  0x3c   : > { %479 = vperm.xlu0 %9152, %v439_v49   ;;  %9105 = vmatprep.subr.mxu1 %v9445_v27  ;;  %v4172_v30 = vld [vmem:[#allocation2 + $0x60] ss:$2 sm:$0xff]  ;;  %v4173_v41 = vld [vmem:[#allocation2 + $0x70] ss:$2 sm:$0xff] }
  0x3d   : > { %9106 = vmatpush3.msra.mxu1 %v9445_v27  ;;  %8523 = vmatprep.subr.mxu0 %v9445_v27  ;;  %v4314_v38 = vld [vmem:[#allocation2 + $0x62] ss:$2 sm:$0xff] }
  0x3e   : > { %8524 = vmatpush3.msra.mxu0 %v9445_v27 }
  0x3f   : > { %619 = vperm.xlu1 %9153, %v591_v3  }
  0x40   : > { %559 = vperm.xlu0 %9152, %v519_v50   ;;  %v4315_v50 = vld [vmem:[#allocation2 + $0x72] ss:$2 sm:$0xff] }
  0x43   : > { %629 = vperm.xlu1 %9153, %v595_v42   ;;  %v9464_v42 = vld [vmem:[%s11155_s2] sm:$0xff] }
  0x44   : > { %624 = vperm.xlu0 %9152, %v593_v33   ;;  %v4242_v33 = vld [vmem:[#allocation2 + $0x51] ss:$2 sm:$0xff]  ;;  %8531 = vmatprep.subr.mxu1 %v9464_v42 }
  0x47   : > { %639 = vperm.xlu1 %9153, %v599_v62  }
  0x48   : > { %634 = vperm.xlu0 %9152, %v597_v51  }
  0x4b   : > { %369 = vperm.xlu1 %9153, %v348_v4  }
  0x4c   : > { %364 = vperm.xlu0 %9152, %v9366_v24   ;;  %v1005_v24 = vld [vmem:[#allocation2 + $0x27] ss:$2 sm:$0xff] }
  0x4f   : > { %449 = vperm.xlu1 %9153, %v427_v5  }
  0x50   : > { %444 = vperm.xlu0 %9152, %v9368_v25   ;;  %v1003_v25 = vld [vmem:[#allocation2 + $0x17] ss:$2 sm:$0xff] }
  0x53   : > { %529 = vperm.xlu1 %9153, %v507_v6  }
  0x54   : > { %524 = vperm.xlu0 %9152, %v505_v7  }
  0x57   : > { %704 = vperm.xlu1 %9153, %v9375_v34   ;;  %v4243_v34 = vld [vmem:[#allocation2 + $0x61] ss:$2 sm:$0xff] }
  0x58   : > { %699 = vperm.xlu0 %9152, %v9377_v35  }
  0x5b   : > { %374 = vperm.xlu1 %9153, %v350_v8  }
  0x5c   : > { %709 = vperm.xlu0 %9152, %v675_v43   ;;  %v4385_v43 = vld [vmem:[#allocation2 + $0x63] ss:$2 sm:$0xff] }
  0x5f   : > { %534 = vperm.xlu1 %9153, %v509_v9  }
  0x60   : > { %454 = vperm.xlu0 %9152, %v429_v10  }
  0x63   : > { %719 = vperm.xlu1 %9153, %v679_v63  }
  0x64   : > { %714 = vperm.xlu0 %9152, %v677_v52  }
  0x67   : > { %609 = vperm.xlu1 %9153, %v587_v11   ;;  %v9526_v11 = vld [vmem:[%s11154_s1 + $0x1] ss:$0 sm:$0xff] }
  0x68   : > { %604 = vperm.xlu0 %9152, %v585_v12   ;;  %v9531_v12 = vld [vmem:[%s11154_s1] ss:$0 sm:$0xff] }
  0x6b   : > { %784 = vperm.xlu1 %9153, %v9379_v36  }
  0x6c   : > { %779 = vperm.xlu0 %9152, %v9381_v37   ;;  %v4313_v37 = vld [vmem:[#allocation2 + $0x52] ss:$2 sm:$0xff] }
  0x6f   : > { %614 = vperm.xlu1 %9153, %v589_v13  }
  0x70   : > { %789 = vperm.xlu0 %9152, %v9385_v44  }
  0x73   : > { %799 = vperm.xlu1 %9153, %v9387_v45  }
  0x74   : > { %794 = vperm.xlu0 %9152, %v757_v59  }
  0x77   : > { %689 = vperm.xlu1 %9153, %v667_v14   ;;  %v9538_v14 = vld [vmem:[%s11154_s1 + $0x2] ss:$0 sm:$0xff] }
  0x78   : > { %684 = vperm.xlu0 %9152, %v665_v15  }
  0x7b   : > { %864 = vperm.xlu1 %9153, %v9389_v46   ;;  %v4244_v46 = vld [vmem:[#allocation2 + $0x71] ss:$2 sm:$0xff] }
  0x7c   : > { %859 = vperm.xlu0 %9152, %v9391_v47   ;;  %v9472_v47 = vld [vmem:[%s11155_s2 + $0x10] sm:$0xff] }
  0x7d   : > { %8539 = vmatprep.subr.mxu0 %v9472_v47 }
  0x7f   : > { %694 = vperm.xlu1 %9153, %v669_v16  }
  0x80   : > { %869 = vperm.xlu0 %9152, %v9393_v53   ;;  %v4384_v53 = vld [vmem:[#allocation2 + $0x53] ss:$2 sm:$0xff] }
  0x83   : > { %879 = vperm.xlu1 %9153, %v9399_v56  }
  0x84   : > { %874 = vperm.xlu0 %9152, %v9408_v60  }
  0x87   : > { %769 = vperm.xlu1 %9153, %v747_v17  }
  0x88   : > { %764 = vperm.xlu0 %9152, %v745_v18  }
  0x8b   : > { %1038 = vperm.xlu1 %9153, %v9395_v54  }
  0x8c   : > { %1033 = vperm.xlu0 %9152, %v9397_v55  }
  0x8f   : > { %774 = vperm.xlu1 %9153, %v749_v19  }
  0x90   : > { %1043 = vperm.xlu0 %9152, %v9403_v57  }
  0x93   : > { %1053 = vperm.xlu1 %9153, %v9405_v58  }
  0x94   : > { %1048 = vperm.xlu0 %9152, %v9412_v61  }
  0x97   : > { %849 = vperm.xlu1 %9153, %v827_v20  }
  0x98   : > { %844 = vperm.xlu0 %9152, %v825_v21  }
  0x9b   : > { %1018 = vperm.xlu1 %9153, %v1001_v22  }
  0x9c   : > { %854 = vperm.xlu0 %9152, %v829_v23  }
  0x9e   : > { %v9440_v26 = vpop.permute.xlu1 %389 }
  0x9f   : > { %v9447_v28 = vpop.permute.xlu0 %379  ;;  %1028 = vperm.xlu1 %9153, %v1005_v24  }
  0xa0   : > { %1023 = vperm.xlu0 %9152, %v1003_v25   ;;  %v411_v18 = vmul.f32 %v9531_v12, %v9447_v28  ;;  %v413_v25 = vmul.f32 %v9531_v12, %v9440_v26 }
  0xa2   : > { %v9452_v31 = vpop.permute.xlu1 %459 }
  0xa3   : > { %v9455_v32 = vpop.permute.xlu0 %384  ;;  %4202 = vperm.xlu1 %9153, %v4171_v29   ;;  %v491_v16 = vmul.f32 %v9526_v11, %v9452_v31 }
  0xa4   : > { %4207 = vperm.xlu0 %9152, %v4172_v30   ;;  %v412_v20 = vmul.f32 %v9531_v12, %v9455_v32 }
  0xa6   : > { %v9457_v35 = vpop.permute.xlu1 %469 }
  0xa7   : > { %v9459_v36 = vpop.permute.xlu0 %464  ;;  %4273 = vperm.xlu1 %9153, %v4242_v33   ;;  %v493_v19 = vmul.f32 %v9526_v11, %v9457_v35  ;;  %v499_v33 = vadd.f32 %v491_v16, %v411_v18  ;;  %v909_v26 = vmul.f32 %v9531_v12, %v9457_v35 }
  0xa8   : > { %4278 = vperm.xlu0 %9152, %v4243_v34   ;;  %v492_v17 = vmul.f32 %v9526_v11, %v9459_v36  ;;  %v908_v32 = vmul.f32 %v9531_v12, %v9459_v36 }
  0xaa   : > { %v545_v39 = vpop.permute.xlu1 %544  ;;  %v500_v34 = vadd.f32 %v492_v17, %v412_v20 }
  0xab   : > { %v540_v40 = vpop.permute.xlu0 %539  ;;  %4344 = vperm.xlu1 %9153, %v4313_v37   ;;  %v572_v21 = vmul.f32 %v9538_v14, %v545_v39  ;;  %v924_v22 = vmul.f32 %v9526_v11, %v545_v39  ;;  %v501_v39 = vadd.f32 %v493_v19, %v413_v25 }
  0xac   : > { %4349 = vperm.xlu0 %9152, %v4314_v38   ;;  %v571_v23 = vmul.f32 %v9538_v14, %v540_v40  ;;  %v923_v29 = vmul.f32 %v9526_v11, %v540_v40  ;;  %v907_v38 = vmul.f32 %v9531_v12, %v9452_v31 }
  0xad   : > { %v932_v40 = vadd.f32 %v924_v22, %v908_v32 }
  0xae   : > { %v9467_v44 = vpop.permute.xlu1 %394 }
  0xaf   : > { %v550_v45 = vpop.permute.xlu0 %549  ;;  %4212 = vperm.xlu1 %9153, %v4173_v41   ;;  %v580_v41 = vadd.f32 %v572_v21, %v500_v34  ;;  %v414_v31 = vmul.f32 %v9531_v12, %v9467_v44 }
  0xb0   : > { %4420 = vperm.xlu0 %9152, %v4385_v43   ;;  %v573_v28 = vmul.f32 %v9538_v14, %v550_v45  ;;  %v925_v37 = vmul.f32 %v9526_v11, %v550_v45  ;;  %v579_v43 = vadd.f32 %v571_v23, %v499_v33  ;;  %v931_v45 = vadd.f32 %v923_v29, %v907_v38 }
  0xb2   : > { %v9475_v48 = vpop.permute.xlu1 %474  ;;  %v933_v17 = vadd.f32 %v925_v37, %v909_v26 }
  0xb3   : > { %v9477_v49 = vpop.permute.xlu0 %399  ;;  %4283 = vperm.xlu1 %9153, %v4244_v46   ;;  %v494_v46 = vmul.f32 %v9526_v11, %v9475_v48  ;;  %v910_v18 = vmul.f32 %v9531_v12, %v9475_v48 }
  0xb4   : > { %v415_v21 = vmul.f32 %v9531_v12, %v9477_v49 }
  0xb5   : > { %v502_v25 = vadd.f32 %v494_v46, %v414_v31 }
  0xb6   : > { %v9479_v51 = vpop.permute.xlu1 %554 }
  0xb7   : > { %v9481_v52 = vpop.permute.xlu0 %479  ;;  %4354 = vperm.xlu1 %9153, %v4315_v50   ;;  %v9575_v50 = vld [vmem:[%s11154_s1 + $0x3] ss:$0 sm:$0xff]  ;;  %v574_v19 = vmul.f32 %v9538_v14, %v9479_v51  ;;  %v926_v20 = vmul.f32 %v9526_v11, %v9479_v51 }
  0xb8   : > { %v495_v35 = vmul.f32 %v9526_v11, %v9481_v52  ;;  %v911_v33 = vmul.f32 %v9531_v12, %v9481_v52 }
  0xb9   : > { %v934_v37 = vadd.f32 %v926_v20, %v910_v18 }
  0xba   : > { %v9483_v54 = vpop.permute.xlu1 %619 }
  0xbb   : > { %v9485_v55 = vpop.permute.xlu0 %559  ;;  %4415 = vperm.xlu1 %9153, %v4384_v53   ;;  %v581_v53 = vadd.f32 %v573_v28, %v501_v39  ;;  %v651_v44 = vmul.f32 %v9575_v50, %v9483_v54  ;;  %v939_v22 = vmul.f32 %v9538_v14, %v9483_v54  ;;  %v503_v28 = vadd.f32 %v495_v35, %v415_v21 }
  0xbc   : > { %v575_v23 = vmul.f32 %v9538_v14, %v9485_v55  ;;  %v927_v48 = vmul.f32 %v9526_v11, %v9485_v55  ;;  %v582_v55 = vadd.f32 %v574_v19, %v502_v25 }
  0xbd   : > { %v659_v39 = vadd.f32 %v651_v44, %v579_v43  ;;  %v947_v26 = vadd.f32 %v939_v22, %v931_v45  ;;  %v9632_v43 = vld [vmem:[%s11154_s1 + $0x4] ss:$0 sm:$0xff] }
  0xbe   : > { %v9487_v56 = vpop.permute.xlu1 %629  ;;  %v583_v46 = vadd.f32 %v575_v23, %v503_v28  ;;  %v935_v31 = vadd.f32 %v927_v48, %v911_v33 }
  0xbf   : > { %v9489_v57 = vpop.permute.xlu0 %624  ;;  %v653_v29 = vmul.f32 %v9575_v50, %v9487_v56  ;;  %v941_v51 = vmul.f32 %v9538_v14, %v9487_v56 }
  0xc0   : > { %v652_v54 = vmul.f32 %v9575_v50, %v9489_v57  ;;  %v940_v34 = vmul.f32 %v9538_v14, %v9489_v57 }
  0xc1   : > { %v661_v35 = vadd.f32 %v653_v29, %v581_v53  ;;  %v949_v21 = vadd.f32 %v941_v51, %v933_v17 }
  0xc2   : > { %v9491_v58 = vpop.permute.xlu1 %639  ;;  %v660_v18 = vadd.f32 %v652_v54, %v580_v41  ;;  %v948_v20 = vadd.f32 %v940_v34, %v932_v40 }
  0xc3   : > { %v9493_v59 = vpop.permute.xlu0 %634  ;;  %v655_v38 = vmul.f32 %v9575_v50, %v9491_v58  ;;  %v943_v56 = vmul.f32 %v9538_v14, %v9491_v58 }
  0xc4   : > { %v654_v52 = vmul.f32 %v9575_v50, %v9493_v59  ;;  %v942_v25 = vmul.f32 %v9538_v14, %v9493_v59 }
  0xc5   : > { %v663_v53 = vadd.f32 %v655_v38, %v583_v46  ;;  %v951_v17 = vadd.f32 %v943_v56, %v935_v31 }
  0xc6   : > { %v9495_v60 = vpop.permute.xlu1 %369  ;;  %v662_v40 = vadd.f32 %v654_v52, %v582_v55  ;;  %v950_v33 = vadd.f32 %v942_v25, %v934_v37 }
  0xc7   : > { %v9497_v61 = vpop.permute.xlu0 %364  ;;  %v409_v44 = vmul.f32 %v9531_v12, %v9495_v60 }
  0xc8   : > { %v408_v59 = vmul.f32 %v9531_v12, %v9497_v61 }
  0xca   : > { %v9499_v62 = vpop.permute.xlu1 %449 }
  0xcb   : > { %v9501_v63 = vpop.permute.xlu0 %444  ;;  %v489_v57 = vmul.f32 %v9526_v11, %v9499_v62  ;;  %v905_v61 = vmul.f32 %v9531_v12, %v9499_v62 }
  0xcc   : > { %v488_v58 = vmul.f32 %v9526_v11, %v9501_v63 }
  0xcd   : > { %v497_v48 = vadd.f32 %v489_v57, %v409_v44 }
  0xce   : > { %v9503_v0 = vpop.permute.xlu1 %529 }
  0xcf   : > { %v9505_v2 = vpop.permute.xlu0 %524  ;;  %v569_v41 = vmul.f32 %v9538_v14, %v9503_v0  ;;  %v921_v22 = vmul.f32 %v9526_v11, %v9503_v0  ;;  %v496_v0 = vadd.f32 %v488_v58, %v408_v59 }
  0xd0   : > { %v568_v23 = vmul.f32 %v9538_v14, %v9505_v2  ;;  %v920_v29 = vmul.f32 %v9526_v11, %v9505_v2  ;;  %v904_v2 = vmul.f32 %v9531_v12, %v9501_v63 }
  0xd1   : > { %v577_v55 = vadd.f32 %v569_v41, %v497_v48  ;;  %v929_v37 = vadd.f32 %v921_v22, %v905_v61  ;;  %v9689_v22 = vld [vmem:[%s11154_s1 + $0x5] ss:$0 sm:$0xff] }
  0xd2   : > { %v9507_v3 = vpop.permute.xlu1 %704  ;;  %v576_v56 = vadd.f32 %v568_v23, %v496_v0  ;;  %v928_v52 = vadd.f32 %v920_v29, %v904_v2 }
  0xd3   : > { %v9509_v4 = vpop.permute.xlu0 %699  ;;  %v732_v60 = vmul.f32 %v9632_v43, %v9507_v3  ;;  %v956_v51 = vmul.f32 %v9575_v50, %v9507_v3 }
  0xd4   : > { %v731_v38 = vmul.f32 %v9632_v43, %v9509_v4  ;;  %v955_v3 = vmul.f32 %v9575_v50, %v9509_v4 }
  0xd5   : > { %v740_v31 = vadd.f32 %v732_v60, %v660_v18  ;;  %v964_v57 = vadd.f32 %v956_v51, %v948_v20 }
  0xd6   : > { %v9511_v5 = vpop.permute.xlu1 %374  ;;  %v739_v59 = vadd.f32 %v731_v38, %v659_v39  ;;  %v963_v18 = vadd.f32 %v955_v3, %v947_v26 }
  0xd7   : > { %v9513_v6 = vpop.permute.xlu0 %709  ;;  %v410_v62 = vmul.f32 %v9531_v12, %v9511_v5 }
  0xd8   : > { %v733_v46 = vmul.f32 %v9632_v43, %v9513_v6  ;;  %v957_v63 = vmul.f32 %v9575_v50, %v9513_v6 }
  0xda   : > { %v9515_v7 = vpop.permute.xlu1 %534  ;;  %v741_v23 = vadd.f32 %v733_v46, %v661_v35  ;;  %v965_v26 = vadd.f32 %v957_v63, %v949_v21 }
  0xdb   : > { %v9517_v8 = vpop.permute.xlu0 %454  ;;  %v922_v58 = vmul.f32 %v9526_v11, %v9515_v7 }
  0xdc   : > { %v490_v54 = vmul.f32 %v9526_v11, %v9517_v8  ;;  %v906_v44 = vmul.f32 %v9531_v12, %v9517_v8  ;;  %v570_v8 = vmul.f32 %v9538_v14, %v9515_v7 }
  0xde   : > { %v9519_v9 = vpop.permute.xlu1 %719  ;;  %v498_v4 = vadd.f32 %v490_v54, %v410_v62  ;;  %v930_v51 = vadd.f32 %v922_v58, %v906_v44 }
  0xdf   : > { %v9521_v10 = vpop.permute.xlu0 %714  ;;  %v735_v5 = vmul.f32 %v9632_v43, %v9519_v9  ;;  %v959_v20 = vmul.f32 %v9575_v50, %v9519_v9 }
  0xe0   : > { %v734_v6 = vmul.f32 %v9632_v43, %v9521_v10  ;;  %v958_v48 = vmul.f32 %v9575_v50, %v9521_v10  ;;  %v578_v61 = vadd.f32 %v570_v8, %v498_v4 }
  0xe1   : > { %v743_v7 = vadd.f32 %v735_v5, %v663_v53  ;;  %v967_v21 = vadd.f32 %v959_v20, %v951_v17 }
  0xe2   : > { %v9533_v13 = vpop.permute.xlu1 %609  ;;  %v742_v54 = vadd.f32 %v734_v6, %v662_v40  ;;  %v966_v38 = vadd.f32 %v958_v48, %v950_v33  ;;  %v9730_v40 = vld [vmem:[%s11154_s1 + $0x6] ss:$0 sm:$0xff] }
  0xe3   : > { %v9540_v15 = vpop.permute.xlu0 %604  ;;  %v649_v39 = vmul.f32 %v9575_v50, %v9533_v13  ;;  %v937_v9 = vmul.f32 %v9538_v14, %v9533_v13 }
  0xe4   : > { %v648_v29 = vmul.f32 %v9575_v50, %v9540_v15  ;;  %v936_v60 = vmul.f32 %v9538_v14, %v9540_v15 }
  0xe5   : > { %v9713_v15 = vadd.f32 %v649_v39, %v577_v55  ;;  %v9719_v62 = vadd.f32 %v937_v9, %v929_v37 }
  0xe6   : > { %v9555_v24 = vpop.permute.xlu1 %784  ;;  %v9721_v46 = vadd.f32 %v648_v29, %v576_v56  ;;  %v9723_v17 = vadd.f32 %v936_v60, %v928_v52 }
  0xe7   : > { %v9561_v30 = vpop.permute.xlu0 %779  ;;  %v812_v10 = vmul.f32 %v9689_v22, %v9555_v24  ;;  %v972_v13 = vmul.f32 %v9632_v43, %v9555_v24 }
  0xe8   : > { %v811_v2 = vmul.f32 %v9689_v22, %v9561_v30  ;;  %v971_v53 = vmul.f32 %v9632_v43, %v9561_v30 }
  0xe9   : > { %v820_v30 = vadd.f32 %v812_v10, %v740_v31 }
  0xea   : > { %v9577_v36 = vpop.permute.xlu1 %614  ;;  %v819_v63 = vadd.f32 %v811_v2, %v739_v59  ;;  %v979_v31 = vadd.f32 %v971_v53, %v963_v18  ;;  %v9769_v2 = vld [vmem:[%s11160_s7] ss:$0 sm:$0xff] }
  0xeb   : > { %v9583_v16 = vpop.permute.xlu0 %789  ;;  %v650_v3 = vmul.f32 %v9575_v50, %v9577_v36  ;;  %v938_v24 = vmul.f32 %v9538_v14, %v9577_v36  ;;  %v980_v36 = vadd.f32 %v972_v13, %v964_v57 }
  0xec   : > { %v813_v55 = vmul.f32 %v9689_v22, %v9583_v16  ;;  %v973_v37 = vmul.f32 %v9632_v43, %v9583_v16 }
  0xed   : > { %v9746_v44 = vadd.f32 %v650_v3, %v578_v61  ;;  %v9752_v20 = vadd.f32 %v938_v24, %v930_v51 }
  0xee   : > { %v9605_v49 = vpop.permute.xlu1 %799  ;;  %v821_v8 = vadd.f32 %v813_v55, %v741_v23  ;;  %v981_v48 = vadd.f32 %v973_v37, %v965_v26 }
  0xef   : > { %v9613_v32 = vpop.permute.xlu0 %794  ;;  %v815_v58 = vmul.f32 %v9689_v22, %v9605_v49  ;;  %v975_v16 = vmul.f32 %v9632_v43, %v9605_v49 }
  0xf0   : > { %v814_v57 = vmul.f32 %v9689_v22, %v9613_v32  ;;  %v974_v59 = vmul.f32 %v9632_v43, %v9613_v32 }
  0xf1   : > { %v823_v29 = vadd.f32 %v815_v58, %v743_v7  ;;  %v983_v10 = vadd.f32 %v975_v16, %v967_v21  ;;  %v11164_v58 = vmov -1.0  }
  0xf2   : > { %v9623_v19 = vpop.permute.xlu1 %689  ;;  %v822_v13 = vadd.f32 %v814_v57, %v742_v54  ;;  %v982_v23 = vadd.f32 %v974_v59, %v966_v38 }
  0xf3   : > { %v9634_v45 = vpop.permute.xlu0 %684  ;;  %v9773_v3 = vmul.f32 %v9632_v43, %v9623_v19  ;;  %v953_v21 = vmul.f32 %v9575_v50, %v9623_v19 }
  0xf6   : > { %v9652_v28 = vpop.permute.xlu1 %864 }
  0xf7   : > { %v9658_v34 = vpop.permute.xlu0 %859  ;;  %v988_v56 = vmul.f32 %v9689_v22, %v9652_v28  ;;  %v892_v5 = vmul.f32 %v9730_v40, %v9652_v28 }
  0xf8   : > { %v987_v4 = vmul.f32 %v9689_v22, %v9658_v34  ;;  %v891_v6 = vmul.f32 %v9730_v40, %v9658_v34 }
  0xf9   : > { %v996_v39 = vadd.f32 %v988_v56, %v980_v36  ;;  %v900_v61 = vadd.f32 %v892_v5, %v820_v30  ;;  %v728_v56 = vmul.f32 %v9632_v43, %v9634_v45  ;;  %v952_v5 = vmul.f32 %v9575_v50, %v9634_v45 }
  0xfa   : > { %v9672_v25 = vpop.permute.xlu1 %694  ;;  %v995_v28 = vadd.f32 %v987_v4, %v979_v31  ;;  %v899_v26 = vadd.f32 %v891_v6, %v819_v63 }
  0xfb   : > { %v9680_v41 = vpop.permute.xlu0 %869 }
  0xfc   : > { %v989_v60 = vmul.f32 %v9689_v22, %v9680_v41  ;;  %v893_v32 = vmul.f32 %v9730_v40, %v9680_v41 }
  0xfe   : > { %v9703_v35 = vpop.permute.xlu1 %879  ;;  %v997_v24 = vadd.f32 %v989_v60, %v981_v48  ;;  %v901_v36 = vadd.f32 %v893_v32, %v821_v8  ;;  %v960_v32 = vadd.f32 %v952_v5, %v9723_v17 }
  0xff   : > { %v9707_v0 = vpop.permute.xlu0 %874  ;;  %v991_v41 = vmul.f32 %v9689_v22, %v9703_v35  ;;  %v895_v63 = vmul.f32 %v9730_v40, %v9703_v35 }
 0x100   : > { %v990_v30 = vmul.f32 %v9689_v22, %v9707_v0  ;;  %v894_v19 = vmul.f32 %v9730_v40, %v9707_v0  ;;  %v954_v0 = vmul.f32 %v9575_v50, %v9672_v25 }
 0x101   : > { %v999_v57 = vadd.f32 %v991_v41, %v983_v10  ;;  %v903_v45 = vadd.f32 %v895_v63, %v823_v29 }
 0x102   : > { %v9732_v33 = vpop.permute.xlu1 %769 }
 0x103   : > { %v9740_v52 = vpop.permute.xlu0 %764  ;;  %v969_v17 = vmul.f32 %v9632_v43, %v9732_v33 }
 0x104   : > { %v808_v60 = vmul.f32 %v9689_v22, %v9740_v52 }
 0x106   : > { %v1039_v18 = vpop.permute.xlu1 %1038 }
 0x107   : > { %v1060_v49 = vmul.f32 %v9730_v40, %v1039_v18  ;;  %v1034_v9 = vpop.permute.xlu0 %1033  ;;  %v998_v18 = vadd.f32 %v990_v30, %v982_v23  ;;  %v730_v23 = vmul.f32 %v9632_v43, %v9672_v25 }
 0x108   : > { %v1059_v51 = vmul.f32 %v9730_v40, %v1034_v9 }
 0x109   : > { %v1068_v34 = vadd.f32 %v1060_v49, %v996_v39  ;;  %v961_v39 = vadd.f32 %v953_v21, %v9719_v62  ;;  %v968_v49 = vmul.f32 %v9632_v43, %v9740_v52 }
 0x10a   : > { %v1067_v7 = vadd.f32 %v1059_v51, %v995_v28  ;;  %v775_v53 = vpop.permute.xlu1 %774  ;;  %v902_v28 = vadd.f32 %v894_v19, %v822_v13  ;;  %v962_v13 = vadd.f32 %v954_v0, %v9752_v20 }
 0x10b   : > { %v1076_v54 = vmax.f32 %v900_v61, %v1068_v34  ;;  %v1044_v38 = vpop.permute.xlu0 %1043  ;;  %v736_v61 = vadd.f32 %v728_v56, %v9721_v46  ;;  %v970_v21 = vmul.f32 %v9632_v43, %v775_v53  ;;  %v809_v56 = vmul.f32 %v9689_v22, %v9732_v33 }
 0x10c   : > { %v1075_v55 = vmax.f32 %v899_v26, %v1067_v7  ;;  %v1061_v37 = vmul.f32 %v9730_v40, %v1044_v38  ;;  %v976_v7 = vadd.f32 %v968_v49, %v960_v32  ;;  %v977_v5 = vadd.f32 %v969_v17, %v961_v39  ;;  %v8076_v49 = vld [vmem:[%s9332_s21 + $0xc0] sm:$0xff] }
 0x10d   : > { %vm1089_vm4 = vcmp.ge.f32.partialorder %v1076_v54, %v9769_v2  ;;  %v816_v41 = vadd.f32 %v808_v60, %v736_v61  ;;  %v810_v54 = vmul.f32 %v9689_v22, %v775_v53  ;;  %v978_v53 = vadd.f32 %v970_v21, %v962_v13  ;;  %v8074_v61 = vld [vmem:[%s9332_s21 + $0xb0] sm:$0xff] }
 0x10e   : > { %v1097_v4 = vsel %vm1089_vm4, 1.0, %v11164_v58  ;;  %vm1088_vm5 = vcmp.ge.f32.partialorder %v1075_v55, %v9769_v2  ;;  %v1069_v31 = vadd.f32 %v1061_v37, %v997_v24  ;;  %v1054_v16 = vpop.permute.xlu1 %1053  ;;  %v738_v37 = vadd.f32 %v730_v23, %v9746_v44 }
 0x10f   : > { %v1096_v59 = vsel %vm1088_vm5, 1.0, %v11164_v58  ;;  %1109 = vst.msk [vmem:[#allocation2 + $0x22] sm:$0xff] %vm1104_vm3, %v1097_v4  ;;  %v1063_v35 = vmul.f32 %v9730_v40, %v1054_v16  ;;  %v1049_v6 = vpop.permute.xlu0 %1048  ;;  %v737_v16 = vadd.f32 %v9773_v3, %v9713_v15 }
 0x110   : > { %1108 = vst.msk [vmem:[#allocation2 + $0x1a] sm:$0xff] %vm1104_vm3, %v1096_v59  ;;  %v1077_v8 = vmax.f32 %v901_v36, %v1069_v31  ;;  %v1062_v48 = vmul.f32 %v9730_v40, %v1049_v6 }
 0x111   : > { %v1071_v9 = vadd.f32 %v1063_v35, %v999_v57  ;;  %v818_v57 = vadd.f32 %v810_v54, %v738_v37 }
 0x112   : > { %vm1090_vm6 = vcmp.ge.f32.partialorder %v1077_v8, %v9769_v2  ;;  %v1070_v51 = vadd.f32 %v1062_v48, %v998_v18  ;;  %v850_v10 = vpop.permute.xlu1 %849  ;;  %v817_v8 = vadd.f32 %v809_v56, %v737_v16 }
 0x113   : > { %v1098_v34 = vsel %vm1090_vm6, 1.0, %v11164_v58  ;;  %v1079_v62 = vmax.f32 %v903_v45, %v1071_v9  ;;  %v845_v29 = vpop.permute.xlu0 %844  ;;  %v985_v36 = vmul.f32 %v9689_v22, %v850_v10  ;;  %v889_v44 = vmul.f32 %v9730_v40, %v850_v10  ;;  %v8075_v45 = vld [vmem:[%s9332_s21 + $0xb8] sm:$0xff]  ;;  %v8073_v10 = vld [vmem:[%s9332_s21 + $0xa8] sm:$0xff] }
 0x114   : > { %1110 = vst.msk [vmem:[#allocation2 + $0x2a] sm:$0xff] %vm1104_vm3, %v1098_v34  ;;  %v1078_v52 = vmax.f32 %v902_v28, %v1070_v51  ;;  %v984_v26 = vmul.f32 %v9689_v22, %v845_v29  ;;  %v888_v46 = vmul.f32 %v9730_v40, %v845_v29  ;;  %vm2952_vm6 = vcmask 122880  }
 0x115   : > { %vm1092_vm7 = vcmp.ge.f32.partialorder %v1079_v62, %v9769_v2  ;;  %v993_v48 = vadd.f32 %v985_v36, %v977_v5  ;;  %v897_v9 = vadd.f32 %v889_v44, %v817_v8 }
 0x116   : > { %v1100_v25 = vsel %vm1092_vm7, 1.0, %v11164_v58  ;;  %vm1091_vm8 = vcmp.ge.f32.partialorder %v1078_v52, %v9769_v2  ;;  %v1019_v20 = vpop.permute.xlu1 %1018  ;;  %v992_v24 = vadd.f32 %v984_v26, %v976_v7  ;;  %v896_v19 = vadd.f32 %v888_v46, %v816_v41 }
 0x117   : > { %1112 = vst.msk [vmem:[#allocation2 + $0x3a] sm:$0xff] %vm1104_vm3, %v1100_v25  ;;  %v1099_v38 = vsel %vm1091_vm8, 1.0, %v11164_v58  ;;  %v1056_v30 = vmul.f32 %v9730_v40, %v1019_v20  ;;  %v855_v55 = vpop.permute.xlu0 %854  ;;  %vm9227_vm7 = vmmov 0  }
 0x118   : > { %1111 = vst.msk [vmem:[#allocation2 + $0x32] sm:$0xff] %vm1104_vm3, %v1099_v38  ;;  %v986_v63 = vmul.f32 %v9689_v22, %v855_v55  ;;  %v890_v31 = vmul.f32 %v9730_v40, %v855_v55 }
 0x119   : > { %v1064_v4 = vadd.f32 %v1056_v30, %v992_v24 }
 0x11a   : > { %v1029_v33 = vpop.permute.xlu1 %1028  ;;  %v994_v35 = vadd.f32 %v986_v63, %v978_v53  ;;  %v898_v3 = vadd.f32 %v890_v31, %v818_v57 }
 0x11b   : > { %v1072_v59 = vmax.f32 %v896_v19, %v1064_v4  ;;  %v1058_v6 = vmul.f32 %v9730_v40, %v1029_v33  ;;  %v1024_v0 = vpop.permute.xlu0 %1023  ;;  %v9836_v18 = vld [vmem:[#allocation2 + $0x21] ss:$2 sm:$0xff]  ;;  %v9853_v34 = vld [vmem:[#allocation2 + $0x20] ss:$2 sm:$0xff] }
 0x11c   : > { %v1057_v15 = vmul.f32 %v9730_v40, %v1024_v0  ;;  %8528 = vmatprep.mubr.msk.f32.mxu1 %vm1104_vm3, %v9836_v18  ;;  %v9850_v40 = vld [vmem:[%s11155_s2 + $0x18] sm:$0xff]  ;;  %v9855_v62 = vld [vmem:[#allocation2 + $0x22] ss:$2 sm:$0xff]  ;;  %v9872_v17 = vld [vmem:[#allocation2 + $0x23] ss:$2 sm:$0xff] }
 0x11d   : > { %vm1085_vm9 = vcmp.ge.f32.partialorder %v1072_v59, %v9769_v2  ;;  %v1066_v39 = vadd.f32 %v1058_v6, %v994_v35 }
 0x11e   : > { %v1093_v28 = vsel %vm1085_vm9, 1.0, %v11164_v58  ;;  %v1065_v60 = vadd.f32 %v1057_v15, %v993_v48  ;;  %v4203_v51 = vpop.permute.xlu1 %4202 }
 0x11f   : > { %1105 = vst.msk [vmem:[#allocation2 + $0x2] sm:$0xff] %vm1104_vm3, %v1093_v28  ;;  %v1074_v32 = vmax.f32 %v898_v3, %v1066_v39  ;;  %v4208_v29 = vpop.permute.xlu0 %4207  ;;  %v9857_v23 = vld [vmem:[#allocation2 + $0x30] ss:$2 sm:$0xff]  ;;  %v9859_v13 = vld [vmem:[#allocation2 + $0x31] ss:$2 sm:$0xff]  ;;  %v4226_v24 = vmul.f32 %v9531_v12, %v4203_v51 }
 0x120   : > { %v9861_v52 = vld [vmem:[#allocation2 + $0x32] ss:$2 sm:$0xff]  ;;  %v1073_v26 = vmax.f32 %v897_v9, %v1065_v60  ;;  %8529 = vmatmul.mubr.msk.f32.vlgmr.msra.gmra.mxu1 %vm1104_vm3, %v9859_v13  ;;  %v9865_v7 = vld [vmem:[#allocation2 + $0x33] ss:$2 sm:$0xff]  ;;  %v4227_v55 = vmul.f32 %v9531_v12, %v4208_v29 }
 0x121   : > { %v9867_v21 = vld [vmem:[#allocation2 + $0x24] ss:$2 sm:$0xff]  ;;  %v9869_v46 = vld [vmem:[#allocation2 + $0x34] ss:$2 sm:$0xff]  ;;  %vm1087_vm10 = vcmp.ge.f32.partialorder %v1074_v32, %v9769_v2  ;;  %v9874_v41 = vld [vmem:[#allocation2 + $0x25] ss:$2 sm:$0xff]  ;;  %8532 = vmatpush3.msra.mxu1 %v9464_v42 }
 0x122   : > { %v9876_v25 = vld [vmem:[#allocation2 + $0x35] ss:$2 sm:$0xff]  ;;  %v1095_v20 = vsel %vm1087_vm10, 1.0, %v11164_v58  ;;  %vm1086_vm11 = vcmp.ge.f32.partialorder %v1073_v26, %v9769_v2  ;;  %v4274_v54 = vpop.permute.xlu1 %4273  ;;  %4155 = vst.msk [vmem:[#allocation2 + $0x2b] sm:$0xff] %vm329_vm1, %v8073_v10  ;;  %8547 = vmatprep.subr.mxu1 %v9850_v40 }
 0x123   : > { %4157 = vst.msk [vmem:[#allocation2 + $0x3b] sm:$0xff] %vm329_vm1, %v8075_v45  ;;  %4158 = vst.msk [vmem:[#allocation2 + $0x43] sm:$0xff] %vm329_vm1, %v8076_v49  ;;  %v1094_v38 = vsel %vm1086_vm11, 1.0, %v11164_v58  ;;  %v4297_v30 = vmul.f32 %v9526_v11, %v4274_v54  ;;  %v4279_v2 = vpop.permute.xlu0 %4278  ;;  %v4668_v53 = vmul.f32 %v9531_v12, %v4274_v54  ;;  %vm3411_vm11 = vcmask 253952  }
 0x124   : > { %4156 = vst.msk [vmem:[#allocation2 + $0x33] sm:$0xff] %vm329_vm1, %v8074_v61  ;;  %v4298_v37 = vmul.f32 %v9526_v11, %v4279_v2  ;;  %v4669_v16 = vmul.f32 %v9531_v12, %v4279_v2 }
 0x125   : > { %1107 = vst.msk [vmem:[#allocation2 + $0x12] sm:$0xff] %vm1104_vm3, %v1095_v20  ;;  %1106 = vst.msk [vmem:[#allocation2 + $0xa] sm:$0xff] %vm1104_vm3, %v1094_v38  ;;  %v4305_v56 = vadd.f32 %v4297_v30, %v4226_v24 }
 0x126   : > { %v4306_v36 = vadd.f32 %v4298_v37, %v4227_v55  ;;  %v4345_v63 = vpop.permute.xlu1 %4344 }
 0x127   : > { %v4368_v19 = vmul.f32 %v9538_v14, %v4345_v63  ;;  %v4684_v4 = vmul.f32 %v9526_v11, %v4345_v63  ;;  %v4350_v31 = vpop.permute.xlu0 %4349 }
 0x128   : > { %v4369_v5 = vmul.f32 %v9538_v14, %v4350_v31  ;;  %v4685_v44 = vmul.f32 %v9526_v11, %v4350_v31 }
 0x129   : > { %v9899_v33 = vadd.f32 %v4368_v19, %v4305_v56  ;;  %v9901_v57 = vadd.f32 %v4684_v4, %v4668_v53 }
 0x12a   : > { %v4170_v59 = vld [vmem:[#allocation2 + $0x40] ss:$2 sm:$0xff]  ;;  %v9903_v6 = vadd.f32 %v4369_v5, %v4306_v36  ;;  %v9905_v0 = vadd.f32 %v4685_v44, %v4669_v16  ;;  %v4213_v8 = vpop.permute.xlu1 %4212  ;;  %v4241_v48 = vld [vmem:[#allocation2 + $0x41] ss:$2 sm:$0xff] }
 0x12b   : > { %v4169_v35 = vld [vmem:[#allocation2 + $0x30] ss:$2 sm:$0xff]  ;;  %4197 = vperm.xlu0 %9152, %v4170_v59   ;;  %v4240_v39 = vld [vmem:[#allocation2 + $0x31] ss:$2 sm:$0xff]  ;;  %v4228_v60 = vmul.f32 %v9531_v12, %v4213_v8  ;;  %v10047_v8 = vld [vmem:[%s11156_s3 + $0x28] sm:$0xff] }
 0x12c   : > { %4192 = vperm.xlu1 %9153, %v4169_v35   ;;  %v1113_v15 = vld [vmem:[#allocation2] ss:$2 sm:$0xff]  ;;  %v9907_v3 = vld [vmem:[#allocation2 + $0x1] ss:$2 sm:$0xff]  ;;  %v9912_v45 = vld [vmem:[#allocation2 + $0x11] ss:$2 sm:$0xff] }
 0x12d   : > { %8525 = vmatprep.mubr.msk.f32.mxu0 %vm1104_vm3, %v9907_v3  ;;  %8533 = vmatprep.mubr.msk.f32.mxu1 %vm1104_vm3, %v1113_v15  ;;  %2110 = vst.msk [vmem:[#allocation2] sm:$0x3] %vm2109_vm12, %v11162_v1  ;;  %v1114_v49 = vld [vmem:[#allocation2 + $0x10] ss:$2 sm:$0xff]  ;;  %v4383_v32 = vld [vmem:[#allocation2 + $0x43] ss:$2 sm:$0xff] }
 0x12e   : > { %8526 = vmatmul.mubr.msk.f32.vlgmr.msra.gmra.mxu0 %vm1104_vm3, %v9912_v45  ;;  %v1318_v9 = vld [vmem:[#allocation2 + $0x2] ss:$2 sm:$0xff]  ;;  %v4284_v28 = vpop.permute.xlu1 %4283  ;;  %8534 = vmatmul.mubr.msk.f32.vlgmr.msra.gmra.mxu1 %vm1104_vm3, %v1114_v49  ;;  %v4311_v61 = vld [vmem:[#allocation2 + $0x32] ss:$2 sm:$0xff]  ;;  %v4524_v20 = vld [vmem:[#allocation2 + $0x35] ss:$2 sm:$0xff] }
 0x12f   : > { %4268 = vperm.xlu0 %9152, %v4241_v48   ;;  %8541 = vmatprep.mubr.msk.f32.mxu0 %vm1104_vm3, %v1318_v9  ;;  %v4299_v51 = vmul.f32 %v9526_v11, %v4284_v28  ;;  %v4312_v10 = vld [vmem:[#allocation2 + $0x42] ss:$2 sm:$0xff]  ;;  %v9931_v24 = vld [vmem:[#allocation2 + $0x15] ss:$2 sm:$0xff]  ;;  %v1319_v2 = vld [vmem:[#allocation2 + $0x12] ss:$2 sm:$0xff]  ;;  %v4670_v56 = vmul.f32 %v9531_v12, %v4284_v28 }
 0x130   : > { %4263 = vperm.xlu1 %9153, %v4240_v39   ;;  %8548 = vmatpush3.msra.mxu1 %v9850_v40  ;;  %v4453_v29 = vld [vmem:[#allocation2 + $0x34] ss:$2 sm:$0xff]  ;;  %v9933_v30 = vld [vmem:[#allocation2 + $0x37] ss:$2 sm:$0xff]  ;;  %v4456_v16 = vld [vmem:[#allocation2 + $0x64] ss:$2 sm:$0xff] }
 0x131   : > { %8536 = vmatprep.mubr.msk.f32.mxu1 %vm1104_vm3, %v9853_v34  ;;  %v9925_v26 = vld [vmem:[#allocation2 + $0x14] ss:$2 sm:$0xff]  ;;  %v4307_v54 = vadd.f32 %v4299_v51, %v4228_v60  ;;  %8540 = vmatpush3.msra.mxu0 %v9472_v47  ;;  %v1425_v37 = vld [vmem:[#allocation2 + $0x3] ss:$2 sm:$0xff]  ;;  %v4382_v53 = vld [vmem:[#allocation2 + $0x33] ss:$2 sm:$0xff] }
 0x132   : > { %8563 = vmatprep.subr.mxu1 %v9445_v27  ;;  %v9929_v38 = vld [vmem:[#allocation2 + $0x36] ss:$2 sm:$0xff]  ;;  %v4355_v55 = vpop.permute.xlu1 %4354  ;;  %2111 = vst.msk [vmem:[#allocation2 + $0x22] sm:$0x3] %vm2109_vm12, %v11162_v1  ;;  %8537 = vmatmul.mubr.msk.f32.gmra.mxu1 %vm1104_vm3, %v9857_v23  ;;  %v1426_v31 = vld [vmem:[#allocation2 + $0x13] ss:$2 sm:$0xff] }
 0x133   : > { %4339 = vperm.xlu0 %9152, %v4312_v10   ;;  %v9938_v34 = vld [vmem:[%s11155_s2 + $0x20] sm:$0xff]  ;;  %4853 = vst.msk [vmem:[#allocation2 + $0x42] sm:$0x3] %vm1101_vm2, %v11162_v1  ;;  %8542 = vmatmul.mubr.msk.f32.vlgmr.msra.gmra.mxu0 %vm1104_vm3, %v1319_v2  ;;  %v4370_v36 = vmul.f32 %v9538_v14, %v4355_v55  ;;  %v4686_v63 = vmul.f32 %v9526_v11, %v4355_v55  ;;  %v10056_v48 = vld [vmem:[%s11156_s3 + $0x38] sm:$0xff] }
 0x134   : > { %4334 = vperm.xlu1 %9153, %v4311_v61   ;;  %8544 = vmatprep.mubr.msk.f32.mxu0 %vm1104_vm3, %v9855_v62  ;;  %v1532_v23 = vld [vmem:[#allocation2 + $0x4] ss:$2 sm:$0xff]  ;;  %v4386_v44 = vld [vmem:[#allocation2 + $0x73] ss:$2 sm:$0xff]  ;;  %v4455_v59 = vld [vmem:[#allocation2 + $0x54] ss:$2 sm:$0xff] }
 0x135   : > { %8549 = vmatprep.mubr.msk.f32.mxu1 %vm1104_vm3, %v1425_v37  ;;  %8555 = vmatprep.subr.mxu0 %v9938_v34  ;;  %v9954_v19 = vadd.f32 %v4370_v36, %v4307_v54  ;;  %v9956_v4 = vadd.f32 %v4686_v63, %v4670_v56  ;;  %v4454_v5 = vld [vmem:[#allocation2 + $0x44] ss:$2 sm:$0xff] }
 0x136   : > { %8556 = vmatpush3.msra.mxu0 %v9938_v34  ;;  %8550 = vmatmul.mubr.msk.f32.vlgmr.msra.gmra.mxu1 %vm1104_vm3, %v1426_v31 }
 0x137   : > { %4410 = vperm.xlu0 %9152, %v4383_v32   ;;  %8545 = vmatmul.mubr.msk.f32.gmra.mxu0 %vm1104_vm3, %v9861_v52 }
 0x138   : > { %4405 = vperm.xlu1 %9153, %v4382_v53   ;;  %8557 = vmatprep.mubr.msk.f32.mxu0 %vm1104_vm3, %v1532_v23 }
 0x139   : > { %8564 = vmatpush3.msra.mxu1 %v9445_v27  ;;  %8552 = vmatprep.mubr.msk.f32.mxu1 %vm1104_vm3, %v9872_v17  ;;  %v4527_v27 = vld [vmem:[#allocation2 + $0x65] ss:$2 sm:$0xff] }
 0x13a   : > { %8571 = vmatprep.subr.mxu0 %v9464_v42  ;;  %8553 = vmatmul.mubr.msk.f32.gmra.mxu1 %vm1104_vm3, %v9865_v7 }
 0x13b   : > { %4491 = vperm.xlu0 %9152, %v4456_v16   ;;  %8558 = vmatmul.mubr.msk.f32.vlgmr.msra.gmra.mxu0 %vm1104_vm3, %v9925_v26 }
 0x13c   : > { %4476 = vperm.xlu1 %9153, %v4453_v29   ;;  %8560 = vmatprep.mubr.msk.f32.mxu0 %vm1104_vm3, %v9867_v21 }
 0x13d   : > { %8565 = vmatprep.mubr.msk.f32.mxu1 %vm1104_vm3, %v1318_v9  ;;  %8572 = vmatpush3.msra.mxu0 %v9464_v42  ;;  %v4525_v42 = vld [vmem:[#allocation2 + $0x45] ss:$2 sm:$0xff] }
 0x13e   : > { %8579 = vmatprep.subr.mxu1 %v9472_v47  ;;  %8566 = vmatmul.mubr.msk.f32.vlgmr.msra.gmra.mxu1 %vm1104_vm3, %v1319_v2 }
 0x13f   : > { %4481 = vperm.xlu0 %9152, %v4454_v5   ;;  %8561 = vmatmul.mubr.msk.f32.gmra.mxu0 %vm1104_vm3, %v9869_v46 }
 0x140   : > { %4425 = vperm.xlu1 %9153, %v4386_v44   ;;  %8573 = vmatprep.mubr.msk.f32.mxu0 %vm1104_vm3, %v9907_v3 }
 0x141   : > { %8580 = vmatpush3.msra.mxu1 %v9472_v47  ;;  %8568 = vmatprep.mubr.msk.f32.mxu1 %vm1104_vm3, %v9855_v62  ;;  %v4596_v47 = vld [vmem:[#allocation2 + $0x46] ss:$2 sm:$0xff] }
 0x142   : > { %8587 = vmatprep.subr.mxu0 %v9850_v40  ;;  %8569 = vmatmul.mubr.msk.f32.gmra.mxu1 %vm1104_vm3, %v9861_v52  ;;  %v4457_v62 = vld [vmem:[#allocation2 + $0x74] ss:$2 sm:$0xff]  ;;  %v4421_v52 = vpop.permute.xlu0 %4420 }
 0x143   : > { %4562 = vperm.xlu0 %9152, %v4527_v27   ;;  %8574 = vmatmul.mubr.msk.f32.vlgmr.msra.gmra.mxu0 %vm1104_vm3, %v9912_v45 }
 0x144   : > { %4547 = vperm.xlu1 %9153, %v4524_v20   ;;  %8576 = vmatprep.mubr.msk.f32.mxu0 %vm1104_vm3, %v9836_v18  ;;  %v1987_v18 = vld [vmem:[#allocation2 + $0x5] ss:$2 sm:$0xff]  ;;  %v4701_v20 = vmul.f32 %v9538_v14, %v4421_v52 }
 0x145   : > { %8581 = vmatprep.mubr.msk.f32.mxu1 %vm1104_vm3, %v1425_v37  ;;  %8588 = vmatpush3.msra.mxu0 %v9850_v40  ;;  %v4526_v40 = vld [vmem:[#allocation2 + $0x55] ss:$2 sm:$0xff] }
 0x146   : > { %8595 = vmatprep.subr.mxu1 %v9938_v34  ;;  %8582 = vmatmul.mubr.msk.f32.vlgmr.msra.gmra.mxu1 %vm1104_vm3, %v1426_v31 }
 0x147   : > { %4552 = vperm.xlu0 %9152, %v4525_v42   ;;  %8577 = vmatmul.mubr.msk.f32.gmra.mxu0 %vm1104_vm3, %v9859_v13  ;;  %v4528_v13 = vld [vmem:[#allocation2 + $0x75] ss:$2 sm:$0xff] }
 0x148   : > { %4486 = vperm.xlu1 %9153, %v4455_v59   ;;  %8589 = vmatprep.mubr.msk.f32.mxu0 %vm1104_vm3, %v1532_v23 }
 0x149   : > { %8596 = vmatpush3.msra.mxu1 %v9938_v34  ;;  %8584 = vmatprep.mubr.msk.f32.mxu1 %vm1104_vm3, %v9872_v17  ;;  %v10033_v17 = vld [vmem:[%s11156_s3 + $0x10] sm:$0xff] }
 0x14a   : > { %8585 = vmatmul.mubr.msk.f32.gmra.mxu1 %vm1104_vm3, %v9865_v7  ;;  %v4416_v7 = vpop.permute.xlu1 %4415 }
 0x14b   : > { %4623 = vperm.xlu0 %9152, %v4596_v47   ;;  %8590 = vmatmul.mubr.msk.f32.vlgmr.msra.gmra.mxu0 %vm1104_vm3, %v9925_v26  ;;  %v4440_v26 = vmul.f32 %v9575_v50, %v4421_v52 }
 0x14c   : > { %4496 = vperm.xlu1 %9153, %v4457_v62   ;;  %8592 = vmatprep.mubr.msk.f32.mxu0 %vm1104_vm3, %v9867_v21  ;;  %v10021_v21 = vld [vmem:[%s11156_s3 + $0x18] sm:$0xff] }
 0x14d   : > { %8597 = vmatprep.mubr.msk.f32.mxu1 %vm1104_vm3, %v1987_v18  ;;  %8603 = vmatprep.subr.mxu0 %v10021_v21  ;;  %v4448_v34 = vadd.f32 %v4440_v26, %v9903_v6 }
 0x14e   : > { %8598 = vmatmul.mubr.msk.f32.vlgmr.msra.gmra.mxu1 %vm1104_vm3, %v9931_v24  ;;  %8604 = vmatpush3.msra.mxu0 %v10021_v21 }
 0x14f   : > { %8593 = vmatmul.mubr.msk.f32.gmra.mxu0 %vm1104_vm3, %v9869_v46  ;;  %8600 = vmatprep.mubr.msk.f32.mxu1 %vm1104_vm3, %v9874_v41  ;;  %v10026_v46 = vld [vmem:[%s11156_s3 + $0x8] sm:$0xff]  ;;  %v10038_v41 = vld [vmem:[%s11156_s3] sm:$0xff] }
 0x150   : > { %4618 = vperm.xlu1 %9153, %v9929_v38   ;;  %8610 = vmatprep.subr.mxu1 %v10026_v46 }
 0x151   : > { %8611 = vmatpush3.msra.mxu1 %v10026_v46  ;;  %8605 = vmatprep.subr.mxu0 %v10033_v17 }
 0x152   : > { %8601 = vmatmul.mubr.msk.f32.gmra.mxu1 %vm1104_vm3, %v9876_v25  ;;  %8612 = vmatprep.subr.mxu1 %v10038_v41 }
 0x153   : > { %8606 = vmatpush3.msra.mxu0 %v10033_v17  ;;  %8613 = vmatpush3.msra.mxu1 %v10038_v41 }
 0x154   : > { %4557 = vperm.xlu1 %9153, %v4526_v40   ;;  %8617 = vmatprep.subr.mxu0 %v10047_v8  ;;  %v4439_v40 = vmul.f32 %v9575_v50, %v4416_v7 }
 0x155   : > { %8624 = vmatprep.subr.mxu1 %v10056_v48 }
 0x158   : > { %4567 = vperm.xlu1 %9153, %v4528_v13   ;;  %v4700_v13 = vmul.f32 %v9538_v14, %v4416_v7 }
 0x15c   : > { %4784 = vperm.xlu1 %9153, %v9933_v30  }
 0x1a6   : > { %v4198_v35 = vpop.permute.xlu0 %4197 }
 0x1a7   : > { %v10040_v25 = vpop.permute.xlu1 %4192  ;;  %v4225_v39 = vmul.f32 %v9531_v12, %v4198_v35 }
 0x1aa   : > { %v4269_v3 = vpop.permute.xlu0 %4268 }
 0x1ab   : > { %v10060_v15 = vpop.permute.xlu1 %4263  ;;  %v4296_v45 = vmul.f32 %v9526_v11, %v4269_v3  ;;  %v4667_v60 = vmul.f32 %v9531_v12, %v4269_v3 }
 0x1ad   : > { %v4304_v49 = vadd.f32 %v4296_v45, %v4225_v39  ;;  %v4447_v45 = vadd.f32 %v4439_v40, %v9899_v33 }
 0x1ae   : > { %v4340_v28 = vpop.permute.xlu0 %4339 }
 0x1af   : > { %v10064_v9 = vpop.permute.xlu1 %4334  ;;  %v4367_v51 = vmul.f32 %v9538_v14, %v4340_v28  ;;  %v4683_v10 = vmul.f32 %v9526_v11, %v4340_v28  ;;  %v4709_v11 = vadd.f32 %v4701_v20, %v9905_v0 }
 0x1b1   : > { %v4375_v61 = vadd.f32 %v4367_v51, %v4304_v49  ;;  %v4691_v32 = vadd.f32 %v4683_v10, %v4667_v60  ;;  %v4708_v49 = vadd.f32 %v4700_v13, %v9901_v57 }
 0x1b2   : > { %v4411_v29 = vpop.permute.xlu0 %4410 }
 0x1b3   : > { %v10071_v54 = vpop.permute.xlu1 %4405  ;;  %v4438_v38 = vmul.f32 %v9575_v50, %v4411_v29  ;;  %v4699_v24 = vmul.f32 %v9538_v14, %v4411_v29 }
 0x1b5   : > { %v4446_v30 = vadd.f32 %v4438_v38, %v4375_v61  ;;  %v4707_v2 = vadd.f32 %v4699_v24, %v4691_v32 }
 0x1b6   : > { %v4492_v12 = vpop.permute.xlu0 %4491 }
 0x1b7   : > { %v10077_v55 = vpop.permute.xlu1 %4476  ;;  %v4511_v37 = vmul.f32 %v9632_v43, %v4492_v12  ;;  %v4717_v56 = vmul.f32 %v9575_v50, %v4492_v12 }
 0x1b9   : > { %v4519_v36 = vadd.f32 %v4511_v37, %v4448_v34  ;;  %v4725_v63 = vadd.f32 %v4717_v56, %v4709_v11 }
 0x1ba   : > { %v4482_v53 = vpop.permute.xlu0 %4481 }
 0x1bb   : > { %v4426_v23 = vpop.permute.xlu1 %4425  ;;  %v4509_v31 = vmul.f32 %v9632_v43, %v4482_v53  ;;  %v4715_v16 = vmul.f32 %v9575_v50, %v4482_v53 }
 0x1bc   : > { %v4441_v5 = vmul.f32 %v9575_v50, %v4426_v23  ;;  %v4702_v6 = vmul.f32 %v9538_v14, %v4426_v23 }
 0x1bd   : > { %v4517_v44 = vadd.f32 %v4509_v31, %v4446_v30  ;;  %v4723_v0 = vadd.f32 %v4715_v16, %v4707_v2 }
 0x1be   : > { %v4449_v27 = vadd.f32 %v4441_v5, %v9954_v19  ;;  %v4710_v42 = vadd.f32 %v4702_v6, %v9956_v4  ;;  %v4563_v59 = vpop.permute.xlu0 %4562 }
 0x1bf   : > { %v10087_v47 = vpop.permute.xlu1 %4547  ;;  %v4582_v62 = vmul.f32 %v9689_v22, %v4563_v59  ;;  %v4733_v18 = vmul.f32 %v9632_v43, %v4563_v59 }
 0x1c1   : > { %v10093_v52 = vadd.f32 %v4582_v62, %v4519_v36  ;;  %v10095_v35 = vadd.f32 %v4733_v18, %v4725_v63 }
 0x1c2   : > { %v4553_v3 = vpop.permute.xlu0 %4552 }
 0x1c3   : > { %11168 = vst [vmem:[#allocation6_spill] sm:$0xff] %v10093_v52  ;;  %11169 = vst [vmem:[#allocation7_spill] sm:$0xff] %v10095_v35  ;;  %v4487_v39 = vpop.permute.xlu1 %4486  ;;  %v4580_v19 = vmul.f32 %v9689_v22, %v4553_v3  ;;  %v4731_v4 = vmul.f32 %v9632_v43, %v4553_v3 }
 0x1c4   : > { %v4510_v28 = vmul.f32 %v9632_v43, %v4487_v39  ;;  %v4716_v60 = vmul.f32 %v9575_v50, %v4487_v39 }
 0x1c5   : > { %v10103_v51 = vadd.f32 %v4580_v19, %v4517_v44  ;;  %v10105_v14 = vadd.f32 %v4731_v4, %v4723_v0 }
 0x1c6   : > { %v4518_v7 = vadd.f32 %v4510_v28, %v4447_v45  ;;  %v4724_v10 = vadd.f32 %v4716_v60, %v4708_v49 }
 0x1c7   : > { %11170 = vst [vmem:[#allocation8_spill] sm:$0xff] %v10103_v51  ;;  %11171 = vst [vmem:[#allocation9_spill] sm:$0xff] %v10105_v14  ;;  %v4497_v61 = vpop.permute.xlu1 %4496 }
 0x1c8   : > { %v4512_v32 = vmul.f32 %v9632_v43, %v4497_v61  ;;  %v4718_v29 = vmul.f32 %v9575_v50, %v4497_v61 }
 0x1ca   : > { %v4520_v26 = vadd.f32 %v4512_v32, %v4449_v27  ;;  %v4726_v20 = vadd.f32 %v4718_v29, %v4710_v42 }
 0x1cb   : > { %v10109_v33 = vpop.permute.xlu1 %4618 }
 0x1cf   : > { %v4558_v57 = vpop.permute.xlu1 %4557 }
 0x1d0   : > { %v4581_v38 = vmul.f32 %v9689_v22, %v4558_v57  ;;  %v4732_v24 = vmul.f32 %v9632_v43, %v4558_v57 }
 0x1d2   : > { %v10113_v30 = vadd.f32 %v4581_v38, %v4518_v7  ;;  %v10115_v2 = vadd.f32 %v4732_v24, %v4724_v10 }
 0x1d3   : > { %v4568_v12 = vpop.permute.xlu1 %4567 }
 0x1d4   : > { %v4583_v34 = vmul.f32 %v9689_v22, %v4568_v12  ;;  %v4734_v11 = vmul.f32 %v9632_v43, %v4568_v12 }
 0x1d6   : > { %v10119_v37 = vadd.f32 %v4583_v34, %v4520_v26  ;;  %v10121_v50 = vadd.f32 %v4734_v11, %v4726_v20 }
 0x1d8   : > { %11172 = vst [vmem:[#allocation10_spill] sm:$0xff] %v10119_v37  ;;  %11173 = vst [vmem:[#allocation11_spill] sm:$0xff] %v10121_v50 }
 0x1e0   : > { %v8530_v56 = vpop.f32.mrf.mxu1 }
 0x1e2   : > { %v1212_v36 = vpop.f32.mrf.mxu1 }
 0x1ee   : > { %v8527_v63 = vpop.f32.mrf.mxu0  ;;  %v8535_v53 = vpop.f32.mrf.mxu1 }
 0x1ef   : > { %v1305_v10 = vadd.f32 %v8535_v53, %v8527_v63 }
 0x1f0   : > { %v1202_v23 = vpop.f32.mrf.mxu0  ;;  %v1299_v31 = vpop.f32.mrf.mxu1 }
 0x1f1   : > { %v1300_v26 = vadd.f32 %v1299_v31, %v1202_v23 }
 0x1f2   : > { %v8538_v16 = vpop.f32.mrf.mxu1 }
 0x1f3   : > { %v8543_v5 = vpop.f32.mrf.mxu0  ;;  %v1315_v34 = vadd.f32 %v8538_v16, %v8530_v56  ;;  %v8001_v56 = vld [vmem:[%s11160_s7 + $0x1] ss:$0 sm:$0xff] }
 0x1f4   : > { %v1309_v6 = vpop.f32.mrf.mxu1  ;;  %v1422_v20 = vadd.f32 %v8543_v5, %v1305_v10 }
 0x1f5   : > { %v1402_v44 = vpop.f32.mrf.mxu0  ;;  %v1310_v37 = vadd.f32 %v1309_v6, %v1212_v36 }
 0x1f6   : > { %v8551_v27 = vpop.f32.mrf.mxu1  ;;  %v1421_v11 = vadd.f32 %v1402_v44, %v1300_v26 }
 0x1f7   : > { %v8546_v0 = vpop.f32.mrf.mxu0  ;;  %v1529_v1 = vadd.f32 %v8551_v27, %v1422_v20 }
 0x1f8   : > { %v1509_v22 = vpop.f32.mrf.mxu1  ;;  %v1424_v50 = vadd.f32 %v8546_v0, %v1315_v34 }
 0x1f9   : > { %v1412_v42 = vpop.f32.mrf.mxu0  ;;  %v1528_v63 = vadd.f32 %v1509_v22, %v1421_v11 }
 0x1fa   : > { %v8554_v43 = vpop.f32.mrf.mxu1 }
 0x1fb   : > { %v8559_v59 = vpop.f32.mrf.mxu0 }
 0x1fc   : > { %v1519_v18 = vpop.f32.mrf.mxu1  ;;  %v1636_v53 = vadd.f32 %v8559_v59, %v1529_v1 }
 0x1fd   : > { %v1616_v62 = vpop.f32.mrf.mxu0 }
 0x1fe   : > { %v8567_v13 = vpop.f32.mrf.mxu1 }
 0x1ff   : > { %v8562_v40 = vpop.f32.mrf.mxu0 }
 0x200   : > { %v1705_v39 = vpop.f32.mrf.mxu1 }
 0x201   : > { %v1626_v3 = vpop.f32.mrf.mxu0 }
 0x202   : > { %v8570_v4 = vpop.f32.mrf.mxu1 }
 0x203   : > { %v8575_v19 = vpop.f32.mrf.mxu0 }
 0x204   : > { %v1715_v49 = vpop.f32.mrf.mxu1  ;;  %v1796_v32 = vadd.f32 %v8575_v19, %v8567_v13 }
 0x205   : > { %v1790_v45 = vpop.f32.mrf.mxu0 }
 0x206   : > { %v8583_v60 = vpop.f32.mrf.mxu1  ;;  %v1791_v38 = vadd.f32 %v1790_v45, %v1705_v39  ;;  %v1423_v39 = vadd.f32 %v1412_v42, %v1310_v37  ;;  %v1531_v45 = vadd.f32 %v8554_v43, %v1424_v50  ;;  %v11174_v37 = vmov -1.0  }
 0x207   : > { %v8578_v28 = vpop.f32.mrf.mxu0  ;;  %v1895_v24 = vadd.f32 %v8583_v60, %v1796_v32  ;;  %v1635_v60 = vadd.f32 %v1616_v62, %v1528_v63  ;;  %v8071_v32 = vld [vmem:[%s9332_s21 + $0x98] sm:$0xff]  ;;  %v8012_v63 = vld [vmem:[%s11156_s3 + $0x30] sm:$0xff] }
 0x208   : > { %v1875_v61 = vpop.f32.mrf.mxu1  ;;  %v1806_v52 = vadd.f32 %v8578_v28, %v8570_v4  ;;  %v1530_v0 = vadd.f32 %v1519_v18, %v1423_v39  ;;  %v1638_v1 = vadd.f32 %v8562_v40, %v1531_v45  ;;  %v11175_v28 = vmov 0.0  }
 0x209   : > { %v1800_v7 = vpop.f32.mrf.mxu0  ;;  %v1894_v35 = vadd.f32 %v1875_v61, %v1791_v38  ;;  %v8008_v61 = vld [vmem:[%s11156_s3 + $0x20] sm:$0xff] }
 0x20a   : > { %v8586_v57 = vpop.f32.mrf.mxu1  ;;  %v1801_v19 = vadd.f32 %v1800_v7, %v1715_v49  ;;  %v1637_v59 = vadd.f32 %v1626_v3, %v1530_v0  ;;  %v8072_v7 = vld [vmem:[%s9332_s21 + $0xa0] sm:$0xff] }
 0x20b   : > { %v8591_v29 = vpop.f32.mrf.mxu0  ;;  %v1897_v23 = vadd.f32 %v8586_v57, %v1806_v52 }
 0x20c   : > { %v1885_v58 = vpop.f32.mrf.mxu1  ;;  %v1984_v51 = vadd.f32 %v8591_v29, %v1895_v24  ;;  %v8070_v29 = vld [vmem:[%s9332_s21 + $0x90] sm:$0xff] }
 0x20d   : > { %v1964_v12 = vpop.f32.mrf.mxu0  ;;  %v1896_v27 = vadd.f32 %v1885_v58, %v1801_v19 }
 0x20e   : > { %v8599_v13 = vpop.f32.mrf.mxu1  ;;  %v1983_v31 = vadd.f32 %v1964_v12, %v1894_v35 }
 0x20f   : > { %v8594_v14 = vpop.f32.mrf.mxu0  ;;  %v2089_v5 = vadd.f32 %v8599_v13, %v1984_v51  ;;  %v8016_v13 = vld [vmem:[%s11156_s3 + $0x40] sm:$0xff] }
 0x210   : > { %v2069_v44 = vpop.f32.mrf.mxu1  ;;  %v1986_v4 = vadd.f32 %v8594_v14, %v1897_v23 }
 0x211   : > { %v1974_v16 = vpop.f32.mrf.mxu0  ;;  %v2093_v36 = vmax.f32 %v1636_v53, %v2089_v5  ;;  %v2088_v6 = vadd.f32 %v2069_v44, %v1983_v31  ;;  %v8017_v53 = vld [vmem:[%s11156_s3 + $0x48] sm:$0xff]  ;;  %v10205_v44 = vld [vmem:[%s11157_s4 + $0x18] sm:$0xff] }
 0x212   : > { %v8602_v22 = vpop.f32.mrf.mxu1  ;;  %v1985_v52 = vadd.f32 %v1974_v16, %v1896_v27  ;;  %v4598_v16 = vld [vmem:[#allocation2 + $0x66] ss:$2 sm:$0xff] }
 0x213   : > { %vm2102_vm14 = vcmp.ge.f32.partialorder %v2093_v36, %v8001_v56  ;;  %v2092_v35 = vmax.f32 %v1635_v60, %v2088_v6  ;;  %v2091_v51 = vadd.f32 %v8602_v22, %v1986_v4  ;;  %v10210_v27 = vld [vmem:[%s11157_s4 + $0x8] sm:$0xff]  ;;  %v10215_v4 = vld [vmem:[%s11157_s4 + $0x10] sm:$0xff]  ;;  %v10222_v36 = vld [vmem:[%s11157_s4] sm:$0xff] }
 0x214   : > { %v2106_v50 = vsel %vm2102_vm14, 1.0, %v11174_v37  ;;  %v2079_v42 = vpop.f32.mrf.mxu1 }
 0x215   : > { %2114 = vst.msk [vmem:[#allocation2 + $0xa] sm:$0xff] %vm2112_vm13, %v2106_v50  ;;  %vm2101_vm15 = vcmp.ge.f32.partialorder %v2092_v35, %v8001_v56  ;;  %v2095_v43 = vmax.f32 %v1638_v1, %v2091_v51  ;;  %v2090_v58 = vadd.f32 %v2079_v42, %v1985_v52 }
 0x216   : > { %v2105_v14 = vsel %vm2101_vm15, 1.0, %v11174_v37 }
 0x217   : > { %2113 = vst.msk [vmem:[#allocation2 + $0x2] sm:$0xff] %vm2112_vm13, %v2105_v14  ;;  %vm2104_vm4 = vcmp.ge.f32.partialorder %v2095_v43, %v8001_v56  ;;  %v2094_v62 = vmax.f32 %v1637_v59, %v2090_v58 }
 0x218   : > { %v2108_v18 = vsel %vm2104_vm4, 1.0, %v11174_v37  ;;  %vm3414_vm4 = vcmask 261120  }
 0x219   : > { %2116 = vst.msk [vmem:[#allocation2 + $0x1a] sm:$0xff] %vm2112_vm13, %v2108_v18  ;;  %vm2103_vm5 = vcmp.ge.f32.partialorder %v2094_v62, %v8001_v56 }
 0x21a   : > { %v2107_v40 = vsel %vm2103_vm5, 1.0, %v11174_v37 }
 0x21b   : > { %2115 = vst.msk [vmem:[#allocation2 + $0x12] sm:$0xff] %vm2112_vm13, %v2107_v40 }
 0x21e   : > { %v2117_v3 = vld [vmem:[#allocation2] ss:$2 sm:$0xff]  ;;  %v2121_v49 = vld [vmem:[#allocation2 + $0x1] ss:$2 sm:$0xff] }
 0x21f   : > { %8607 = vmatprep.mubr.msk.f32.mxu0 %vm2112_vm13, %v2121_v49  ;;  %2953 = vst.msk [vmem:[#allocation2] sm:$0x1] %vm2952_vm6, %v11175_v28  ;;  %8614 = vmatprep.mubr.msk.f32.mxu1 %vm2112_vm13, %v2117_v3  ;;  %v2376_v10 = vld [vmem:[#allocation2 + $0x3] ss:$2 sm:$0xff]  ;;  %v2288_v34 = vld [vmem:[#allocation2 + $0x2] ss:$2 sm:$0xff] }
 0x222   : > { %v10144_v26 = vld [vmem:[#allocation2 + $0x14] ss:$2 sm:$0xff]  ;;  %v10146_v20 = vld [vmem:[#allocation2 + $0x5] ss:$2 sm:$0xff]  ;;  %v10148_v57 = vld [vmem:[#allocation2 + $0x15] ss:$2 sm:$0xff] }
 0x223   : > { %v2122_v38 = vld [vmem:[#allocation2 + $0x11] ss:$2 sm:$0xff]  ;;  %v2118_v24 = vld [vmem:[#allocation2 + $0x10] ss:$2 sm:$0xff]  ;;  %4154 = vst.msk [vmem:[#allocation2 + $0x23] sm:$0xff] %vm329_vm1, %v8072_v7 }
 0x224   : > { %v2289_v12 = vld [vmem:[#allocation2 + $0x12] ss:$2 sm:$0xff]  ;;  %8608 = vmatmul.mubr.msk.f32.vlgmr.msra.gmra.mxu0 %vm2112_vm13, %v2122_v38  ;;  %2954 = vst.msk [vmem:[#allocation2 + $0x11] sm:$0x1] %vm2952_vm6, %v11175_v28  ;;  %8615 = vmatmul.mubr.msk.f32.vlgmr.msra.gmra.mxu1 %vm2112_vm13, %v2118_v24  ;;  %v2377_v11 = vld [vmem:[#allocation2 + $0x13] ss:$2 sm:$0xff] }
 0x225   : > { %8618 = vmatpush3.msra.mxu0 %v10047_v8  ;;  %8621 = vmatprep.mubr.msk.f32.mxu0 %vm2112_vm13, %v2288_v34  ;;  %4153 = vst.msk [vmem:[#allocation2 + $0x1b] sm:$0xff] %vm329_vm1, %v8071_v32  ;;  %4152 = vst.msk [vmem:[#allocation2 + $0x13] sm:$0xff] %vm329_vm1, %v8070_v29  ;;  %v2464_v19 = vld [vmem:[#allocation2 + $0x4] ss:$2 sm:$0xff] }
 0x226   : > { %8619 = vmatprep.subr.mxu0 %v8008_v61  ;;  %8625 = vmatpush3.msra.mxu1 %v10056_v48 }
 0x227   : > { %8628 = vmatprep.mubr.msk.f32.mxu1 %vm2112_vm13, %v2376_v10  ;;  %8620 = vmatpush3.msra.mxu0 %v8008_v61 }
 0x228   : > { %8626 = vmatprep.subr.mxu1 %v8012_v63  ;;  %8631 = vmatprep.subr.mxu0 %v8017_v53 }
 0x229   : > { %8627 = vmatpush3.msra.mxu1 %v8012_v63  ;;  %8622 = vmatmul.mubr.msk.f32.vlgmr.msra.gmra.mxu0 %vm2112_vm13, %v2289_v12 }
 0x22a   : > { %8629 = vmatmul.mubr.msk.f32.vlgmr.msra.gmra.mxu1 %vm2112_vm13, %v2377_v11  ;;  %8632 = vmatpush3.msra.mxu0 %v8017_v53  ;;  %v4452_v5 = vld [vmem:[#allocation2 + $0x24] ss:$2 sm:$0xff]  ;;  %v4523_v45 = vld [vmem:[#allocation2 + $0x25] ss:$2 sm:$0xff] }
 0x22b   : > { %8638 = vmatprep.subr.mxu1 %v10021_v21  ;;  %8633 = vmatprep.subr.mxu0 %v8016_v13  ;;  %v4594_v60 = vld [vmem:[#allocation2 + $0x26] ss:$2 sm:$0xff]  ;;  %v4761_v56 = vld [vmem:[#allocation2 + $0x27] ss:$2 sm:$0xff] }
 0x22c   : > { %8635 = vmatprep.mubr.msk.f32.mxu0 %vm2112_vm13, %v2464_v19  ;;  %8639 = vmatpush3.msra.mxu1 %v10021_v21  ;;  %v4168_v23 = vld [vmem:[#allocation2 + $0x20] ss:$2 sm:$0xff]  ;;  %v4380_v31 = vld [vmem:[#allocation2 + $0x13] ss:$2 sm:$0xff] }
 0x22d   : > { %8642 = vmatprep.mubr.msk.f32.mxu1 %vm2112_vm13, %v2288_v34  ;;  %8634 = vmatpush3.msra.mxu0 %v8016_v13  ;;  %v4239_v21 = vld [vmem:[#allocation2 + $0x21] ss:$2 sm:$0xff] }
 0x22e   : > { %8640 = vmatprep.subr.mxu1 %v10033_v17  ;;  %8645 = vmatprep.subr.mxu0 %v10026_v46  ;;  %v4760_v39 = vld [vmem:[#allocation2 + $0x17] ss:$2 sm:$0xff] }
 0x22f   : > { %8641 = vmatpush3.msra.mxu1 %v10033_v17  ;;  %4187 = vperm.xlu0 %9152, %v4168_v23   ;;  %v4451_v17 = vld [vmem:[#allocation2 + $0x14] ss:$2 sm:$0xff] }
 0x230   : > { %4395 = vperm.xlu1 %9153, %v4380_v31   ;;  %8636 = vmatmul.mubr.msk.f32.vlgmr.msra.gmra.mxu0 %vm2112_vm13, %v10144_v26  ;;  %v10253_v23 = vld [vmem:[%s11154_s1 + $0x2] ss:$0 sm:$0xff] }
 0x231   : > { %8643 = vmatmul.mubr.msk.f32.vlgmr.msra.gmra.mxu1 %vm2112_vm13, %v2289_v12  ;;  %8646 = vmatpush3.msra.mxu0 %v10026_v46  ;;  %v4310_v46 = vld [vmem:[#allocation2 + $0x22] ss:$2 sm:$0xff]  ;;  %v4698_v31 = vmul.f32 %v10253_v23, %v10071_v54 }
 0x232   : > { %8652 = vmatprep.subr.mxu1 %v10047_v8  ;;  %8647 = vmatprep.subr.mxu0 %v10038_v41 }
 0x233   : > { %8649 = vmatprep.mubr.msk.f32.mxu0 %vm2112_vm13, %v2121_v49  ;;  %8653 = vmatpush3.msra.mxu1 %v10047_v8  ;;  %v4381_v8 = vld [vmem:[#allocation2 + $0x23] ss:$2 sm:$0xff] }
 0x234   : > { %8656 = vmatprep.mubr.msk.f32.mxu1 %vm2112_vm13, %v2376_v10  ;;  %8648 = vmatpush3.msra.mxu0 %v10038_v41  ;;  %v4522_v41 = vld [vmem:[#allocation2 + $0x15] ss:$2 sm:$0xff] }
 0x235   : > { %8654 = vmatprep.subr.mxu1 %v8008_v61  ;;  %8659 = vmatprep.subr.mxu0 %v10056_v48 }
 0x236   : > { %8655 = vmatpush3.msra.mxu1 %v8008_v61  ;;  %4258 = vperm.xlu0 %9152, %v4239_v21  }
 0x237   : > { %4466 = vperm.xlu1 %9153, %v4451_v17   ;;  %8650 = vmatmul.mubr.msk.f32.vlgmr.msra.gmra.mxu0 %vm2112_vm13, %v2122_v38 }
 0x238   : > { %8657 = vmatmul.mubr.msk.f32.vlgmr.msra.gmra.mxu1 %vm2112_vm13, %v2377_v11  ;;  %8660 = vmatpush3.msra.mxu0 %v10056_v48  ;;  %v4593_v48 = vld [vmem:[#allocation2 + $0x16] ss:$2 sm:$0xff] }
 0x239   : > { %8666 = vmatprep.subr.mxu1 %v8017_v53  ;;  %8661 = vmatprep.subr.mxu0 %v8012_v63 }
 0x23a   : > { %8663 = vmatprep.mubr.msk.f32.mxu0 %vm2112_vm13, %v2464_v19  ;;  %8667 = vmatpush3.msra.mxu1 %v8017_v53  ;;  %v10246_v53 = vld [vmem:[%s11154_s1] ss:$0 sm:$0xff] }
 0x23b   : > { %8670 = vmatprep.mubr.msk.f32.mxu1 %vm2112_vm13, %v10146_v20  ;;  %8662 = vmatpush3.msra.mxu0 %v8012_v63 }
 0x23c   : > { %8668 = vmatprep.subr.mxu1 %v8016_v13  ;;  %4329 = vperm.xlu0 %9152, %v4310_v46  }
 0x23d   : > { %8669 = vmatpush3.msra.mxu1 %v8016_v13  ;;  %4537 = vperm.xlu1 %9153, %v4522_v41   ;;  %v4666_v13 = vmul.f32 %v10246_v53, %v10060_v15  ;;  %v4224_v41 = vmul.f32 %v10246_v53, %v10040_v25 }
 0x23e   : > { %8664 = vmatmul.mubr.msk.f32.vlgmr.msra.gmra.mxu0 %vm2112_vm13, %v10144_v26  ;;  %8671 = vmatmul.mubr.msk.f32.vlgmr.msra.gmra.mxu1 %vm2112_vm13, %v10148_v57  ;;  %v10237_v57 = vld [vmem:[%s11154_s1 + $0x1] ss:$0 sm:$0xff] }
 0x23f   : > { %8673 = vmatprep.subr.mxu0 %v11175_v28  ;;  %8680 = vmatprep.subr.mxu1 %v11175_v28  ;;  %v4682_v38 = vmul.f32 %v10237_v57, %v10064_v9  ;;  %v4295_v63 = vmul.f32 %v10237_v57, %v10060_v15  ;;  %v8030_v15 = vld [vmem:[%s11160_s7 + $0x2] ss:$0 sm:$0xff] }
 0x240   : > { %4400 = vperm.xlu0 %9152, %v4381_v8   ;;  %8674 = vmatpush3.msra.mxu0 %v10205_v44  ;;  %v4366_v8 = vmul.f32 %v10253_v23, %v10064_v9 }
 0x241   : > { %4608 = vperm.xlu1 %9153, %v4593_v48   ;;  %8681 = vmatpush3.msra.mxu1 %v10210_v27  ;;  %v4690_v48 = vadd.f32 %v4682_v38, %v4666_v13  ;;  %v4766_v13 = vld [vmem:[#allocation2 + $0x77] ss:$2 sm:$0xff] }
 0x242   : > { %8675 = vmatprep.subr.mxu0 %v11175_v28  ;;  %8682 = vmatprep.subr.mxu1 %v11175_v28 }
 0x243   : > { %8676 = vmatpush3.msra.mxu0 %v10215_v4  ;;  %8677 = vmatprep.mubr.msk.f32.mxu0 %vm9227_vm7, %v11175_v28 }
 0x244   : > { %4471 = vperm.xlu0 %9152, %v4452_v5   ;;  %8683 = vmatpush3.msra.mxu1 %v10222_v36 }
 0x245   : > { %4774 = vperm.xlu1 %9153, %v4760_v39   ;;  %8684 = vmatprep.mubr.msk.f32.mxu1 %vm9227_vm7, %v11175_v28  ;;  %v10267_v39 = vld [vmem:[%s11154_s1 + $0x3] ss:$0 sm:$0xff] }
 0x246   : > { %8687 = vmatprep.subr.mxu0 %v11175_v28  ;;  %8694 = vmatprep.subr.mxu1 %v11175_v28  ;;  %v4437_v9 = vmul.f32 %v10267_v39, %v10071_v54  ;;  %v10286_v54 = vld [vmem:[%s11154_s1 + $0x5] ss:$0 sm:$0xff] }
 0x248   : > { %4542 = vperm.xlu0 %9152, %v4523_v45   ;;  %v4714_v45 = vmul.f32 %v10267_v39, %v10077_v55 }
 0x24c   : > { %4613 = vperm.xlu0 %9152, %v4594_v60  }
 0x250   : > { %4779 = vperm.xlu0 %9152, %v4761_v56  }
 0x254   : > { %4633 = vperm.xlu0 %9152, %v4598_v16   ;;  %v4303_v16 = vadd.f32 %v4295_v63, %v4224_v41  ;;  %v4764_v63 = vld [vmem:[#allocation2 + $0x57] ss:$2 sm:$0xff]  ;;  %v10381_v41 = vld [vmem:[%s11158_s5 + $0x8] sm:$0xff] }
 0x2e4   : > { %v8609_v6 = vpop.f32.mrf.mxu0  ;;  %v8616_v0 = vpop.f32.mrf.mxu1 }
 0x2e5   : > { %v2285_v14 = vadd.f32 %v8616_v0, %v8609_v6  ;;  %v4706_v6 = vadd.f32 %v4698_v31, %v4690_v48  ;;  %v10276_v0 = vld [vmem:[%s11154_s1 + $0x4] ss:$0 sm:$0xff]  ;;  %v10357_v31 = vld [vmem:[%s11158_s5 + $0x18] sm:$0xff] }
 0x2e6   : > { %v2198_v1 = vpop.f32.mrf.mxu0  ;;  %v2279_v22 = vpop.f32.mrf.mxu1  ;;  %v10399_v48 = vld [vmem:[%s11158_s5] sm:$0xff] }
 0x2e7   : > { %v2280_v3 = vadd.f32 %v2279_v22, %v2198_v1  ;;  %v4730_v1 = vmul.f32 %v10276_v0, %v10087_v47 }
 0x2e9   : > { %v8623_v52 = vpop.f32.mrf.mxu0 }
 0x2ea   : > { %v8630_v35 = vpop.f32.mrf.mxu1  ;;  %v2375_v49 = vadd.f32 %v8623_v52, %v2285_v14  ;;  %v4374_v52 = vadd.f32 %v4366_v8, %v4303_v16  ;;  %v4579_v14 = vmul.f32 %v10286_v54, %v10087_v47  ;;  %v8036_v47 = vld [vmem:[%s11157_s4 + $0x28] sm:$0xff]  ;;  %v10394_v8 = vld [vmem:[%s11158_s5 + $0x20] sm:$0xff] }
 0x2eb   : > { %v2365_v51 = vpop.f32.mrf.mxu0 }
 0x2ec   : > { %v2453_v50 = vpop.f32.mrf.mxu1  ;;  %v2374_v32 = vadd.f32 %v2365_v51, %v2280_v3  ;;  %v2463_v26 = vadd.f32 %v8630_v35, %v2375_v49  ;;  %v4785_v35 = vpop.permute.xlu1 %4784 }
 0x2ee   : > { %v2462_v34 = vadd.f32 %v2453_v50, %v2374_v32  ;;  %v4508_v50 = vmul.f32 %v10276_v0, %v10077_v55  ;;  %v8069_v32 = vld [vmem:[%s9332_s21 + $0x88] sm:$0xff] }
 0x2f0   : > { %v8637_v42 = vpop.f32.mrf.mxu0 }
 0x2f1   : > { %v8644_v59 = vpop.f32.mrf.mxu1  ;;  %v2551_v21 = vadd.f32 %v8637_v42, %v2463_v26  ;;  %v4722_v42 = vadd.f32 %v4714_v45, %v4706_v6 }
 0x2f2   : > { %v2541_v43 = vpop.f32.mrf.mxu0 }
 0x2f3   : > { %v2618_v58 = vpop.f32.mrf.mxu1  ;;  %v2550_v60 = vadd.f32 %v2541_v43, %v2462_v34  ;;  %v4738_v55 = vadd.f32 %v4730_v1, %v4722_v42 }
 0x2f7   : > { %v8651_v62 = vpop.f32.mrf.mxu0 }
 0x2f8   : > { %v2699_v18 = vadd.f32 %v8651_v62, %v8644_v59  ;;  %v8658_v40 = vpop.f32.mrf.mxu1  ;;  %v4746_v59 = vmul.f32 %v10286_v54, %v10109_v33  ;;  %v10297_v62 = vld [vmem:[%s11154_s1 + $0x6] ss:$0 sm:$0xff] }
 0x2f9   : > { %v2693_v7 = vpop.f32.mrf.mxu0  ;;  %v4650_v3 = vmul.f32 %v10297_v62, %v10109_v33  ;;  %v8035_v33 = vld [vmem:[%s11157_s4 + $0x20] sm:$0xff] }
 0x2fa   : > { %v2694_v10 = vadd.f32 %v2693_v7, %v2618_v58  ;;  %v2768_v61 = vpop.f32.mrf.mxu1  ;;  %v2778_v29 = vadd.f32 %v8658_v40, %v2699_v18  ;;  %v4445_v58 = vadd.f32 %v4437_v9, %v4374_v52  ;;  %v4810_v18 = vmul.f32 %v10297_v62, %v4785_v35 }
 0x2fb   : > { %v4754_v49 = vadd.f32 %v4746_v59, %v4738_v55 }
 0x2fc   : > { %v2777_v20 = vadd.f32 %v2768_v61, %v2694_v10  ;;  %v4516_v40 = vadd.f32 %v4508_v50, %v4445_v58 }
 0x2fd   : > { %v4818_v10 = vadd.f32 %v4810_v18, %v4754_v49 }
 0x2fe   : > { %v8665_v24 = vpop.f32.mrf.mxu0  ;;  %v8672_v12 = vpop.f32.mrf.mxu1  ;;  %v4587_v7 = vadd.f32 %v4579_v14, %v4516_v40 }
 0x2ff   : > { %v2855_v11 = vadd.f32 %v8665_v24, %v2778_v29 }
 0x300   : > { %v2845_v19 = vpop.f32.mrf.mxu0  ;;  %v2930_v5 = vpop.f32.mrf.mxu1  ;;  %v4658_v61 = vadd.f32 %v4650_v3, %v4587_v7 }
 0x301   : > { %v2940_v17 = vadd.f32 %v8672_v12, %v2855_v11  ;;  %v2854_v46 = vadd.f32 %v2845_v19, %v2777_v20  ;;  %v10321_v12 = vld [vmem:[%s11160_s7] ss:$0 sm:$0xff]  ;;  %v10352_v19 = vld [vmem:[%s11158_s5 + $0x38] sm:$0xff] }
 0x302   : > { %v4826_v38 = vmax.f32 %v4658_v61, %v4818_v10 }
 0x303   : > { %v2942_v56 = vmax.f32 %v2551_v21, %v2940_v17  ;;  %v2939_v25 = vadd.f32 %v2930_v5, %v2854_v46  ;;  %v10362_v21 = vld [vmem:[%s11158_s5 + $0x30] sm:$0xff]  ;;  %v10376_v46 = vld [vmem:[%s11158_s5 + $0x28] sm:$0xff] }
 0x304   : > { %vm4839_vm10 = vcmp.ge.f32.partialorder %v4826_v38, %v10321_v12  ;;  %v10369_v17 = vld [vmem:[%s11158_s5 + $0x10] sm:$0xff] }
 0x305   : > { %vm2949_vm8 = vcmp.ge.f32.partialorder %v2942_v56, %v8030_v15  ;;  %v2941_v22 = vmax.f32 %v2550_v60, %v2939_v25 }
 0x306   : > { %v2951_v51 = vsel %vm2949_vm8, 1.0, %v11174_v37  ;;  %vm3878_vm8 = vcmask 257024  }
 0x307   : > { %2956 = vst.msk [vmem:[#allocation2 + $0x9] sm:$0xff] %vm2112_vm13, %v2951_v51  ;;  %vm2948_vm9 = vcmp.ge.f32.partialorder %v2941_v22, %v8030_v15  ;;  %v4396_v15 = vpop.permute.xlu1 %4395 }
 0x308   : > { %v2950_v43 = vsel %vm2948_vm9, 1.0, %v11174_v37  ;;  %v4435_v50 = vmul.f32 %v10267_v39, %v4396_v15  ;;  %v4696_v42 = vmul.f32 %v10253_v23, %v4396_v15 }
 0x309   : > { %2955 = vst.msk [vmem:[#allocation2 + $0x1] sm:$0xff] %vm2112_vm13, %v2950_v43 }
 0x30b   : > { %v4467_v5 = vpop.permute.xlu1 %4466 }
 0x30c   : > { %v4506_v14 = vmul.f32 %v10276_v0, %v4467_v5  ;;  %v4712_v55 = vmul.f32 %v10267_v39, %v4467_v5 }
 0x30f   : > { %v4538_v45 = vpop.permute.xlu1 %4537 }
 0x310   : > { %v2960_v29 = vld [vmem:[#allocation2 + $0x1] ss:$2 sm:$0xff]  ;;  %v2957_v20 = vld [vmem:[#allocation2] ss:$2 sm:$0xff]  ;;  %v4577_v3 = vmul.f32 %v10286_v54, %v4538_v45  ;;  %v4728_v49 = vmul.f32 %v10276_v0, %v4538_v45 }
 0x311   : > { %v3328_v26 = vld [vmem:[#allocation2 + $0x3] ss:$2 sm:$0xff]  ;;  %8678 = vmatmul.mubr.msk.f32.vlgmr.msra.gmra.mxu0 %vm2112_vm13, %v2960_v29  ;;  %8685 = vmatmul.mubr.msk.f32.vlgmr.msra.gmra.mxu1 %vm2112_vm13, %v2957_v20  ;;  %v3110_v24 = vld [vmem:[#allocation2 + $0x2] ss:$2 sm:$0xff]  ;;  %3412 = vst.msk [vmem:[#allocation2] sm:$0x1] %vm3411_vm11, %v11175_v28 }
 0x312   : > { %8688 = vmatpush3.msra.mxu0 %v8036_v47  ;;  %8695 = vmatpush3.msra.mxu1 %v10205_v44  ;;  %4151 = vst.msk [vmem:[#allocation2 + $0xb] sm:$0xff] %vm329_vm1, %v8069_v32  ;;  %v4847_v44 = vsel %vm4839_vm10, 1.0, %v11174_v37 }
 0x313   : > { %8689 = vmatprep.subr.mxu0 %v11175_v28  ;;  %8696 = vmatprep.subr.mxu1 %v11175_v28  ;;  %3413 = vst.msk [vmem:[#allocation2 + $0x9] sm:$0x1] %vm3411_vm11, %v11175_v28  ;;  %v4609_v60 = vpop.permute.xlu1 %4608 }
 0x314   : > { %8690 = vmatpush3.msra.mxu0 %v8035_v33  ;;  %8691 = vmatprep.mubr.msk.f32.mxu0 %vm9227_vm7, %v11175_v28  ;;  %v4648_v61 = vmul.f32 %v10297_v62, %v4609_v60  ;;  %v4744_v32 = vmul.f32 %v10286_v54, %v4609_v60  ;;  %v11176_v60 = vld [vmem:[#allocation11_spill] sm:$0xff] }
 0x315   : > { %8697 = vmatpush3.msra.mxu1 %v10215_v4  ;;  %8698 = vmatprep.mubr.msk.f32.mxu1 %vm9227_vm7, %v11175_v28 }
 0x316   : > { %8701 = vmatprep.subr.mxu0 %v11175_v28  ;;  %8692 = vmatmul.mubr.msk.f32.vlgmr.msra.gmra.mxu0 %vm2112_vm13, %v3110_v24 }
 0x317   : > { %8699 = vmatmul.mubr.msk.f32.vlgmr.msra.gmra.mxu1 %vm2112_vm13, %v3110_v24  ;;  %8702 = vmatpush3.msra.mxu0 %v10210_v27  ;;  %v4597_v27 = vld [vmem:[#allocation2 + $0x56] ss:$2 sm:$0xff]  ;;  %v4775_v56 = vpop.permute.xlu1 %4774 }
 0x318   : > { %8708 = vmatprep.subr.mxu1 %v11175_v28  ;;  %8703 = vmatprep.subr.mxu0 %v11175_v28  ;;  %v4808_v38 = vmul.f32 %v10297_v62, %v4775_v56 }
 0x319   : > { %8709 = vmatpush3.msra.mxu1 %v8036_v47  ;;  %8704 = vmatpush3.msra.mxu0 %v10222_v36  ;;  %v4167_v4 = vld [vmem:[#allocation2 + $0x10] ss:$2 sm:$0xff]  ;;  %v4238_v34 = vld [vmem:[#allocation2 + $0x11] ss:$2 sm:$0xff] }
 0x31a   : > { %v4309_v11 = vld [vmem:[#allocation2 + $0x12] ss:$2 sm:$0xff]  ;;  %8710 = vmatprep.subr.mxu1 %v11175_v28  ;;  %8705 = vmatprep.mubr.msk.f32.mxu0 %vm9227_vm7, %v11175_v28 }
 0x31b   : > { %4857 = vst.msk [vmem:[#allocation2 + $0x1a] sm:$0xff] %vm1104_vm3, %v4847_v44  ;;  %8711 = vmatpush3.msra.mxu1 %v8035_v33  ;;  %8712 = vmatprep.mubr.msk.f32.mxu1 %vm9227_vm7, %v11175_v28  ;;  %v4599_v36 = vld [vmem:[#allocation2 + $0x76] ss:$2 sm:$0xff] }
 0x31c   : > { %8706 = vmatmul.mubr.msk.f32.vlgmr.msra.gmra.mxu0 %vm2112_vm13, %v2960_v29  ;;  %4182 = vperm.xlu1 %9153, %v4167_v4  }
 0x31d   : > { %8713 = vmatmul.mubr.msk.f32.vlgmr.msra.gmra.mxu1 %vm2112_vm13, %v3328_v26  ;;  %8715 = vmatprep.subr.mxu0 %v11175_v28 }
 0x31e   : > { %8726 = vmatprep.subr.mxu1 %v11175_v28  ;;  %8723 = vmatprep.mubr.msk.f32.mxu0 %vm9227_vm7, %v11175_v28 }
 0x31f   : > { %8734 = vmatprep.mubr.msk.f32.mxu1 %vm9227_vm7, %v11175_v28  ;;  %8716 = vmatpush3.msra.mxu0 %v10352_v19 }
 0x320   : > { %4253 = vperm.xlu1 %9153, %v4238_v34   ;;  %8727 = vmatpush3.msra.mxu1 %v10357_v31 }
 0x321   : > { %8717 = vmatprep.subr.mxu0 %v11175_v28  ;;  %8728 = vmatprep.subr.mxu1 %v11175_v28 }
 0x322   : > { %8718 = vmatpush3.msra.mxu0 %v10362_v21  ;;  %8729 = vmatpush3.msra.mxu1 %v10369_v17 }
 0x323   : > { %8719 = vmatprep.subr.mxu0 %v11175_v28  ;;  %8730 = vmatprep.subr.mxu1 %v11175_v28 }
 0x324   : > { %4324 = vperm.xlu1 %9153, %v4309_v11   ;;  %8720 = vmatpush3.msra.mxu0 %v10376_v46 }
 0x325   : > { %8731 = vmatpush3.msra.mxu1 %v10381_v41  ;;  %8721 = vmatprep.subr.mxu0 %v11175_v28 }
 0x326   : > { %8732 = vmatprep.subr.mxu1 %v11175_v28  ;;  %8722 = vmatpush3.msra.mxu0 %v10394_v8 }
 0x327   : > { %8733 = vmatpush3.msra.mxu1 %v10399_v48  ;;  %8737 = vmatprep.subr.mxu0 %v11175_v28 }
 0x328   : > { %4628 = vperm.xlu1 %9153, %v4597_v27   ;;  %8748 = vmatprep.subr.mxu1 %v11175_v28 }
 0x32c   : > { %4638 = vperm.xlu1 %9153, %v4599_v36  }
 0x330   : > { %4794 = vperm.xlu1 %9153, %v4764_v63  }
 0x334   : > { %4804 = vperm.xlu1 %9153, %v4766_v13  }
 0x397   : > { %v4183_v25 = vpop.permute.xlu1 %4182 }
 0x398   : > { %v4222_v9 = vmul.f32 %v10246_v53, %v4183_v25 }
 0x39b   : > { %v4254_v16 = vpop.permute.xlu1 %4253 }
 0x39c   : > { %v4293_v6 = vmul.f32 %v10237_v57, %v4254_v16  ;;  %v4664_v52 = vmul.f32 %v10246_v53, %v4254_v16 }
 0x39e   : > { %v4301_v1 = vadd.f32 %v4293_v6, %v4222_v9  ;;  %v11177_v9 = vld [vmem:[#allocation10_spill] sm:$0xff] }
 0x39f   : > { %v4325_v22 = vpop.permute.xlu1 %4324 }
 0x3a0   : > { %v4364_v35 = vmul.f32 %v10253_v23, %v4325_v22  ;;  %v4680_v51 = vmul.f32 %v10237_v57, %v4325_v22 }
 0x3a2   : > { %v4372_v59 = vadd.f32 %v4364_v35, %v4301_v1  ;;  %v4688_v43 = vadd.f32 %v4680_v51, %v4664_v52 }
 0x3a3   : > { %v4629_v58 = vpop.permute.xlu1 %4628 }
 0x3a4   : > { %v4443_v18 = vadd.f32 %v4435_v50, %v4372_v59  ;;  %v4704_v40 = vadd.f32 %v4696_v42, %v4688_v43  ;;  %v4748_v20 = vmul.f32 %v10286_v54, %v4629_v58  ;;  %v4652_v44 = vmul.f32 %v10297_v62, %v4629_v58 }
 0x3a6   : > { %v4514_v7 = vadd.f32 %v4506_v14, %v4443_v18  ;;  %v4720_v10 = vadd.f32 %v4712_v55, %v4704_v40  ;;  %v4756_v11 = vadd.f32 %v4748_v20, %v10115_v2  ;;  %v4660_v13 = vadd.f32 %v4652_v44, %v10113_v30  ;;  %v8049_v44 = vld [vmem:[%s11158_s5 + $0x48] sm:$0xff] }
 0x3a7   : > { %v4639_v47 = vpop.permute.xlu1 %4638 }
 0x3a8   : > { %v4585_v29 = vadd.f32 %v4577_v3, %v4514_v7  ;;  %v4736_v26 = vadd.f32 %v4728_v49, %v4720_v10  ;;  %v4750_v27 = vmul.f32 %v10286_v54, %v4639_v47  ;;  %v4654_v15 = vmul.f32 %v10297_v62, %v4639_v47 }
 0x3aa   : > { %v10424_v33 = vadd.f32 %v4648_v61, %v4585_v29  ;;  %v4752_v24 = vadd.f32 %v4744_v32, %v4736_v26  ;;  %v4758_v56 = vadd.f32 %v4750_v27, %v11176_v60  ;;  %v4662_v2 = vadd.f32 %v4654_v15, %v11177_v9  ;;  %v8041_v61 = vld [vmem:[%s11160_s7 + $0x3] ss:$0 sm:$0xff]  ;;  %v8051_v29 = vld [vmem:[%s11158_s5 + $0x58] sm:$0xff]  ;;  %v10539_v27 = vpop.permute.xlu0 %4623 }
 0x3ab   : > { %v4795_v4 = vpop.permute.xlu1 %4794 }
 0x3ac   : > { %v10427_v34 = vadd.f32 %v4808_v38, %v4752_v24  ;;  %v4812_v36 = vmul.f32 %v10297_v62, %v4795_v4  ;;  %v8050_v38 = vld [vmem:[%s11158_s5 + $0x50] sm:$0xff]  ;;  %v8057_v4 = vld [vmem:[%s11159_s6 + $0x20] sm:$0xff] }
 0x3ae   : > { %v4824_v63 = vmax.f32 %v10424_v33, %v10427_v34  ;;  %v4820_v5 = vadd.f32 %v4812_v36, %v4756_v11  ;;  %v3881_v11 = vld [vmem:[%s11159_s6] sm:$0xff]  ;;  %v4188_v36 = vpop.permute.xlu0 %4187 }
 0x3af   : > { %v4805_v45 = vpop.permute.xlu1 %4804 }
 0x3b0   : > { %v4828_v25 = vmax.f32 %v4660_v13, %v4820_v5  ;;  %v4814_v16 = vmul.f32 %v10297_v62, %v4805_v45 }
 0x3b2   : > { %vm4841_vm14 = vcmp.ge.f32.partialorder %v4828_v25, %v10321_v12  ;;  %v4822_v6 = vadd.f32 %v4814_v16, %v4758_v56  ;;  %v4259_v13 = vpop.permute.xlu0 %4258 }
 0x3b3   : > { %v4849_v1 = vsel %vm4841_vm14, 1.0, %v11174_v37 }
 0x3b4   : > { %4859 = vst.msk [vmem:[#allocation2 + $0x2a] sm:$0xff] %vm1104_vm3, %v4849_v1  ;;  %v4830_v22 = vmax.f32 %v4662_v2, %v4822_v6 }
 0x3b6   : > { %vm4843_vm15 = vcmp.ge.f32.partialorder %v4830_v22, %v10321_v12  ;;  %v4330_v15 = vpop.permute.xlu0 %4329 }
 0x3b7   : > { %v4851_v30 = vsel %vm4843_vm15, 1.0, %v11174_v37  ;;  %vm4129_vm15 = vcmask 32768  }
 0x3b8   : > { %4861 = vst.msk [vmem:[#allocation2 + $0x3a] sm:$0xff] %vm1104_vm3, %v4851_v30 }
 0x3ba   : > { %v4401_v60 = vpop.permute.xlu0 %4400 }
 0x3be   : > { %v4472_v16 = vpop.permute.xlu0 %4471 }
 0x3c2   : > { %v4543_v22 = vpop.permute.xlu0 %4542 }
 0x3d1   : > { %v3033_v52 = vpop.f32.mrf.mxu0  ;;  %v3106_v35 = vpop.f32.mrf.mxu1 }
 0x3d2   : > { %v3107_v55 = vadd.f32 %v3106_v35, %v3033_v52  ;;  %v4681_v35 = vmul.f32 %v10237_v57, %v4330_v15 }
 0x3d3   : > { %v8679_v51 = vpop.f32.mrf.mxu0  ;;  %v8686_v50 = vpop.f32.mrf.mxu1 }
 0x3d4   : > { %v4614_v51 = vpop.permute.xlu0 %4613 }
 0x3d6   : > { %v3183_v42 = vpop.f32.mrf.mxu0 }
 0x3d7   : > { %v3254_v59 = vpop.f32.mrf.mxu1  ;;  %v3187_v49 = vadd.f32 %v3183_v42, %v3107_v55  ;;  %v4697_v55 = vmul.f32 %v10253_v23, %v4401_v60 }
 0x3d8   : > { %v8693_v43 = vpop.f32.mrf.mxu0 }
 0x3d9   : > { %v8700_v58 = vpop.f32.mrf.mxu1 }
 0x3dc   : > { %v3324_v14 = vpop.f32.mrf.mxu0 }
 0x3dd   : > { %v3325_v18 = vadd.f32 %v3324_v14, %v3254_v59  ;;  %v3398_v40 = vpop.f32.mrf.mxu1  ;;  %v4294_v59 = vmul.f32 %v10237_v57, %v4259_v13  ;;  %v4665_v14 = vmul.f32 %v10246_v53, %v4259_v13 }
 0x3de   : > { %v8707_v3 = vpop.f32.mrf.mxu0 }
 0x3df   : > { %v3402_v7 = vadd.f32 %v3398_v40, %v3325_v18  ;;  %v8714_v10 = vpop.f32.mrf.mxu1  ;;  %v4223_v3 = vmul.f32 %v10246_v53, %v4188_v36  ;;  %v8068_v36 = vld [vmem:[%s9332_s21 + $0x80] sm:$0xff] }
 0x3e0   : > { %v4689_v10 = vadd.f32 %v4681_v35, %v4665_v14  ;;  %v10610_v14 = vld [vmem:[%s11155_s2 + $0x10] sm:$0xff] }
 0x3e1   : > { %v3403_v47 = vmax.f32 %v3187_v49, %v3402_v7  ;;  %v8056_v49 = vld [vmem:[%s11160_s7 + $0x4] ss:$0 sm:$0xff]  ;;  %v4365_v7 = vmul.f32 %v10253_v23, %v4330_v15 }
 0x3e3   : > { %vm3409_vm5 = vcmp.ge.f32.partialorder %v3403_v47, %v8041_v61  ;;  %v4713_v61 = vmul.f32 %v10267_v39, %v4472_v16 }
 0x3e4   : > { %v3410_v32 = vsel %vm3409_vm5, 1.0, %v11174_v37 }
 0x3e5   : > { %3415 = vst.msk [vmem:[#allocation2 + $0x1] sm:$0xff] %vm3414_vm4, %v3410_v32  ;;  %v4302_v32 = vadd.f32 %v4294_v59, %v4223_v3  ;;  %v4765_v59 = vld [vmem:[#allocation2 + $0x67] ss:$2 sm:$0xff] }
 0x3ec   : > { %v3421_v26 = vld [vmem:[#allocation2 + $0x1] ss:$2 sm:$0xf]  ;;  %v3416_v20 = vld [vmem:[#allocation2] ss:$2 sm:$0xf] }
 0x3ed   : > { %8724 = vmatmul.mubr.msk.f32.vlgmr.msra.gmra.mxu0 %vm3414_vm4, %v3421_v26  ;;  %8735 = vmatmul.mubr.msk.f32.vlgmr.msra.gmra.mxu1 %vm3414_vm4, %v3416_v20  ;;  %3876 = vst.msk [vmem:[#allocation2] sm:$0x1] %vm3411_vm11, %v11175_v28  ;;  %v3793_v24 = vld [vmem:[#allocation2 + $0x3] ss:$2 sm:$0xf]  ;;  %v4729_v20 = vmul.f32 %v10276_v0, %v4543_v22 }
 0x3ee   : > { %8738 = vmatpush3.msra.mxu0 %v8051_v29  ;;  %8749 = vmatpush3.msra.mxu1 %v10352_v19  ;;  %3877 = vst.msk [vmem:[#allocation2 + $0x5] sm:$0x1] %vm3411_vm11, %v11175_v28  ;;  %v8048_v19 = vld [vmem:[%s11158_s5 + $0x40] sm:$0xff] }
 0x3ef   : > { %8739 = vmatprep.subr.mxu0 %v11175_v28  ;;  %8750 = vmatprep.subr.mxu1 %v11175_v28 }
 0x3f0   : > { %8740 = vmatpush3.msra.mxu0 %v8050_v38  ;;  %8751 = vmatpush3.msra.mxu1 %v10362_v21  ;;  %v3573_v21 = vld [vmem:[#allocation2 + $0x2] ss:$2 sm:$0xf] }
 0x3f1   : > { %8741 = vmatprep.subr.mxu0 %v11175_v28  ;;  %8752 = vmatprep.subr.mxu1 %v11175_v28 }
 0x3f2   : > { %8742 = vmatpush3.msra.mxu0 %v8049_v44  ;;  %8753 = vmatpush3.msra.mxu1 %v10376_v46  ;;  %v8059_v46 = vld [vmem:[%s11159_s6 + $0x30] sm:$0xff] }
 0x3f3   : > { %8743 = vmatprep.subr.mxu0 %v11175_v28  ;;  %8754 = vmatprep.subr.mxu1 %v11175_v28 }
 0x3f4   : > { %8744 = vmatpush3.msra.mxu0 %v8048_v19  ;;  %8745 = vmatprep.mubr.msk.f32.mxu0 %vm9227_vm7, %v11175_v28 }
 0x3f5   : > { %8755 = vmatpush3.msra.mxu1 %v10394_v8  ;;  %8756 = vmatprep.mubr.msk.f32.mxu1 %vm9227_vm7, %v11175_v28  ;;  %v8058_v8 = vld [vmem:[%s11159_s6 + $0x28] sm:$0xff] }
 0x3f6   : > { %8746 = vmatmul.mubr.msk.f32.vlgmr.msra.gmra.mxu0 %vm3414_vm4, %v3573_v21  ;;  %8757 = vmatmul.mubr.msk.f32.vlgmr.msra.gmra.mxu1 %vm3414_vm4, %v3573_v21 }
 0x3f7   : > { %8759 = vmatprep.subr.mxu0 %v11175_v28  ;;  %8770 = vmatprep.subr.mxu1 %v11175_v28 }
 0x3f8   : > { %8760 = vmatpush3.msra.mxu0 %v10357_v31  ;;  %8771 = vmatpush3.msra.mxu1 %v8051_v29  ;;  %v8060_v31 = vld [vmem:[%s11159_s6 + $0x38] sm:$0xff]  ;;  %v4436_v29 = vmul.f32 %v10267_v39, %v4401_v60 }
 0x3f9   : > { %8761 = vmatprep.subr.mxu0 %v11175_v28  ;;  %8772 = vmatprep.subr.mxu1 %v11175_v28 }
 0x3fa   : > { %8762 = vmatpush3.msra.mxu0 %v10369_v17  ;;  %8773 = vmatpush3.msra.mxu1 %v8050_v38  ;;  %v3884_v17 = vld [vmem:[%s11159_s6 + $0x18] sm:$0xff]  ;;  %v4780_v38 = vpop.permute.xlu0 %4779 }
 0x3fb   : > { %8763 = vmatprep.subr.mxu0 %v11175_v28  ;;  %8774 = vmatprep.subr.mxu1 %v11175_v28 }
 0x3fc   : > { %8764 = vmatpush3.msra.mxu0 %v10381_v41  ;;  %8775 = vmatpush3.msra.mxu1 %v8049_v44  ;;  %v3883_v41 = vld [vmem:[%s11159_s6 + $0x10] sm:$0xff]  ;;  %v4373_v44 = vadd.f32 %v4365_v7, %v4302_v32 }
 0x3fd   : > { %8765 = vmatprep.subr.mxu0 %v11175_v28  ;;  %8776 = vmatprep.subr.mxu1 %v11175_v28 }
 0x3fe   : > { %8766 = vmatpush3.msra.mxu0 %v10399_v48  ;;  %8767 = vmatprep.mubr.msk.f32.mxu0 %vm9227_vm7, %v11175_v28  ;;  %v3882_v48 = vld [vmem:[%s11159_s6 + $0x8] sm:$0xff] }
 0x3ff   : > { %8777 = vmatpush3.msra.mxu1 %v8048_v19  ;;  %8778 = vmatprep.mubr.msk.f32.mxu1 %vm9227_vm7, %v11175_v28  ;;  %v4507_v19 = vmul.f32 %v10276_v0, %v4472_v16  ;;  %v8065_v16 = vld [vmem:[%s11159_s6 + $0x50] sm:$0xff] }
 0x400   : > { %8768 = vmatmul.mubr.msk.f32.vlgmr.msra.gmra.mxu0 %vm3414_vm4, %v3421_v26  ;;  %8779 = vmatmul.mubr.msk.f32.vlgmr.msra.gmra.mxu1 %vm3414_vm4, %v3793_v24  ;;  %v4705_v26 = vadd.f32 %v4697_v55, %v4689_v10  ;;  %v10618_v55 = vld [vmem:[%s11155_s2 + $0x18] sm:$0xff] }
 0x401   : > { %8781 = vmatprep.subr.mxu0 %v11175_v28  ;;  %8792 = vmatprep.subr.mxu1 %v11175_v28 }
 0x402   : > { %8789 = vmatprep.mubr.msk.f32.mxu0 %vm9227_vm7, %v11175_v28  ;;  %8800 = vmatprep.mubr.msk.f32.mxu1 %vm9227_vm7, %v11175_v28  ;;  %v4721_v21 = vadd.f32 %v4713_v61, %v4705_v26 }
 0x403   : > { %8782 = vmatpush3.msra.mxu0 %v8060_v31  ;;  %8793 = vmatpush3.msra.mxu1 %v3884_v17  ;;  %v4745_v31 = vmul.f32 %v10286_v54, %v4614_v51  ;;  %v4444_v17 = vadd.f32 %v4436_v29, %v4373_v44 }
 0x404   : > { %8783 = vmatprep.subr.mxu0 %v11175_v28  ;;  %8794 = vmatprep.subr.mxu1 %v11175_v28 }
 0x405   : > { %8784 = vmatpush3.msra.mxu0 %v8059_v46  ;;  %8795 = vmatpush3.msra.mxu1 %v3883_v41  ;;  %v4578_v46 = vmul.f32 %v10286_v54, %v4543_v22  ;;  %v4737_v41 = vadd.f32 %v4729_v20, %v4721_v21 }
 0x406   : > { %8785 = vmatprep.subr.mxu0 %v11175_v28  ;;  %8796 = vmatprep.subr.mxu1 %v11175_v28 }
 0x407   : > { %8786 = vmatpush3.msra.mxu0 %v8058_v8  ;;  %8797 = vmatpush3.msra.mxu1 %v3882_v48  ;;  %v4809_v8 = vmul.f32 %v10297_v62, %v4780_v38  ;;  %v4515_v48 = vadd.f32 %v4507_v19, %v4444_v17 }
 0x408   : > { %8787 = vmatprep.subr.mxu0 %v11175_v28  ;;  %8798 = vmatprep.subr.mxu1 %v11175_v28 }
 0x409   : > { %8788 = vmatpush3.msra.mxu0 %v8057_v4  ;;  %8799 = vmatpush3.msra.mxu1 %v3881_v11  ;;  %v4649_v4 = vmul.f32 %v10297_v62, %v4614_v51  ;;  %v4753_v11 = vadd.f32 %v4745_v31, %v4737_v41  ;;  %v4586_v13 = vadd.f32 %v4578_v46, %v4515_v48 }
 0x40a   : > { %8803 = vmatprep.subr.mxu0 %v11175_v28 }
 0x40b   : > { %v4817_v15 = vadd.f32 %v4809_v8, %v4753_v11 }
 0x4ad   : > { %v3496_v5 = vpop.f32.mrf.mxu0  ;;  %v3569_v45 = vpop.f32.mrf.mxu1 }
 0x4ae   : > { %v3570_v50 = vadd.f32 %v3569_v45, %v3496_v5  ;;  %v8066_v5 = vld [vmem:[%s11159_s6 + $0x58] sm:$0xff] }
 0x4af   : > { %v8725_v56 = vpop.f32.mrf.mxu0  ;;  %v8736_v25 = vpop.f32.mrf.mxu1 }
 0x4b0   : > { %v4657_v25 = vadd.f32 %v4649_v4, %v4586_v13 }
 0x4b6   : > { %v3648_v9 = vpop.f32.mrf.mxu0  ;;  %v3719_v2 = vpop.f32.mrf.mxu1 }
 0x4b7   : > { %v3652_v18 = vadd.f32 %v3648_v9, %v3570_v50  ;;  %v4825_v9 = vmax.f32 %v4657_v25, %v4817_v15 }
 0x4b8   : > { %v8747_v6 = vpop.f32.mrf.mxu0  ;;  %v8758_v1 = vpop.f32.mrf.mxu1 }
 0x4b9   : > { %v8063_v6 = vld [vmem:[%s11159_s6 + $0x40] sm:$0xff] }
 0x4c0   : > { %v3789_v30 = vpop.f32.mrf.mxu0  ;;  %v3863_v52 = vpop.f32.mrf.mxu1 }
 0x4c1   : > { %v3790_v42 = vadd.f32 %v3789_v30, %v3719_v2  ;;  %v8064_v2 = vld [vmem:[%s11159_s6 + $0x48] sm:$0xff] }
 0x4c2   : > { %v8769_v43 = vpop.f32.mrf.mxu0  ;;  %v8780_v58 = vpop.f32.mrf.mxu1 }
 0x4c3   : > { %v3867_v40 = vadd.f32 %v3863_v52, %v3790_v42  ;;  %v4763_v42 = vld [vmem:[#allocation2 + $0x47] ss:$2 sm:$0xff] }
 0x4c4   : > { %v10598_v43 = vld [vmem:[%s11155_s2 + $0x8] sm:$0xff]  ;;  %v10603_v58 = vld [vmem:[%s11155_s2] sm:$0xff] }
 0x4c5   : > { %v3868_v47 = vmax.f32 %v3652_v18, %v3867_v40  ;;  %8814 = vmatprep.subr.mxu1 %v10598_v43  ;;  %v4634_v18 = vpop.permute.xlu0 %4633 }
 0x4c7   : > { %vm3874_vm9 = vcmp.ge.f32.partialorder %v3868_v47, %v8056_v49 }
 0x4c8   : > { %v3875_v24 = vsel %vm3874_vm9, 1.0, %v11174_v37 }
 0x4c9   : > { %3879 = vst.msk [vmem:[#allocation2 + $0x1] sm:$0xf] %vm3878_vm8, %v3875_v24 }
 0x4d0   : > { %v3885_v45 = vld [vmem:[#allocation2 + $0x1] sm:$0xf] }
 0x4d1   : > { %v3880_v60 = vld [vmem:[#allocation2] sm:$0xf]  ;;  %8790 = vmatmul.mubr.msk.f32.vlgmr.msra.gmra.mxu0 %vm3414_vm4, %v3885_v45 }
 0x4d2   : > { %v4037_v56 = vld [vmem:[#allocation2 + $0x2] sm:$0xf]  ;;  %8801 = vmatmul.mubr.msk.f32.vlgmr.msra.gmra.mxu1 %vm3414_vm4, %v3880_v60  ;;  %8804 = vmatpush3.msra.mxu0 %v8066_v5 }
 0x4d3   : > { %4131 = vst.msk [vmem:[#allocation2] sm:$0x7] %vm310_vm0, %v11175_v28  ;;  %8811 = vmatprep.mubr.msk.f32.mxu0 %vm9227_vm7, %v11175_v28  ;;  %8805 = vmatprep.subr.mxu0 %v11175_v28  ;;  %vm4838_vm0 = vcmp.ge.f32.partialorder %v4825_v9, %v10321_v12 }
 0x4d4   : > { %4150 = vst.msk [vmem:[#allocation2 + $0x3] sm:$0xff] %vm329_vm1, %v8068_v36  ;;  %8806 = vmatpush3.msra.mxu0 %v8065_v16  ;;  %vm4837_vm1 = vcmp.ge.f32.partialorder %v4824_v63, %v10321_v12  ;;  %v4846_v50 = vsel %vm4838_vm0, 1.0, %v11174_v37  ;;  %8815 = vmatpush3.msra.mxu1 %v10598_v43  ;;  %v11178_v16 = vld [vmem:[#allocation9_spill] sm:$0xff] }
 0x4d5   : > { %8807 = vmatprep.subr.mxu0 %v11175_v28  ;;  %v4845_v33 = vsel %vm4837_vm1, 1.0, %v11174_v37  ;;  %8830 = vmatprep.subr.mxu1 %v10610_v14 }
 0x4d6   : > { %8808 = vmatpush3.msra.mxu0 %v8064_v2  ;;  %v4749_v2 = vmul.f32 %v10286_v54, %v4634_v18 }
 0x4d7   : > { %8809 = vmatprep.subr.mxu0 %v11175_v28 }
 0x4d8   : > { %8810 = vmatpush3.msra.mxu0 %v8063_v6 }
 0x4d9   : > { %8812 = vmatmul.mubr.msk.f32.vlgmr.msra.gmra.mxu0 %vm3414_vm4, %v4037_v56  ;;  %8822 = vmatprep.subr.mxu0 %v10603_v58 }
 0x4da   : > { %8823 = vmatpush3.msra.mxu0 %v10603_v58 }
 0x4db   : > { %v4166_v1 = vld [vmem:[#allocation2] ss:$2 sm:$0xff]  ;;  %v4237_v22 = vld [vmem:[#allocation2 + $0x1] ss:$2 sm:$0xff]  ;;  %8838 = vmatprep.subr.mxu0 %v10618_v55 }
 0x4dc   : > { %v4308_v30 = vld [vmem:[#allocation2 + $0x2] ss:$2 sm:$0xff]  ;;  %4177 = vperm.xlu0 %9152, %v4166_v1   ;;  %4852 = vst.msk [vmem:[#allocation2] sm:$0x3] %vm1101_vm2, %v11175_v28  ;;  %v4379_v52 = vld [vmem:[#allocation2 + $0x3] ss:$2 sm:$0xff] }
 0x4dd   : > { %v4450_v35 = vld [vmem:[#allocation2 + $0x4] ss:$2 sm:$0xff]  ;;  %v4521_v51 = vld [vmem:[#allocation2 + $0x5] ss:$2 sm:$0xff] }
 0x4de   : > { %v4592_v34 = vld [vmem:[#allocation2 + $0x6] ss:$2 sm:$0xff]  ;;  %v4759_v63 = vld [vmem:[#allocation2 + $0x7] ss:$2 sm:$0xff] }
 0x4df   : > { %4855 = vst.msk [vmem:[#allocation2 + $0xa] sm:$0xff] %vm1104_vm3, %v4845_v33  ;;  %4856 = vst.msk [vmem:[#allocation2 + $0x12] sm:$0xff] %vm1104_vm3, %v4846_v50  ;;  %v11180_v50 = vld [vmem:[#allocation7_spill] sm:$0xff] }
 0x4e0   : > { %4248 = vperm.xlu0 %9152, %v4237_v22   ;;  %v11179_v22 = vld [vmem:[#allocation8_spill] sm:$0xff]  ;;  %v4757_v33 = vadd.f32 %v4749_v2, %v11180_v50 }
 0x4e4   : > { %4319 = vperm.xlu0 %9152, %v4308_v30  }
 0x4e8   : > { %4390 = vperm.xlu0 %9152, %v4379_v52   ;;  %v4653_v52 = vmul.f32 %v10297_v62, %v4634_v18 }
 0x4ec   : > { %4461 = vperm.xlu0 %9152, %v4450_v35  }
 0x4f0   : > { %4532 = vperm.xlu0 %9152, %v4521_v51  }
 0x4f4   : > { %4603 = vperm.xlu0 %9152, %v4592_v34  }
 0x4f8   : > { %4769 = vperm.xlu0 %9152, %v4759_v63   ;;  %v11181_v63 = vld [vmem:[#allocation6_spill] sm:$0xff] }
 0x4fc   : > { %4789 = vperm.xlu0 %9152, %v4763_v42   ;;  %v4661_v42 = vadd.f32 %v4653_v52, %v11181_v63  ;;  %v10779_v52 = vld [vmem:[%s11156_s3 + $0x8] sm:$0xff] }
 0x500   : > { %4799 = vperm.xlu0 %9152, %v4765_v59  }
 0x557   : > { %v4178_v40 = vpop.permute.xlu0 %4177 }
 0x558   : > { %v4221_v32 = vmul.f32 %v10246_v53, %v4178_v40 }
 0x55b   : > { %v4249_v3 = vpop.permute.xlu0 %4248 }
 0x55c   : > { %v4292_v61 = vmul.f32 %v10237_v57, %v4249_v3  ;;  %v4663_v29 = vmul.f32 %v10246_v53, %v4249_v3 }
 0x55e   : > { %v4300_v24 = vadd.f32 %v4292_v61, %v4221_v32 }
 0x55f   : > { %v4320_v49 = vpop.permute.xlu0 %4319 }
 0x560   : > { %v4679_v47 = vmul.f32 %v10237_v57, %v4320_v49  ;;  %v4363_v26 = vmul.f32 %v10253_v23, %v4320_v49 }
 0x562   : > { %v4687_v44 = vadd.f32 %v4679_v47, %v4663_v29  ;;  %v4371_v31 = vadd.f32 %v4363_v26, %v4300_v24 }
 0x563   : > { %v4391_v7 = vpop.permute.xlu0 %4390 }
 0x564   : > { %v4695_v20 = vmul.f32 %v10253_v23, %v4391_v7  ;;  %v4434_v19 = vmul.f32 %v10267_v39, %v4391_v7 }
 0x566   : > { %v4703_v17 = vadd.f32 %v4695_v20, %v4687_v44  ;;  %v4442_v8 = vadd.f32 %v4434_v19, %v4371_v31  ;;  %v5173_v31 = vld [vmem:[#allocation2 + $0x13] ss:$2 sm:$0xff] }
 0x567   : > { %v4462_v10 = vpop.permute.xlu0 %4461 }
 0x568   : > { %v4711_v21 = vmul.f32 %v10267_v39, %v4462_v10  ;;  %v4505_v46 = vmul.f32 %v10276_v0, %v4462_v10  ;;  %v4747_v39 = vmul.f32 %v10286_v54, %v10539_v27  ;;  %v4863_v10 = vld [vmem:[#allocation2 + $0x10] ss:$2 sm:$0xff] }
 0x56a   : > { %v4719_v53 = vadd.f32 %v4711_v21, %v4703_v17  ;;  %v4513_v4 = vadd.f32 %v4505_v46, %v4442_v8  ;;  %v4755_v9 = vadd.f32 %v4747_v39, %v11178_v16  ;;  %v5067_v21 = vld [vmem:[#allocation2 + $0x12] ss:$2 sm:$0xff] }
 0x56b   : > { %v4533_v38 = vpop.permute.xlu0 %4532 }
 0x56c   : > { %v4727_v57 = vmul.f32 %v10276_v0, %v4533_v38  ;;  %v4576_v48 = vmul.f32 %v10286_v54, %v4533_v38  ;;  %v4651_v0 = vmul.f32 %v10297_v62, %v10539_v27 }
 0x56e   : > { %v4735_v11 = vadd.f32 %v4727_v57, %v4719_v53  ;;  %v4584_v15 = vadd.f32 %v4576_v48, %v4513_v4  ;;  %v4659_v30 = vadd.f32 %v4651_v0, %v11179_v22  ;;  %v10769_v22 = vld [vmem:[%s11156_s3 + $0x28] sm:$0xff] }
 0x56f   : > { %v4604_v41 = vpop.permute.xlu0 %4603 }
 0x570   : > { %v4743_v23 = vmul.f32 %v10286_v54, %v4604_v41  ;;  %v4647_v36 = vmul.f32 %v10297_v62, %v4604_v41 }
 0x572   : > { %v4751_v5 = vadd.f32 %v4743_v23, %v4735_v11  ;;  %v4655_v60 = vadd.f32 %v4647_v36, %v4584_v15 }
 0x573   : > { %v4770_v13 = vpop.permute.xlu0 %4769 }
 0x574   : > { %v4807_v45 = vmul.f32 %v10297_v62, %v4770_v13 }
 0x576   : > { %v4815_v56 = vadd.f32 %v4807_v45, %v4751_v5 }
 0x577   : > { %v4790_v25 = vpop.permute.xlu0 %4789 }
 0x578   : > { %v4823_v6 = vmax.f32 %v4655_v60, %v4815_v56  ;;  %v4811_v1 = vmul.f32 %v10297_v62, %v4790_v25  ;;  %v4125_v60 = vld [vmem:[%s11160_s7 + $0x5] sm:$0x1]  ;;  %v4126_v25 = vld [vmem:[%s11160_s7 + $0x6] sm:$0x1] }
 0x57a   : > { %vm4836_vm2 = vcmp.ge.f32.partialorder %v4823_v6, %v10321_v12  ;;  %v4819_v35 = vadd.f32 %v4811_v1, %v4755_v9  ;;  %v10755_v6 = vld [vmem:[%s11156_s3 + $0x18] sm:$0xff]  ;;  %v10760_v1 = vld [vmem:[%s11156_s3 + $0x10] sm:$0xff] }
 0x57b   : > { %v4844_v51 = vsel %vm4836_vm2, 1.0, %v11174_v37  ;;  %v4800_v27 = vpop.permute.xlu0 %4799 }
 0x57c   : > { %4854 = vst.msk [vmem:[#allocation2 + $0x2] sm:$0xff] %vm1104_vm3, %v4844_v51  ;;  %v4827_v34 = vmax.f32 %v4659_v30, %v4819_v35  ;;  %v4813_v54 = vmul.f32 %v10297_v62, %v4800_v27  ;;  %v10663_v62 = vld [vmem:[#allocation2 + $0x11] ss:$2 sm:$0xff]  ;;  %v10774_v30 = vld [vmem:[%s11156_s3 + $0x20] sm:$0xff]  ;;  %v10789_v35 = vld [vmem:[%s11156_s3 + $0x48] sm:$0xff] }
 0x57e   : > { %vm4840_vm10 = vcmp.ge.f32.partialorder %v4827_v34, %v10321_v12  ;;  %v4821_v59 = vadd.f32 %v4813_v54, %v4757_v33 }
 0x57f   : > { %v4848_v18 = vsel %vm4840_vm10, 1.0, %v11174_v37 }
 0x580   : > { %4858 = vst.msk [vmem:[#allocation2 + $0x22] sm:$0xff] %vm1104_vm3, %v4848_v18  ;;  %v4829_v40 = vmax.f32 %v4661_v42, %v4821_v59 }
 0x582   : > { %vm4842_vm14 = vcmp.ge.f32.partialorder %v4829_v40, %v10321_v12  ;;  %v10668_v12 = vld [vmem:[%s11155_s2 + $0x20] sm:$0xff] }
 0x583   : > { %v4850_v3 = vsel %vm4842_vm14, 1.0, %v11174_v37  ;;  %v10655_v49 = vld [vmem:[#allocation2 + $0x1] ss:$2 sm:$0xff]  ;;  %v4862_v7 = vld [vmem:[#allocation2] ss:$2 sm:$0xff] }
 0x584   : > { %4860 = vst.msk [vmem:[#allocation2 + $0x32] sm:$0xff] %vm1104_vm3, %v4850_v3  ;;  %8816 = vmatprep.mubr.msk.f32.mxu1 %vm1104_vm3, %v10655_v49  ;;  %8824 = vmatprep.mubr.msk.f32.mxu0 %vm1104_vm3, %v4862_v7  ;;  %v5066_v44 = vld [vmem:[#allocation2 + $0x2] ss:$2 sm:$0xff]  ;;  %v5172_v19 = vld [vmem:[#allocation2 + $0x3] ss:$2 sm:$0xff] }
 0x585   : > { %5854 = vst.msk [vmem:[#allocation2] sm:$0x3] %vm2109_vm12, %v11175_v28  ;;  %8817 = vmatmul.mubr.msk.f32.vlgmr.msra.gmra.mxu1 %vm1104_vm3, %v10663_v62  ;;  %8825 = vmatmul.mubr.msk.f32.vlgmr.msra.gmra.mxu0 %vm1104_vm3, %v4863_v10  ;;  %v5278_v8 = vld [vmem:[#allocation2 + $0x4] ss:$2 sm:$0xff]  ;;  %v5732_v5 = vld [vmem:[#allocation2 + $0x5] ss:$2 sm:$0xff] }
 0x586   : > { %8831 = vmatpush3.msra.mxu1 %v10610_v14  ;;  %8839 = vmatpush3.msra.mxu0 %v10618_v55 }
 0x587   : > { %v10675_v61 = vld [vmem:[#allocation2 + $0x21] ss:$2 sm:$0xff]  ;;  %v4864_v47 = vld [vmem:[#allocation2 + $0x20] ss:$2 sm:$0xff]  ;;  %8846 = vmatprep.subr.mxu1 %v10668_v12  ;;  %8854 = vmatprep.subr.mxu0 %v10598_v43 }
 0x588   : > { %v5068_v32 = vld [vmem:[#allocation2 + $0x22] ss:$2 sm:$0xff]  ;;  %8819 = vmatprep.mubr.msk.f32.mxu1 %vm1104_vm3, %v10675_v61  ;;  %8827 = vmatprep.mubr.msk.f32.mxu0 %vm1104_vm3, %v4864_v47  ;;  %v5174_v29 = vld [vmem:[#allocation2 + $0x23] ss:$2 sm:$0xff] }
 0x589   : > { %v10682_v26 = vld [vmem:[#allocation2 + $0x14] ss:$2 sm:$0xff]  ;;  %v10684_v20 = vld [vmem:[#allocation2 + $0x15] ss:$2 sm:$0xff] }
 0x58a   : > { %5855 = vst.msk [vmem:[#allocation2 + $0x22] sm:$0x3] %vm2109_vm12, %v11175_v28  ;;  %vm4117_vm12 = vcmask 35840  }
 0x58b   : > { %v4870_v38 = vld [vmem:[#allocation2 + $0x31] ss:$2 sm:$0xff]  ;;  %v4865_v24 = vld [vmem:[#allocation2 + $0x30] ss:$2 sm:$0xff] }
 0x58c   : > { %8820 = vmatmul.mubr.msk.f32.gmra.mxu1 %vm1104_vm3, %v4870_v38  ;;  %8828 = vmatmul.mubr.msk.f32.gmra.mxu0 %vm1104_vm3, %v4865_v24  ;;  %v5069_v17 = vld [vmem:[#allocation2 + $0x32] ss:$2 sm:$0xff]  ;;  %v5175_v46 = vld [vmem:[#allocation2 + $0x33] ss:$2 sm:$0xff] }
 0x58d   : > { %8832 = vmatprep.mubr.msk.f32.mxu1 %vm1104_vm3, %v5066_v44  ;;  %8840 = vmatprep.mubr.msk.f32.mxu0 %vm1104_vm3, %v5172_v19  ;;  %v5281_v4 = vld [vmem:[#allocation2 + $0x34] ss:$2 sm:$0xff]  ;;  %v5734_v0 = vld [vmem:[#allocation2 + $0x25] ss:$2 sm:$0xff]  ;;  %v5735_v16 = vld [vmem:[#allocation2 + $0x35] ss:$2 sm:$0xff] }
 0x590   : > { %8833 = vmatmul.mubr.msk.f32.vlgmr.msra.gmra.mxu1 %vm1104_vm3, %v5067_v21  ;;  %8841 = vmatmul.mubr.msk.f32.vlgmr.msra.gmra.mxu0 %vm1104_vm3, %v5173_v31 }
 0x591   : > { %8847 = vmatpush3.msra.mxu1 %v10668_v12  ;;  %8835 = vmatprep.mubr.msk.f32.mxu1 %vm1104_vm3, %v5068_v32  ;;  %v3960_v57 = vpop.f32.mrf.mxu0 }
 0x592   : > { %8843 = vmatprep.mubr.msk.f32.mxu0 %vm1104_vm3, %v5174_v29  ;;  %8855 = vmatpush3.msra.mxu0 %v10598_v43  ;;  %v4033_v41 = vpop.f32.mrf.mxu1  ;;  %v5280_v43 = vld [vmem:[#allocation2 + $0x24] ss:$2 sm:$0xff] }
 0x593   : > { %8862 = vmatprep.subr.mxu1 %v10603_v58  ;;  %8870 = vmatprep.subr.mxu0 %v10610_v14  ;;  %v8791_v53 = vpop.f32.mrf.mxu0  ;;  %v4034_v23 = vadd.f32 %v4033_v41, %v3960_v57 }
 0x594   : > { %8836 = vmatmul.mubr.msk.f32.gmra.mxu1 %vm1104_vm3, %v5069_v17  ;;  %8844 = vmatmul.mubr.msk.f32.gmra.mxu0 %vm1104_vm3, %v5175_v46  ;;  %v8802_v48 = vpop.f32.mrf.mxu1 }
 0x595   : > { %8848 = vmatprep.mubr.msk.f32.mxu1 %vm1104_vm3, %v5278_v8  ;;  %8856 = vmatprep.mubr.msk.f32.mxu0 %vm1104_vm3, %v5066_v44 }
 0x598   : > { %8849 = vmatmul.mubr.msk.f32.vlgmr.msra.gmra.mxu1 %vm1104_vm3, %v10682_v26  ;;  %8857 = vmatmul.mubr.msk.f32.vlgmr.msra.gmra.mxu0 %vm1104_vm3, %v5067_v21 }
 0x599   : > { %8863 = vmatpush3.msra.mxu1 %v10603_v58  ;;  %8851 = vmatprep.mubr.msk.f32.mxu1 %vm1104_vm3, %v5280_v43  ;;  %v4112_v11 = vpop.f32.mrf.mxu0 }
 0x59a   : > { %8859 = vmatprep.mubr.msk.f32.mxu0 %vm1104_vm3, %v5068_v32  ;;  %8871 = vmatpush3.msra.mxu0 %v10610_v14  ;;  %v4116_v36 = vadd.f32 %v4112_v11, %v4034_v23 }
 0x59b   : > { %8878 = vmatprep.subr.mxu1 %v10618_v55  ;;  %8886 = vmatprep.subr.mxu0 %v10668_v12  ;;  %v8813_v58 = vpop.f32.mrf.mxu0 }
 0x59c   : > { %8852 = vmatmul.mubr.msk.f32.gmra.mxu1 %vm1104_vm3, %v5281_v4  ;;  %8860 = vmatmul.mubr.msk.f32.gmra.mxu0 %vm1104_vm3, %v5069_v17  ;;  %v4118_v14 = vsel %vm4117_vm12, %v4116_v36, -inf }
 0x59d   : > { %8864 = vmatprep.mubr.msk.f32.mxu1 %vm1104_vm3, %v10655_v49  ;;  %8872 = vmatprep.mubr.msk.f32.mxu0 %vm1104_vm3, %v5172_v19  ;;  %v4119_v13 = vrot.slane %v4118_v14, 4 }
 0x59f   : > { %v4120_v39 = vmax.f32 %v4118_v14, %v4119_v13 }
 0x5a0   : > { %8865 = vmatmul.mubr.msk.f32.vlgmr.msra.gmra.mxu1 %vm1104_vm3, %v10663_v62  ;;  %8873 = vmatmul.mubr.msk.f32.vlgmr.msra.gmra.mxu0 %vm1104_vm3, %v5173_v31 }
 0x5a1   : > { %8879 = vmatpush3.msra.mxu1 %v10618_v55  ;;  %8867 = vmatprep.mubr.msk.f32.mxu1 %vm1104_vm3, %v10675_v61  ;;  %v4121_v15 = vrot.slane %v4120_v39, 2 }
 0x5a2   : > { %8875 = vmatprep.mubr.msk.f32.mxu0 %vm1104_vm3, %v5174_v29  ;;  %8887 = vmatpush3.msra.mxu0 %v10668_v12 }
 0x5a3   : > { %v4122_v55 = vmax.f32 %v4120_v39, %v4121_v15  ;;  %8894 = vmatprep.subr.mxu1 %v10755_v6  ;;  %8908 = vmatprep.subr.mxu0 %v10769_v22 }
 0x5a4   : > { %8868 = vmatmul.mubr.msk.f32.gmra.mxu1 %vm1104_vm3, %v4870_v38  ;;  %8876 = vmatmul.mubr.msk.f32.gmra.mxu0 %vm1104_vm3, %v5175_v46 }
 0x5a5   : > { %8880 = vmatprep.mubr.msk.f32.mxu1 %vm1104_vm3, %v5278_v8  ;;  %8888 = vmatprep.mubr.msk.f32.mxu0 %vm1104_vm3, %v5732_v5  ;;  %v4123_v45 = vrot.slane %v4122_v55, 1 }
 0x5a7   : > { %v4124_v56 = vmax.f32 %v4122_v55, %v4123_v45 }
 0x5a8   : > { %8881 = vmatmul.mubr.msk.f32.vlgmr.msra.gmra.mxu1 %vm1104_vm3, %v10682_v26  ;;  %8889 = vmatmul.mubr.msk.f32.vlgmr.msra.gmra.mxu0 %vm1104_vm3, %v10684_v20 }
 0x5a9   : > { %8883 = vmatprep.mubr.msk.f32.mxu1 %vm1104_vm3, %v5280_v43  ;;  %8891 = vmatprep.mubr.msk.f32.mxu0 %vm1104_vm3, %v5734_v0  ;;  %v4127_v9 = vmul.f32 %v4125_v60, %v4124_v56 }
 0x5aa   : > { %8895 = vmatpush3.msra.mxu1 %v10755_v6  ;;  %8909 = vmatpush3.msra.mxu0 %v10769_v22 }
 0x5ab   : > { %v4128_v2 = vadd.f32 %v4127_v9, %v4126_v25  ;;  %8896 = vmatprep.subr.mxu1 %v10760_v1  ;;  %8910 = vmatprep.subr.mxu0 %v10774_v30 }
 0x5ac   : > { %8884 = vmatmul.mubr.msk.f32.gmra.mxu1 %vm1104_vm3, %v5281_v4  ;;  %8892 = vmatmul.mubr.msk.f32.gmra.mxu0 %vm1104_vm3, %v5735_v16 }
 0x5ad   : > { %4130 = vst.msk [vmem:[%s10748_s22] sm:$0x1] %vm4129_vm15, %v4128_v2  ;;  %8897 = vmatpush3.msra.mxu1 %v10760_v1  ;;  %8911 = vmatpush3.msra.mxu0 %v10774_v30 }
 0x5ae   : > { %8901 = vmatprep.subr.mxu1 %v10779_v52  ;;  %8922 = vmatprep.subr.mxu0 %v10789_v35 }
 0x645   : > { %v8818_v51 = vpop.f32.mrf.mxu1  ;;  %v8826_v27 = vpop.f32.mrf.mxu0 }
 0x646   : > { %v5053_v31 = vadd.f32 %v8826_v27, %v8818_v51 }
 0x647   : > { %v4950_v50 = vpop.f32.mrf.mxu1  ;;  %v5047_v33 = vpop.f32.mrf.mxu0 }
 0x648   : > { %v5048_v46 = vadd.f32 %v5047_v33, %v4950_v50  ;;  %v8142_v33 = vld [vmem:[%s11160_s7 + $0x1] ss:$0 sm:$0xff] }
 0x64c   : > { %v8821_v34 = vpop.f32.mrf.mxu1  ;;  %v8829_v54 = vpop.f32.mrf.mxu0 }
 0x64d   : > { %v5063_v48 = vadd.f32 %v8829_v54, %v8821_v34 }
 0x64e   : > { %v4960_v63 = vpop.f32.mrf.mxu1  ;;  %v5057_v42 = vpop.f32.mrf.mxu0 }
 0x64f   : > { %v5058_v58 = vadd.f32 %v5057_v42, %v4960_v63 }
 0x650   : > { %v8834_v59 = vpop.f32.mrf.mxu1  ;;  %v8842_v18 = vpop.f32.mrf.mxu0 }
 0x651   : > { %v5169_v8 = vadd.f32 %v8834_v59, %v5053_v31 }
 0x652   : > { %v5149_v40 = vpop.f32.mrf.mxu1  ;;  %v5255_v3 = vpop.f32.mrf.mxu0 }
 0x653   : > { %v5168_v43 = vadd.f32 %v5149_v40, %v5048_v46  ;;  %v5275_v15 = vadd.f32 %v8842_v18, %v5169_v8  ;;  %v5862_v46 = vld [vmem:[%s11156_s3] sm:$0xff]  ;;  %v8154_v8 = vld [vmem:[%s11156_s3 + $0x38] sm:$0xff] }
 0x654   : > { %v8837_v49 = vpop.f32.mrf.mxu1  ;;  %v8845_v7 = vpop.f32.mrf.mxu0 }
 0x655   : > { %v5171_v14 = vadd.f32 %v8837_v49, %v5063_v48  ;;  %v5274_v0 = vadd.f32 %v5255_v3, %v5168_v43 }
 0x656   : > { %v5159_v62 = vpop.f32.mrf.mxu1  ;;  %v5265_v10 = vpop.f32.mrf.mxu0 }
 0x657   : > { %v5170_v60 = vadd.f32 %v5159_v62, %v5058_v58  ;;  %v5277_v27 = vadd.f32 %v8845_v7, %v5171_v14 }
 0x658   : > { %v8850_v12 = vpop.f32.mrf.mxu1  ;;  %v8858_v61 = vpop.f32.mrf.mxu0 }
 0x659   : > { %v5381_v16 = vadd.f32 %v8850_v12, %v5275_v15  ;;  %v5276_v40 = vadd.f32 %v5265_v10, %v5170_v60 }
 0x65a   : > { %v5361_v47 = vpop.f32.mrf.mxu1  ;;  %v5450_v32 = vpop.f32.mrf.mxu0 }
 0x65b   : > { %v5380_v50 = vadd.f32 %v5361_v47, %v5274_v0 }
 0x65c   : > { %v8853_v29 = vpop.f32.mrf.mxu1  ;;  %v8861_v26 = vpop.f32.mrf.mxu0 }
 0x65d   : > { %v5383_v3 = vadd.f32 %v8853_v29, %v5277_v27 }
 0x65e   : > { %v5371_v20 = vpop.f32.mrf.mxu1  ;;  %v5460_v38 = vpop.f32.mrf.mxu0 }
 0x660   : > { %v8866_v24 = vpop.f32.mrf.mxu1  ;;  %v8874_v44 = vpop.f32.mrf.mxu0 }
 0x661   : > { %v5541_v17 = vadd.f32 %v8866_v24, %v8858_v61 }
 0x662   : > { %v5535_v19 = vpop.f32.mrf.mxu1  ;;  %v5620_v21 = vpop.f32.mrf.mxu0 }
 0x663   : > { %v5536_v53 = vadd.f32 %v5535_v19, %v5450_v32  ;;  %v5640_v11 = vadd.f32 %v8874_v44, %v5541_v17  ;;  %v5382_v32 = vadd.f32 %v5371_v20, %v5276_v40 }
 0x664   : > { %v8869_v57 = vpop.f32.mrf.mxu1  ;;  %v8877_v41 = vpop.f32.mrf.mxu0 }
 0x665   : > { %v5551_v36 = vadd.f32 %v8869_v57, %v8861_v26  ;;  %v5639_v5 = vadd.f32 %v5620_v21, %v5536_v53 }
 0x666   : > { %v5545_v23 = vpop.f32.mrf.mxu1  ;;  %v5630_v4 = vpop.f32.mrf.mxu0 }
 0x667   : > { %v5546_v55 = vadd.f32 %v5545_v23, %v5460_v38  ;;  %v5642_v9 = vadd.f32 %v8877_v41, %v5551_v36  ;;  %v8157_v41 = vld [vmem:[%s11156_s3 + $0x40] sm:$0xff]  ;;  %v8153_v23 = vld [vmem:[%s11156_s3 + $0x30] sm:$0xff] }
 0x668   : > { %v8882_v13 = vpop.f32.mrf.mxu1  ;;  %v8890_v39 = vpop.f32.mrf.mxu0 }
 0x669   : > { %v5729_v45 = vadd.f32 %v8882_v13, %v5640_v11  ;;  %v5641_v63 = vadd.f32 %v5630_v4, %v5546_v55 }
 0x66a   : > { %v5709_v56 = vpop.f32.mrf.mxu1  ;;  %v5814_v25 = vpop.f32.mrf.mxu0 }
 0x66b   : > { %v5834_v2 = vadd.f32 %v8890_v39, %v5729_v45  ;;  %v5728_v51 = vadd.f32 %v5709_v56, %v5639_v5 }
 0x66c   : > { %v8885_v34 = vpop.f32.mrf.mxu1  ;;  %v8893_v54 = vpop.f32.mrf.mxu0 }
 0x66d   : > { %v5838_v42 = vmax.f32 %v5381_v16, %v5834_v2  ;;  %v5833_v59 = vadd.f32 %v5814_v25, %v5728_v51  ;;  %v5731_v18 = vadd.f32 %v8885_v34, %v5642_v9 }
 0x66e   : > { %v5719_v49 = vpop.f32.mrf.mxu1  ;;  %v5824_v47 = vpop.f32.mrf.mxu0 }
 0x66f   : > { %vm5847_vm3 = vcmp.ge.f32.partialorder %v5838_v42, %v8142_v33  ;;  %v5837_v62 = vmax.f32 %v5380_v50, %v5833_v59  ;;  %v5836_v12 = vadd.f32 %v8893_v54, %v5731_v18  ;;  %v5730_v61 = vadd.f32 %v5719_v49, %v5641_v63 }
 0x670   : > { %v5851_v7 = vsel %vm5847_vm3, 1.0, %v11174_v37 }
 0x671   : > { %5857 = vst.msk [vmem:[#allocation2 + $0xa] sm:$0xff] %vm2112_vm13, %v5851_v7  ;;  %vm5846_vm5 = vcmp.ge.f32.partialorder %v5837_v62, %v8142_v33  ;;  %v5840_v26 = vmax.f32 %v5383_v3, %v5836_v12  ;;  %v5835_v38 = vadd.f32 %v5824_v47, %v5730_v61  ;;  %v8171_v7 = vld [vmem:[%s11160_s7 + $0x2] ss:$0 sm:$0xff] }
 0x672   : > { %v5850_v24 = vsel %vm5846_vm5, 1.0, %v11174_v37 }
 0x673   : > { %5856 = vst.msk [vmem:[#allocation2 + $0x2] sm:$0xff] %vm2112_vm13, %v5850_v24  ;;  %vm5849_vm9 = vcmp.ge.f32.partialorder %v5840_v26, %v8142_v33  ;;  %v5839_v10 = vmax.f32 %v5382_v32, %v5835_v38 }
 0x674   : > { %v5853_v29 = vsel %vm5849_vm9, 1.0, %v11174_v37 }
 0x675   : > { %5859 = vst.msk [vmem:[#allocation2 + $0x1a] sm:$0xff] %vm2112_vm13, %v5853_v29  ;;  %vm5848_vm0 = vcmp.ge.f32.partialorder %v5839_v10, %v8142_v33 }
 0x676   : > { %v5852_v44 = vsel %vm5848_vm0, 1.0, %v11174_v37 }
 0x677   : > { %5858 = vst.msk [vmem:[#allocation2 + $0x12] sm:$0xff] %vm2112_vm13, %v5852_v44  ;;  %v8177_v44 = vld [vmem:[%s11157_s4 + $0x28] sm:$0xff] }
 0x67a   : > { %v5864_v20 = vld [vmem:[#allocation2 + $0x1] ss:$2 sm:$0xff]  ;;  %v6030_v19 = vld [vmem:[#allocation2 + $0x2] ss:$2 sm:$0xff] }
 0x67b   : > { %v5860_v21 = vld [vmem:[#allocation2] ss:$2 sm:$0xff]  ;;  %8898 = vmatprep.mubr.msk.f32.mxu1 %vm2112_vm13, %v5864_v20  ;;  %8912 = vmatprep.mubr.msk.f32.mxu0 %vm2112_vm13, %v6030_v19  ;;  %v6117_v53 = vld [vmem:[#allocation2 + $0x3] ss:$2 sm:$0xff] }
 0x67c   : > { %6691 = vst.msk [vmem:[#allocation2] sm:$0x1] %vm2952_vm6, %v11175_v28 }
 0x67e   : > { %v5865_v31 = vld [vmem:[#allocation2 + $0x11] ss:$2 sm:$0xff]  ;;  %v6031_v17 = vld [vmem:[#allocation2 + $0x12] ss:$2 sm:$0xff] }
 0x67f   : > { %8899 = vmatmul.mubr.msk.f32.vlgmr.msra.gmra.mxu1 %vm2112_vm13, %v5865_v31  ;;  %8913 = vmatmul.mubr.msk.f32.vlgmr.msra.gmra.mxu0 %vm2112_vm13, %v6031_v17  ;;  %v6204_v57 = vld [vmem:[#allocation2 + $0x4] ss:$2 sm:$0xff]  ;;  %v6595_v48 = vld [vmem:[#allocation2 + $0x5] ss:$2 sm:$0xff]  ;;  %v6205_v4 = vld [vmem:[#allocation2 + $0x14] ss:$2 sm:$0xff] }
 0x680   : > { %8902 = vmatpush3.msra.mxu1 %v10779_v52  ;;  %8905 = vmatprep.mubr.msk.f32.mxu1 %vm2112_vm13, %v5860_v21  ;;  %6692 = vst.msk [vmem:[#allocation2 + $0x11] sm:$0x1] %vm2952_vm6, %v11175_v28  ;;  %v5861_v43 = vld [vmem:[#allocation2 + $0x10] ss:$2 sm:$0xff]  ;;  %v6118_v11 = vld [vmem:[#allocation2 + $0x13] ss:$2 sm:$0xff] }
 0x681   : > { %8903 = vmatprep.subr.mxu1 %v5862_v46  ;;  %8923 = vmatpush3.msra.mxu0 %v10789_v35  ;;  %v8176_v21 = vld [vmem:[%s11157_s4 + $0x20] sm:$0xff] }
 0x682   : > { %8926 = vmatprep.mubr.msk.f32.mxu0 %vm2112_vm13, %v6204_v57  ;;  %8904 = vmatpush3.msra.mxu1 %v5862_v46 }
 0x683   : > { %8924 = vmatprep.subr.mxu0 %v8157_v41  ;;  %8915 = vmatprep.subr.mxu1 %v8154_v8 }
 0x684   : > { %8925 = vmatpush3.msra.mxu0 %v8157_v41  ;;  %8906 = vmatmul.mubr.msk.f32.vlgmr.msra.gmra.mxu1 %vm2112_vm13, %v5861_v43  ;;  %v8183_v43 = vld [vmem:[%s11158_s5 + $0x20] sm:$0xff] }
 0x685   : > { %8916 = vmatpush3.msra.mxu1 %v8154_v8  ;;  %8927 = vmatmul.mubr.msk.f32.vlgmr.msra.gmra.mxu0 %vm2112_vm13, %v6205_v4 }
 0x686   : > { %8936 = vmatprep.subr.mxu0 %v10779_v52  ;;  %8917 = vmatprep.subr.mxu1 %v8153_v23 }
 0x687   : > { %8919 = vmatprep.mubr.msk.f32.mxu1 %vm2112_vm13, %v6117_v53  ;;  %8937 = vmatpush3.msra.mxu0 %v10779_v52  ;;  %v10879_v52 = vld [vmem:[%s11157_s4] sm:$0xff] }
 0x688   : > { %8940 = vmatprep.mubr.msk.f32.mxu0 %vm2112_vm13, %v5864_v20  ;;  %8918 = vmatpush3.msra.mxu1 %v8153_v23 }
 0x689   : > { %8938 = vmatprep.subr.mxu0 %v5862_v46  ;;  %8929 = vmatprep.subr.mxu1 %v10755_v6 }
 0x68a   : > { %8939 = vmatpush3.msra.mxu0 %v5862_v46  ;;  %8920 = vmatmul.mubr.msk.f32.vlgmr.msra.gmra.mxu1 %vm2112_vm13, %v6118_v11  ;;  %v8186_v46 = vld [vmem:[%s11158_s5 + $0x38] sm:$0xff] }
 0x68b   : > { %8930 = vmatpush3.msra.mxu1 %v10755_v6  ;;  %8941 = vmatmul.mubr.msk.f32.vlgmr.msra.gmra.mxu0 %vm2112_vm13, %v5865_v31  ;;  %v6596_v6 = vld [vmem:[#allocation2 + $0x15] ss:$2 sm:$0xff] }
 0x68c   : > { %8950 = vmatprep.subr.mxu0 %v8154_v8  ;;  %8931 = vmatprep.subr.mxu1 %v10760_v1 }
 0x68d   : > { %8933 = vmatprep.mubr.msk.f32.mxu1 %vm2112_vm13, %v6030_v19  ;;  %8951 = vmatpush3.msra.mxu0 %v8154_v8  ;;  %v10949_v8 = vld [vmem:[%s11158_s5 + $0x10] sm:$0xff] }
 0x68e   : > { %8954 = vmatprep.mubr.msk.f32.mxu0 %vm2112_vm13, %v6204_v57  ;;  %8932 = vmatpush3.msra.mxu1 %v10760_v1  ;;  %v10862_v1 = vld [vmem:[%s11157_s4 + $0x18] sm:$0xff] }
 0x68f   : > { %8952 = vmatprep.subr.mxu0 %v8153_v23  ;;  %8943 = vmatprep.subr.mxu1 %v10769_v22  ;;  %v10940_v57 = vld [vmem:[%s11158_s5 + $0x18] sm:$0xff] }
 0x690   : > { %8953 = vmatpush3.msra.mxu0 %v8153_v23  ;;  %8934 = vmatmul.mubr.msk.f32.vlgmr.msra.gmra.mxu1 %vm2112_vm13, %v6031_v17  ;;  %v10970_v23 = vld [vmem:[%s11158_s5] sm:$0xff] }
 0x691   : > { %8944 = vmatpush3.msra.mxu1 %v10769_v22  ;;  %8955 = vmatmul.mubr.msk.f32.vlgmr.msra.gmra.mxu0 %vm2112_vm13, %v6205_v4  ;;  %v10867_v22 = vld [vmem:[%s11157_s4 + $0x8] sm:$0xff] }
 0x692   : > { %8945 = vmatprep.subr.mxu1 %v10774_v30  ;;  %8947 = vmatprep.mubr.msk.f32.mxu1 %vm2112_vm13, %v6117_v53  ;;  %v8184_v53 = vld [vmem:[%s11158_s5 + $0x28] sm:$0xff] }
 0x693   : > { %8946 = vmatpush3.msra.mxu1 %v10774_v30  ;;  %8964 = vmatprep.subr.mxu0 %v11175_v28  ;;  %v10872_v30 = vld [vmem:[%s11157_s4 + $0x10] sm:$0xff] }
 0x694   : > { %8957 = vmatprep.subr.mxu1 %v10789_v35  ;;  %8948 = vmatmul.mubr.msk.f32.vlgmr.msra.gmra.mxu1 %vm2112_vm13, %v6118_v11 }
 0x695   : > { %8958 = vmatpush3.msra.mxu1 %v10789_v35  ;;  %8961 = vmatprep.mubr.msk.f32.mxu1 %vm2112_vm13, %v6595_v48  ;;  %v10959_v48 = vld [vmem:[%s11158_s5 + $0x8] sm:$0xff] }
 0x696   : > { %8959 = vmatprep.subr.mxu1 %v8157_v41  ;;  %8968 = vmatprep.mubr.msk.f32.mxu0 %vm9227_vm7, %v11175_v28 }
 0x697   : > { %8960 = vmatpush3.msra.mxu1 %v8157_v41  ;;  %8965 = vmatpush3.msra.mxu0 %v10862_v1  ;;  %v8185_v41 = vld [vmem:[%s11158_s5 + $0x30] sm:$0xff] }
 0x698   : > { %8962 = vmatmul.mubr.msk.f32.vlgmr.msra.gmra.mxu1 %vm2112_vm13, %v6596_v6  ;;  %8971 = vmatprep.subr.mxu1 %v11175_v28 }
 0x699   : > { %8975 = vmatprep.mubr.msk.f32.mxu1 %vm9227_vm7, %v11175_v28  ;;  %8972 = vmatpush3.msra.mxu1 %v10867_v22 }
 0x69a   : > { %8966 = vmatprep.subr.mxu0 %v11175_v28  ;;  %8973 = vmatprep.subr.mxu1 %v11175_v28 }
 0x69b   : > { %8967 = vmatpush3.msra.mxu0 %v10872_v30  ;;  %8974 = vmatpush3.msra.mxu1 %v10879_v52 }
 0x69c   : > { %8978 = vmatprep.subr.mxu0 %v11175_v28  ;;  %8985 = vmatprep.subr.mxu1 %v11175_v28 }
 0x73f   : > { %v8900_v35 = vpop.f32.mrf.mxu1  ;;  %v8914_v36 = vpop.f32.mrf.mxu0 }
 0x741   : > { %v5940_v58 = vpop.f32.mrf.mxu1  ;;  %v6106_v14 = vpop.f32.mrf.mxu0 }
 0x744   : > { %v8907_v13 = vpop.f32.mrf.mxu1 }
 0x745   : > { %v8928_v39 = vpop.f32.mrf.mxu0  ;;  %v6027_v60 = vadd.f32 %v8907_v13, %v8900_v35 }
 0x746   : > { %v6021_v15 = vpop.f32.mrf.mxu1 }
 0x747   : > { %v6280_v5 = vpop.f32.mrf.mxu0  ;;  %v6022_v56 = vadd.f32 %v6021_v15, %v5940_v58  ;;  %v6116_v9 = vadd.f32 %v8914_v36, %v6027_v60 }
 0x749   : > { %v6115_v51 = vadd.f32 %v6106_v14, %v6022_v56  ;;  %v8192_v56 = vld [vmem:[%s11158_s5 + $0x58] sm:$0xff] }
 0x74a   : > { %v8921_v55 = vpop.f32.mrf.mxu1 }
 0x74b   : > { %v8942_v45 = vpop.f32.mrf.mxu0  ;;  %v6203_v34 = vadd.f32 %v8921_v55, %v6116_v9  ;;  %v8191_v9 = vld [vmem:[%s11158_s5 + $0x50] sm:$0xff] }
 0x74c   : > { %v6193_v0 = vpop.f32.mrf.mxu1 }
 0x74d   : > { %v6432_v25 = vpop.f32.mrf.mxu0  ;;  %v6202_v59 = vadd.f32 %v6193_v0, %v6115_v51  ;;  %v6290_v62 = vadd.f32 %v8928_v39, %v6203_v34  ;;  %v8190_v51 = vld [vmem:[%s11158_s5 + $0x48] sm:$0xff]  ;;  %v7615_v34 = vld [vmem:[%s11159_s6 + $0x18] sm:$0xff] }
 0x74f   : > { %v6289_v32 = vadd.f32 %v6280_v5, %v6202_v59  ;;  %v7613_v59 = vld [vmem:[%s11159_s6 + $0x8] sm:$0xff] }
 0x750   : > { %v8935_v16 = vpop.f32.mrf.mxu1 }
 0x751   : > { %v6438_v27 = vadd.f32 %v8942_v45, %v8935_v16  ;;  %v8956_v50 = vpop.f32.mrf.mxu0  ;;  %v8182_v45 = vld [vmem:[%s11160_s7 + $0x3] ss:$0 sm:$0xff] }
 0x752   : > { %v6357_v2 = vpop.f32.mrf.mxu1 }
 0x753   : > { %v6433_v54 = vadd.f32 %v6432_v25, %v6357_v2  ;;  %v6584_v3 = vpop.f32.mrf.mxu0 }
 0x754   : > { %v8949_v33 = vpop.f32.mrf.mxu1 }
 0x755   : > { %v6517_v63 = vadd.f32 %v8949_v33, %v6438_v27  ;;  %v8189_v27 = vld [vmem:[%s11158_s5 + $0x40] sm:$0xff]  ;;  %v8201_v33 = vld [vmem:[%s11159_s6 + $0x38] sm:$0xff] }
 0x756   : > { %v6507_v42 = vpop.f32.mrf.mxu1 }
 0x757   : > { %v6516_v18 = vadd.f32 %v6507_v42, %v6433_v54  ;;  %v6594_v40 = vadd.f32 %v8956_v50, %v6517_v63  ;;  %v8200_v54 = vld [vmem:[%s11159_s6 + $0x30] sm:$0xff]  ;;  %v8199_v42 = vld [vmem:[%s11159_s6 + $0x28] sm:$0xff] }
 0x758   : > { %v8963_v49 = vpop.f32.mrf.mxu1  ;;  %v7614_v63 = vld [vmem:[%s11159_s6 + $0x10] sm:$0xff] }
 0x759   : > { %v6679_v12 = vadd.f32 %v8963_v49, %v6594_v40  ;;  %v6593_v61 = vadd.f32 %v6584_v3, %v6516_v18  ;;  %v8198_v18 = vld [vmem:[%s11159_s6 + $0x20] sm:$0xff] }
 0x75a   : > { %v6669_v47 = vpop.f32.mrf.mxu1  ;;  %v7612_v40 = vld [vmem:[%s11159_s6] sm:$0xff] }
 0x75b   : > { %v6681_v26 = vmax.f32 %v6290_v62, %v6679_v12  ;;  %v6678_v38 = vadd.f32 %v6669_v47, %v6593_v61 }
 0x75d   : > { %vm6688_vm6 = vcmp.ge.f32.partialorder %v6681_v26, %v8171_v7  ;;  %v6680_v24 = vmax.f32 %v6289_v32, %v6678_v38 }
 0x75e   : > { %v6690_v10 = vsel %vm6688_vm6, 1.0, %v11174_v37 }
 0x75f   : > { %6694 = vst.msk [vmem:[#allocation2 + $0x9] sm:$0xff] %vm2112_vm13, %v6690_v10  ;;  %vm6687_vm1 = vcmp.ge.f32.partialorder %v6680_v24, %v8171_v7 }
 0x760   : > { %v6689_v29 = vsel %vm6687_vm1, 1.0, %v11174_v37 }
 0x761   : > { %6693 = vst.msk [vmem:[#allocation2 + $0x1] sm:$0xff] %vm2112_vm13, %v6689_v29 }
 0x768   : > { %v6698_v20 = vld [vmem:[#allocation2 + $0x1] ss:$2 sm:$0xff]  ;;  %v6695_v19 = vld [vmem:[#allocation2] ss:$2 sm:$0xff] }
 0x769   : > { %8969 = vmatmul.mubr.msk.f32.vlgmr.msra.gmra.mxu0 %vm2112_vm13, %v6698_v20  ;;  %8976 = vmatmul.mubr.msk.f32.vlgmr.msra.gmra.mxu1 %vm2112_vm13, %v6695_v19  ;;  %7147 = vst.msk [vmem:[#allocation2] sm:$0x1] %vm3411_vm11, %v11175_v28  ;;  %v7064_v31 = vld [vmem:[#allocation2 + $0x3] ss:$2 sm:$0xff]  ;;  %v6847_v17 = vld [vmem:[#allocation2 + $0x2] ss:$2 sm:$0xff] }
 0x76a   : > { %8979 = vmatpush3.msra.mxu0 %v8177_v44  ;;  %8986 = vmatpush3.msra.mxu1 %v10862_v1  ;;  %7148 = vst.msk [vmem:[#allocation2 + $0x9] sm:$0x1] %vm3411_vm11, %v11175_v28 }
 0x76b   : > { %8980 = vmatprep.subr.mxu0 %v11175_v28  ;;  %8987 = vmatprep.subr.mxu1 %v11175_v28 }
 0x76c   : > { %8981 = vmatpush3.msra.mxu0 %v8176_v21  ;;  %8982 = vmatprep.mubr.msk.f32.mxu0 %vm9227_vm7, %v11175_v28 }
 0x76d   : > { %8988 = vmatpush3.msra.mxu1 %v10872_v30  ;;  %8989 = vmatprep.mubr.msk.f32.mxu1 %vm9227_vm7, %v11175_v28 }
 0x76e   : > { %8992 = vmatprep.subr.mxu0 %v11175_v28  ;;  %8983 = vmatmul.mubr.msk.f32.vlgmr.msra.gmra.mxu0 %vm2112_vm13, %v6847_v17 }
 0x76f   : > { %8990 = vmatmul.mubr.msk.f32.vlgmr.msra.gmra.mxu1 %vm2112_vm13, %v6847_v17  ;;  %8993 = vmatpush3.msra.mxu0 %v10867_v22 }
 0x770   : > { %8999 = vmatprep.subr.mxu1 %v11175_v28  ;;  %8994 = vmatprep.subr.mxu0 %v11175_v28 }
 0x771   : > { %9000 = vmatpush3.msra.mxu1 %v8177_v44  ;;  %8995 = vmatpush3.msra.mxu0 %v10879_v52 }
 0x772   : > { %9001 = vmatprep.subr.mxu1 %v11175_v28  ;;  %8996 = vmatprep.mubr.msk.f32.mxu0 %vm9227_vm7, %v11175_v28 }
 0x773   : > { %9002 = vmatpush3.msra.mxu1 %v8176_v21  ;;  %9003 = vmatprep.mubr.msk.f32.mxu1 %vm9227_vm7, %v11175_v28  ;;  %v8197_v21 = vld [vmem:[%s11160_s7 + $0x4] ss:$0 sm:$0xff] }
 0x774   : > { %8997 = vmatmul.mubr.msk.f32.vlgmr.msra.gmra.mxu0 %vm2112_vm13, %v6698_v20  ;;  %9004 = vmatmul.mubr.msk.f32.vlgmr.msra.gmra.mxu1 %vm2112_vm13, %v7064_v31 }
 0x775   : > { %9006 = vmatprep.subr.mxu0 %v11175_v28  ;;  %9017 = vmatprep.subr.mxu1 %v11175_v28 }
 0x776   : > { %9014 = vmatprep.mubr.msk.f32.mxu0 %vm9227_vm7, %v11175_v28  ;;  %9025 = vmatprep.mubr.msk.f32.mxu1 %vm9227_vm7, %v11175_v28 }
 0x777   : > { %9007 = vmatpush3.msra.mxu0 %v8186_v46  ;;  %9018 = vmatpush3.msra.mxu1 %v10940_v57 }
 0x778   : > { %9008 = vmatprep.subr.mxu0 %v11175_v28  ;;  %9019 = vmatprep.subr.mxu1 %v11175_v28 }
 0x779   : > { %9009 = vmatpush3.msra.mxu0 %v8185_v41  ;;  %9020 = vmatpush3.msra.mxu1 %v10949_v8 }
 0x77a   : > { %9010 = vmatprep.subr.mxu0 %v11175_v28  ;;  %9021 = vmatprep.subr.mxu1 %v11175_v28 }
 0x77b   : > { %9011 = vmatpush3.msra.mxu0 %v8184_v53  ;;  %9022 = vmatpush3.msra.mxu1 %v10959_v48 }
 0x77c   : > { %9012 = vmatprep.subr.mxu0 %v11175_v28  ;;  %9023 = vmatprep.subr.mxu1 %v11175_v28 }
 0x77d   : > { %9013 = vmatpush3.msra.mxu0 %v8183_v43  ;;  %9024 = vmatpush3.msra.mxu1 %v10970_v23 }
 0x77e   : > { %9028 = vmatprep.subr.mxu0 %v11175_v28  ;;  %9039 = vmatprep.subr.mxu1 %v11175_v28 }
 0x829   : > { %v6770_v4 = vpop.f32.mrf.mxu0  ;;  %v6843_v11 = vpop.f32.mrf.mxu1 }
 0x82a   : > { %v6844_v14 = vadd.f32 %v6843_v11, %v6770_v4 }
 0x82b   : > { %v8970_v6 = vpop.f32.mrf.mxu0  ;;  %v8977_v1 = vpop.f32.mrf.mxu1 }
 0x82e   : > { %v6919_v22 = vpop.f32.mrf.mxu0 }
 0x82f   : > { %v6990_v30 = vpop.f32.mrf.mxu1  ;;  %v6923_v5 = vadd.f32 %v6919_v22, %v6844_v14 }
 0x830   : > { %v8984_v52 = vpop.f32.mrf.mxu0 }
 0x831   : > { %v8991_v35 = vpop.f32.mrf.mxu1 }
 0x834   : > { %v7060_v36 = vpop.f32.mrf.mxu0  ;;  %v7134_v58 = vpop.f32.mrf.mxu1 }
 0x835   : > { %v7061_v13 = vadd.f32 %v7060_v36, %v6990_v30 }
 0x836   : > { %v8998_v39 = vpop.f32.mrf.mxu0  ;;  %v9005_v15 = vpop.f32.mrf.mxu1 }
 0x837   : > { %v7138_v55 = vadd.f32 %v7134_v58, %v7061_v13  ;;  %v7853_v13 = vld [vmem:[%s11160_s7 + $0x5] sm:$0x1]  ;;  %v7854_v15 = vld [vmem:[%s11160_s7 + $0x6] sm:$0x1] }
 0x839   : > { %v7139_v0 = vmax.f32 %v6923_v5, %v7138_v55 }
 0x83b   : > { %vm7145_vm13 = vcmp.ge.f32.partialorder %v7139_v0, %v8182_v45 }
 0x83c   : > { %v7146_v60 = vsel %vm7145_vm13, 1.0, %v11174_v37 }
 0x83d   : > { %7149 = vst.msk [vmem:[#allocation2 + $0x1] sm:$0xff] %vm3414_vm4, %v7146_v60 }
 0x844   : > { %v7155_v25 = vld [vmem:[#allocation2 + $0x1] ss:$2 sm:$0xf]  ;;  %v7150_v16 = vld [vmem:[#allocation2] ss:$2 sm:$0xf] }
 0x845   : > { %9015 = vmatmul.mubr.msk.f32.vlgmr.msra.gmra.mxu0 %vm3414_vm4, %v7155_v25  ;;  %9026 = vmatmul.mubr.msk.f32.vlgmr.msra.gmra.mxu1 %vm3414_vm4, %v7150_v16  ;;  %7608 = vst.msk [vmem:[#allocation2] sm:$0x1] %vm3411_vm11, %v11175_v28  ;;  %v7525_v2 = vld [vmem:[#allocation2 + $0x3] ss:$2 sm:$0xf] }
 0x846   : > { %9029 = vmatpush3.msra.mxu0 %v8192_v56  ;;  %9040 = vmatpush3.msra.mxu1 %v8186_v46  ;;  %7609 = vst.msk [vmem:[#allocation2 + $0x5] sm:$0x1] %vm3411_vm11, %v11175_v28  ;;  %v7306_v50 = vld [vmem:[#allocation2 + $0x2] ss:$2 sm:$0xf]  ;;  %v8207_v46 = vld [vmem:[%s11159_s6 + $0x58] sm:$0xff] }
 0x847   : > { %9030 = vmatprep.subr.mxu0 %v11175_v28  ;;  %9041 = vmatprep.subr.mxu1 %v11175_v28 }
 0x848   : > { %9031 = vmatpush3.msra.mxu0 %v8191_v9  ;;  %9042 = vmatpush3.msra.mxu1 %v8185_v41 }
 0x849   : > { %9032 = vmatprep.subr.mxu0 %v11175_v28  ;;  %9043 = vmatprep.subr.mxu1 %v11175_v28 }
 0x84a   : > { %9033 = vmatpush3.msra.mxu0 %v8190_v51  ;;  %9044 = vmatpush3.msra.mxu1 %v8184_v53  ;;  %v8204_v53 = vld [vmem:[%s11159_s6 + $0x40] sm:$0xff] }
 0x84b   : > { %9034 = vmatprep.subr.mxu0 %v11175_v28  ;;  %9045 = vmatprep.subr.mxu1 %v11175_v28 }
 0x84c   : > { %9035 = vmatpush3.msra.mxu0 %v8189_v27  ;;  %9036 = vmatprep.mubr.msk.f32.mxu0 %vm9227_vm7, %v11175_v28 }
 0x84d   : > { %9046 = vmatpush3.msra.mxu1 %v8183_v43  ;;  %9047 = vmatprep.mubr.msk.f32.mxu1 %vm9227_vm7, %v11175_v28 }
 0x84e   : > { %9037 = vmatmul.mubr.msk.f32.vlgmr.msra.gmra.mxu0 %vm3414_vm4, %v7306_v50  ;;  %9048 = vmatmul.mubr.msk.f32.vlgmr.msra.gmra.mxu1 %vm3414_vm4, %v7306_v50 }
 0x84f   : > { %9050 = vmatprep.subr.mxu0 %v11175_v28  ;;  %9061 = vmatprep.subr.mxu1 %v11175_v28 }
 0x850   : > { %9051 = vmatpush3.msra.mxu0 %v10940_v57  ;;  %9062 = vmatpush3.msra.mxu1 %v8192_v56 }
 0x851   : > { %9052 = vmatprep.subr.mxu0 %v11175_v28  ;;  %9063 = vmatprep.subr.mxu1 %v11175_v28 }
 0x852   : > { %9053 = vmatpush3.msra.mxu0 %v10949_v8  ;;  %9064 = vmatpush3.msra.mxu1 %v8191_v9  ;;  %v8206_v8 = vld [vmem:[%s11159_s6 + $0x50] sm:$0xff] }
 0x853   : > { %9054 = vmatprep.subr.mxu0 %v11175_v28  ;;  %9065 = vmatprep.subr.mxu1 %v11175_v28 }
 0x854   : > { %9055 = vmatpush3.msra.mxu0 %v10959_v48  ;;  %9066 = vmatpush3.msra.mxu1 %v8190_v51 }
 0x855   : > { %9056 = vmatprep.subr.mxu0 %v11175_v28  ;;  %9067 = vmatprep.subr.mxu1 %v11175_v28 }
 0x856   : > { %9057 = vmatpush3.msra.mxu0 %v10970_v23  ;;  %9058 = vmatprep.mubr.msk.f32.mxu0 %vm9227_vm7, %v11175_v28 }
 0x857   : > { %9068 = vmatpush3.msra.mxu1 %v8189_v27  ;;  %9069 = vmatprep.mubr.msk.f32.mxu1 %vm9227_vm7, %v11175_v28 }
 0x858   : > { %9059 = vmatmul.mubr.msk.f32.vlgmr.msra.gmra.mxu0 %vm3414_vm4, %v7155_v25  ;;  %9070 = vmatmul.mubr.msk.f32.vlgmr.msra.gmra.mxu1 %vm3414_vm4, %v7525_v2 }
 0x859   : > { %9072 = vmatprep.subr.mxu0 %v11175_v28  ;;  %9083 = vmatprep.subr.mxu1 %v11175_v28 }
 0x85a   : > { %9080 = vmatprep.mubr.msk.f32.mxu0 %vm9227_vm7, %v11175_v28  ;;  %9091 = vmatprep.mubr.msk.f32.mxu1 %vm9227_vm7, %v11175_v28 }
 0x85b   : > { %9073 = vmatpush3.msra.mxu0 %v8201_v33  ;;  %9084 = vmatpush3.msra.mxu1 %v7615_v34 }
 0x85c   : > { %9074 = vmatprep.subr.mxu0 %v11175_v28  ;;  %9085 = vmatprep.subr.mxu1 %v11175_v28 }
 0x85d   : > { %9075 = vmatpush3.msra.mxu0 %v8200_v54  ;;  %9086 = vmatpush3.msra.mxu1 %v7614_v63 }
 0x85e   : > { %9076 = vmatprep.subr.mxu0 %v11175_v28  ;;  %9087 = vmatprep.subr.mxu1 %v11175_v28 }
 0x85f   : > { %9077 = vmatpush3.msra.mxu0 %v8199_v42  ;;  %9088 = vmatpush3.msra.mxu1 %v7613_v59 }
 0x860   : > { %9078 = vmatprep.subr.mxu0 %v11175_v28  ;;  %9089 = vmatprep.subr.mxu1 %v11175_v28 }
 0x861   : > { %9079 = vmatpush3.msra.mxu0 %v8198_v18  ;;  %9090 = vmatpush3.msra.mxu1 %v7612_v40 }
 0x862   : > { %9094 = vmatprep.subr.mxu0 %v11175_v28 }
 0x905   : > { %v7229_v3 = vpop.f32.mrf.mxu0  ;;  %v7302_v49 = vpop.f32.mrf.mxu1 }
 0x906   : > { %v7303_v24 = vadd.f32 %v7302_v49, %v7229_v3 }
 0x907   : > { %v9016_v62 = vpop.f32.mrf.mxu0  ;;  %v9027_v12 = vpop.f32.mrf.mxu1 }
 0x90e   : > { %v7380_v61 = vpop.f32.mrf.mxu0  ;;  %v7451_v7 = vpop.f32.mrf.mxu1 }
 0x90f   : > { %v7384_v20 = vadd.f32 %v7380_v61, %v7303_v24 }
 0x910   : > { %v9038_v47 = vpop.f32.mrf.mxu0  ;;  %v9049_v32 = vpop.f32.mrf.mxu1 }
 0x918   : > { %v7521_v26 = vpop.f32.mrf.mxu0  ;;  %v7595_v38 = vpop.f32.mrf.mxu1 }
 0x919   : > { %v7522_v10 = vadd.f32 %v7521_v26, %v7451_v7 }
 0x91a   : > { %v9060_v29 = vpop.f32.mrf.mxu0  ;;  %v9071_v44 = vpop.f32.mrf.mxu1 }
 0x91b   : > { %v7599_v19 = vadd.f32 %v7595_v38, %v7522_v10 }
 0x91d   : > { %v7600_v31 = vmax.f32 %v7384_v20, %v7599_v19 }
 0x91f   : > { %vm7606_vm11 = vcmp.ge.f32.partialorder %v7600_v31, %v8197_v21 }
 0x920   : > { %v7607_v17 = vsel %vm7606_vm11, 1.0, %v11174_v37  ;;  %v8205_v37 = vld [vmem:[%s11159_s6 + $0x48] sm:$0xff] }
 0x921   : > { %7610 = vst.msk [vmem:[#allocation2 + $0x1] sm:$0xf] %vm3878_vm8, %v7607_v17 }
 0x928   : > { %v7616_v57 = vld [vmem:[#allocation2 + $0x1] sm:$0xf] }
 0x929   : > { %v7611_v41 = vld [vmem:[#allocation2] sm:$0xf]  ;;  %9081 = vmatmul.mubr.msk.f32.vlgmr.msra.gmra.mxu0 %vm3414_vm4, %v7616_v57 }
 0x92a   : > { %9092 = vmatmul.mubr.msk.f32.vlgmr.msra.gmra.mxu1 %vm3414_vm4, %v7611_v41  ;;  %9095 = vmatpush3.msra.mxu0 %v8207_v46  ;;  %v7767_v48 = vld [vmem:[#allocation2 + $0x2] sm:$0xf] }
 0x92b   : > { %9102 = vmatprep.mubr.msk.f32.mxu0 %vm9227_vm7, %v11175_v28  ;;  %9096 = vmatprep.subr.mxu0 %v11175_v28 }
 0x92c   : > { %9097 = vmatpush3.msra.mxu0 %v8206_v8 }
 0x92d   : > { %9098 = vmatprep.subr.mxu0 %v11175_v28 }
 0x92e   : > { %9099 = vmatpush3.msra.mxu0 %v8205_v37 }
 0x92f   : > { %9100 = vmatprep.subr.mxu0 %v11175_v28 }
 0x930   : > { %9101 = vmatpush3.msra.mxu0 %v8204_v53 }
 0x931   : > { %9103 = vmatmul.mubr.msk.f32.vlgmr.msra.gmra.mxu0 %vm3414_vm4, %v7767_v48 }
 0x9e9   : > { %v7690_v43 = vpop.f32.mrf.mxu0 }
 0x9ea   : > { %v7763_v23 = vpop.f32.mrf.mxu1 }
 0x9eb   : > { %v9082_v4 = vpop.f32.mrf.mxu0  ;;  %v7764_v6 = vadd.f32 %v7763_v23, %v7690_v43 }
 0x9ec   : > { %v9093_v11 = vpop.f32.mrf.mxu1 }
 0x9f1   : > { %v7841_v1 = vpop.f32.mrf.mxu0 }
 0x9f2   : > { %v7845_v22 = vadd.f32 %v7841_v1, %v7764_v6 }
 0x9f3   : > { %v9104_v30 = vpop.f32.mrf.mxu0 }
 0x9f4   : > { %v7846_v52 = vsel %vm4117_vm12, %v7845_v22, -inf }
 0x9f5   : > { %v7847_v35 = vrot.slane %v7846_v52, 4 }
 0x9f7   : > { %v7848_v28 = vmax.f32 %v7846_v52, %v7847_v35 }
 0x9f9   : > { %v7849_v36 = vrot.slane %v7848_v28, 2 }
 0x9fb   : > { %v7850_v58 = vmax.f32 %v7848_v28, %v7849_v36 }
 0x9fd   : > { %v7851_v14 = vrot.slane %v7850_v58, 1 }
 0x9ff   : > { %v7852_v39 = vmax.f32 %v7850_v58, %v7851_v14 }
 0xa01   : > { %v7855_v5 = vmul.f32 %v7853_v13, %v7852_v39 }
 0xa03   : > { %v7856_v55 = vadd.f32 %v7855_v5, %v7854_v15 }
 0xa05   : > { %8209 = vst.msk [vmem:[%s10748_s22 + $0x1] sm:$0x1] %vm4129_vm15, %v7856_v55 }
 0xa06   : > { %9175 = shalt.err (!%p9172_p3)
}
 0xa07   : > { %s9176_s12 = scalar_lea.hbm %s11105_s18, 32  ;;  %s9180_s10 = scalar_lea.hbm %s11161_s8, 64 }
 0xa08   : > { %p9177_p4 = scmp.ne.s32.totalorder %s11105_s18, %s9176_s12  ;;  %p9181_p9 = scmp.lt.s32.totalorder %s11105_s18, %s11161_s8 }
 0xa09   : > { %p9182_p10 = scmp.lt.s32.totalorder %s9180_s10, %s9176_s12 }
 0xa0a   : > { %p9178_p7 = pnand %p9177_p4, %p9314_p5 }
 0xa0b   : > { %p9183_p11 = por %p9182_p10, %p9181_p9 }
 0xa0c   : > { %p9179_p8 = pneg %p9178_p7 }
 0xa0e   : > { %p9184_p12 = pnand %p9183_p11, %p9179_p8 }
 0xa10   : > { %9187 = shalt.err (!%p9184_p12)
}
 0xa11   : > { %s9229_s17 = smov 16   ;;  %s9230_s19 = smov 1  }
 0xa12   : > { %9107 = dma.vmem_to_hbm [thread:$0]  (%p9314_p5), %s11107_s26, 32, %s11105_s18, %s11113_s9, %s9229_s17, %s9229_s17, %s9230_s19  }
 0xa13 PF: > { %p9113_p13 = scmp.ge.s32.totalorder %s9222_s30, 2  ;;  %s7888_s20 = sand.u32 1, %s9210_s27  }
 0xa14   : > { %s7889_s23 = scalar_lea.sflag [#allocation4], %s7888_s20 }
 0xa15   : > { %p9110_p0 = pnand %p9113_p13, %p9318_p6 }
 0xa17   : > { %p9111_p1 = pneg %p9110_p0 }
 0xa19   : > { %9205 = dma.done.wait (%p9111_p1), %s7889_s23, 32  }
 0xa1a   : > { %9207 = vsyncadd (%p9111_p1), %s7889_s23, 4294967264  ;;  %p18_p2 = scmp.ge.s32.totalorder %s9301_s11, 4   ;;  %s11182_s27 = smov %s9214_s28 }
 0xa1b   : > { %s11183_s28 = smov %s9218_s29  ;;  %s11184_s29 = smov %s9312_s14 }
 0xa1c   : > { %s11185_s30 = smov %s9301_s11  ;;  %20 = sbr.rel (!%p18_p2) target bundleno = 3 (0x3), region = 172 }
 0xa21   :  { %7894 = vsyncpa [#allocation4], 1 }
 0xa22   :  { %7896 = vsyncpa [#allocation4 + $0x1], 1 }

</bundles_post_ra>
